<compile_context>
chip_gen: v6e
topology: v6e:2x2x1
jax: 0.10.0
libtpu: 0.0.40
codegen_flags: <defaults>
</compile_context>

<pallas_src>
import numpy as np
import jax
import jax.numpy as jnp
from jax import lax
from jax.experimental import pallas as pl
from jax.experimental.pallas import tpu as pltpu


# ---------------------------------------------------------------------------
# Host-side constant operators (PyTorch-compatible bilinear / avg-pool).
# ---------------------------------------------------------------------------
def bilinear_matrix(out_size, in_size):
    # PyTorch bilinear, align_corners=False:  src = (dst + 0.5) * in/out - 0.5
    scale = in_size / out_size
    dst = np.arange(out_size, dtype=np.float64)
    src = np.maximum((dst + 0.5) * scale - 0.5, 0.0)
    i0 = np.minimum(np.floor(src).astype(np.int64), in_size - 1)
    i1 = np.minimum(i0 + 1, in_size - 1)
    frac = src - i0
    a = np.zeros((out_size, in_size), dtype=np.float64)
    a[np.arange(out_size), i0] += 1.0 - frac
    a[np.arange(out_size), i1] += frac
    return a.astype(np.float32)


def avgpool_matrix(out_size, factor):
    a = np.zeros((out_size, out_size * factor), dtype=np.float32)
    for i in range(out_size):
        a[i, i * factor:(i + 1) * factor] = 1.0 / factor
    return a


# ---------------------------------------------------------------------------
# Fused kernel: embedding lookup + head + x8-equivalent resample + x32 upsample
# ---------------------------------------------------------------------------
def _fused_seg_kernel(ids_ref, sel_ref, g_t_ref, bdg_ref, o_ref):
    n_rows = ids_ref.shape[0]                      # B * 8
    grid_w = ids_ref.shape[1]                      # 8
    num_codes = sel_ref.shape[1] // n_rows
    ids = ids_ref[...]                             # (B*8, 8) int32

    # One-hot over codes, rows ordered (b, r, code), cols = spatial column.
    code_iota = lax.broadcasted_iota(jnp.int32, (n_rows, num_codes, grid_w), 1)
    onehot = (ids[:, None, :] == code_iota).astype(jnp.float32)   # (B*8, codes, 8)
    onehot = onehot.reshape(n_rows * num_codes, grid_w)           # (B*8*codes, 8)

    # Embedding + 1x1 conv + bias (all folded into SEL) -> per-(b,c) 8x8 maps,
    # rows ordered (b, c, r).
    x_st = jnp.dot(sel_ref[...], onehot,
                   preferred_element_type=jnp.float32)            # (slab*8, 8)
    # Column upsample (x32 o pool o up8 composed): one lane-dense matmul.
    tmp = jnp.dot(x_st, g_t_ref[...],
                  preferred_element_type=jnp.float32)             # (slab*8, 256)
    # Row upsample for all slabs at once: block-diagonal kron(I_slab, G).
    out = jnp.dot(bdg_ref[...], tmp,
                  preferred_element_type=jnp.float32)             # (slab*256, 256)
    o_ref[...] = out.astype(o_ref.dtype)


def fused_index_to_seg(ids3, sel, g_t, bdg, *, n_steps, out_dtype):
    n_rows_total, kdim = sel.shape          # (B*ncls*8, B*8*codes)
    slab_rows = n_rows_total // n_steps     # rows of X handled per grid step
    out_rows_step = bdg.shape[0]            # slab*256
    ho = g_t.shape[1]                       # 256
    if n_steps > 1:
        # True per-core split only matters on 2-TC chips (v7x).
        sem = (getattr(pltpu, "CORE_PARALLEL", "parallel"),)
    else:
        sem = ("arbitrary",)
    return pl.pallas_call(
        _fused_seg_kernel,
        out_shape=jax.ShapeDtypeStruct((out_rows_step * n_steps, ho), out_dtype),
        grid=(n_steps,),
        in_specs=[
            pl.BlockSpec(ids3.shape, lambda i: (0, 0)),          # full ids each step
            pl.BlockSpec((slab_rows, kdim), lambda i: (i, 0)),   # this step's classes
            pl.BlockSpec(g_t.shape, lambda i: (0, 0)),
            pl.BlockSpec(bdg.shape, lambda i: (0, 0)),
        ],
        out_specs=pl.BlockSpec((out_rows_step, ho), lambda i: (i, 0)),
        compiler_params=pltpu.CompilerParams(dimension_semantics=sem),
    )(ids3, sel, g_t, bdg)


# ---------------------------------------------------------------------------
# Module
# ---------------------------------------------------------------------------
class Index1DToSegmentationPallas:
    GRID = 8     # 8x8 grid of code indices
    MID = 64     # backbone input spatial size
    OUT = 256    # final output spatial size

    def __init__(self, num_codes, num_classes, embed_dim=32, key=None,
                 out_dtype=jnp.float32, num_tensorcores=1):
        if key is None:
            key = jax.random.PRNGKey(0)
        k1, k2, k3 = jax.random.split(key, 3)
        self.num_codes = num_codes
        self.num_classes = num_classes
        self.embed_dim = embed_dim
        self.out_dtype = out_dtype
        # Static flag: 1 on single-TC chips (v5e/v6e); pass 2 on v7x for a
        # CORE_PARALLEL 2-way split of the class slabs.
        self.num_tensorcores = max(int(num_tensorcores), 1)

        # nn.Embedding(num_codes, embed_dim)
        self.table = jax.random.normal(k1, (num_codes, embed_dim), jnp.float32)
        # TODO(synk): efficientvit_backbone_b0 + SegHead (EfficientViTSeg) are
        # external library code not provided with the module; stand in with a
        # stride-8 average pool + 1x1 conv (embed_dim -> num_classes) so the
        # stride-8 class map feeding the x32 upsample keeps its shape semantics.
        self.head_w = (jax.random.normal(k2, (num_classes, embed_dim), jnp.float32)
                       / np.sqrt(embed_dim)).astype(jnp.float32)
        self.head_b = 0.01 * jax.random.normal(k3, (num_classes,), jnp.float32)

        # Constant separable resampling operators, composed on the host:
        self._a8 = bilinear_matrix(self.MID, self.GRID)                  # (64, 8)
        self._pool = avgpool_matrix(self.GRID, self.MID // self.GRID)    # (8, 64)
        self._a32 = bilinear_matrix(self.OUT, self.GRID)                 # (256, 8)
        m = self._pool @ self._a8                                        # (8, 8)
        self._g = (self._a32 @ m).astype(np.float32)                     # (256, 8)
        self.g_t = jnp.asarray(self._g.T)                                # (8, 256)

        # Embedding + 1x1 conv + bias folded into one per-class code table:
        #   wtb[c, code] = sum_d W[c,d] * table[code,d] + b[c]
        # (exact: one-hot rows and the pool/bilinear row sums are all 1).
        wtb = jnp.matmul(self.head_w, self.table.T) + self.head_b[:, None]
        self._wtb_np = np.asarray(wtb, dtype=np.float32)                 # (ncls, codes)

        self._cache = {}   # batch-size -> (SEL, BDG, n_steps)

    def _prepare(self, bsz):
        if bsz in self._cache:
            return self._cache[bsz]
        ncls, codes, g = self.num_classes, self.num_codes, self.GRID
        n_slabs = bsz * ncls
        n_steps = (self.num_tensorcores
                   if (self.num_tensorcores > 1 and n_slabs % self.num_tensorcores == 0)
                   else 1)
        slab = n_slabs // n_steps
        # SEL[(b,c,r), (b',r',code)] = [b==b'] [r==r'] * wtb[c, code]
        sel = np.zeros((bsz, ncls, g, bsz, g, codes), np.float32)
        for b in range(bsz):
            for r in range(g):
                sel[b, :, r, b, r, :] = self._wtb_np
        sel = jnp.asarray(sel.reshape(n_slabs * g, bsz * g * codes))
        # Row-upsample operator for one grid step: kron(I_slab, G)  (slab*256, slab*8)
        bdg = jnp.asarray(np.kron(np.eye(slab, dtype=np.float32), self._g))
        self._cache[bsz] = (sel, bdg, n_steps)
        return self._cache[bsz]

    def __call__(self, x_idx):
        bsz, n = x_idx.shape
        assert n == self.GRID * self.GRID, "input must be an 8x8 grid of code indices"
        sel, bdg, n_steps = self._prepare(bsz)
        ids3 = x_idx.astype(jnp.int32).reshape(bsz * self.GRID, self.GRID)
        out = fused_index_to_seg(ids3, sel, self.g_t, bdg,
                                 n_steps=n_steps, out_dtype=self.out_dtype)
        return out.reshape(bsz, self.num_classes, self.OUT, self.OUT)

    # Pure-JAX reference of the (stand-in) forward pass, for validation.
    def reference_forward(self, x_idx):
        bsz = x_idx.shape[0]
        g, d = self.GRID, self.embed_dim
        a8 = jnp.asarray(self._a8)
        pool = jnp.asarray(self._pool)
        a32 = jnp.asarray(self._a32)
        emb = self.table[x_idx.astype(jnp.int32)]                    # (B, 64, D)
        f = emb.reshape(bsz, g, g, d).transpose(0, 3, 1, 2)          # (B, D, 8, 8)
        up = jnp.einsum('ur,bdrc,vc->bduv', a8, f, a8)               # (B, D, 64, 64)
        pooled = jnp.einsum('pr,bdrc,qc->bdpq', pool, up, pool)      # (B, D, 8, 8)
        logits = (jnp.einsum('kd,bdpq->bkpq', self.head_w, pooled)
                  + self.head_b[None, :, None, None])                # (B, ncls, 8, 8)
        return jnp.einsum('ur,bkrc,vc->bkuv', a32, logits, a32)      # (B, ncls, 256, 256)


if __name__ == "__main__":
    key = jax.random.PRNGKey(0)
    k_idx, k_model = jax.random.split(key)

    num_codes, num_classes, embed_dim = 64, 4, 32
    B = 2
    # input: (B, 64) integer code indices -> an 8x8 code grid
    x = jax.random.randint(k_idx, (B, 64), 0, num_codes, dtype=jnp.int32)

    model = Index1DToSegmentationPallas(num_codes, num_classes, embed_dim, key=k_model)
    y = jax.block_until_ready(model(x))

    assert y.shape == (B, num_classes, 256, 256), y.shape
    assert y.dtype == jnp.float32, y.dtype
    assert bool(jnp.all(jnp.isfinite(y)))

    y_ref = jax.block_until_ready(model.reference_forward(x))
    max_err = float(jnp.max(jnp.abs(y - y_ref)))
    assert max_err < 5e-3, f"mismatch vs pure-JAX reference: {max_err}"
    print("KERNEL_OK")
</pallas_src>

<mosaic_0001>
module attributes {stable_mosaic.version = 11 : i64} {
  func.func @_fused_seg_kernel(%arg0: i32, %arg1: memref<16x8xi32, #tpu.memory_space<vmem>>, %arg2: memref<64x1024xf32, #tpu.memory_space<vmem>>, %arg3: memref<8x256xf32, #tpu.memory_space<vmem>>, %arg4: memref<2048x64xf32, #tpu.memory_space<vmem>>, %arg5: memref<2048x256xf32, #tpu.memory_space<vmem>>) attributes {dimension_semantics = [#tpu.dimension_semantics<arbitrary>], iteration_bounds = array<i64: 1>, scalar_prefetch = 0 : i64, scratch_operands = 0 : i64, tpu.core_type = #tpu.core_type<tc>, window_params = [{pipeline_mode = #tpu.pipeline_mode<synchronous>, transform_indices = @transform_0, window_bounds = array<i64: 16, 8>}, {transform_indices = @transform_1, window_bounds = array<i64: 64, 1024>}, {pipeline_mode = #tpu.pipeline_mode<synchronous>, transform_indices = @transform_2, window_bounds = array<i64: 8, 256>}, {pipeline_mode = #tpu.pipeline_mode<synchronous>, transform_indices = @transform_3, window_bounds = array<i64: 2048, 64>}, {transform_indices = @transform_4, window_bounds = array<i64: 2048, 256>}]} {
    %c0 = arith.constant 0 : index
    %c0_0 = arith.constant 0 : index
    %0 = vector.load %arg1[%c0, %c0_0] : memref<16x8xi32, #tpu.memory_space<vmem>>, vector<16x8xi32>
    %1 = tpu.iota {dimensions = array<i32: 1>} : vector<16x64x8xi32>
    %2 = vector.shape_cast %0 : vector<16x8xi32> to vector<16x1x8xi32>
    %3 = vector.broadcast %2 : vector<16x1x8xi32> to vector<16x64x8xi32>
    %4 = arith.cmpi eq, %3, %1 : vector<16x64x8xi32>
    %5 = arith.extui %4 : vector<16x64x8xi1> to vector<16x64x8xi32>
    %6 = arith.sitofp %5 : vector<16x64x8xi32> to vector<16x64x8xf32>
    %7 = vector.shape_cast %6 : vector<16x64x8xf32> to vector<1024x8xf32>
    %c0_1 = arith.constant 0 : index
    %c0_2 = arith.constant 0 : index
    %8 = vector.load %arg2[%c0_1, %c0_2] : memref<64x1024xf32, #tpu.memory_space<vmem>>, vector<64x1024xf32>
    %cst = arith.constant dense<0.000000e+00> : vector<64x8xf32>
    %9 = tpu.matmul %8, %7, %cst {dimension_numbers = #tpu.dot_dimension_numbers<[1], [0], [0], [1], [0, 0, 1, 1], [], []>} : vector<64x1024xf32>, vector<1024x8xf32>, vector<64x8xf32> -> vector<64x8xf32>
    %c0_3 = arith.constant 0 : index
    %c0_4 = arith.constant 0 : index
    %10 = vector.load %arg3[%c0_3, %c0_4] : memref<8x256xf32, #tpu.memory_space<vmem>>, vector<8x256xf32>
    %cst_5 = arith.constant dense<0.000000e+00> : vector<64x256xf32>
    %11 = tpu.matmul %9, %10, %cst_5 {dimension_numbers = #tpu.dot_dimension_numbers<[1], [0], [0], [1], [0, 0, 1, 1], [], []>} : vector<64x8xf32>, vector<8x256xf32>, vector<64x256xf32> -> vector<64x256xf32>
    %c0_6 = arith.constant 0 : index
    %c0_7 = arith.constant 0 : index
    %12 = vector.load %arg4[%c0_6, %c0_7] : memref<2048x64xf32, #tpu.memory_space<vmem>>, vector<2048x64xf32>
    %cst_8 = arith.constant dense<0.000000e+00> : vector<2048x256xf32>
    %13 = tpu.matmul %12, %11, %cst_8 {dimension_numbers = #tpu.dot_dimension_numbers<[1], [0], [0], [1], [0, 0, 1, 1], [], []>} : vector<2048x64xf32>, vector<64x256xf32>, vector<2048x256xf32> -> vector<2048x256xf32>
    %c0_9 = arith.constant 0 : index
    %c0_10 = arith.constant 0 : index
    %14 = vector.load %arg5[%c0_9, %c0_10] : memref<2048x256xf32, #tpu.memory_space<vmem>>, vector<2048x256xf32>
    tpu.vector_store %arg5[%c0_9, %c0_10], %13 {strides = array<i32>} : memref<2048x256xf32, #tpu.memory_space<vmem>>, vector<2048x256xf32>,
    return
  }
  func.func @transform_0(%arg0: i32) -> (i32, i32) {
    %c0_i32 = arith.constant 0 : i32
    %c0_i32_0 = arith.constant 0 : i32
    %c0_i32_1 = arith.constant 0 : i32
    return %c0_i32, %c0_i32_0 : i32, i32
  }
  func.func @transform_1(%arg0: i32) -> (i32, i32) {
    %c0_i32 = arith.constant 0 : i32
    %c0_i32_0 = arith.constant 0 : i32
    return %arg0, %c0_i32 : i32, i32
  }
  func.func @transform_2(%arg0: i32) -> (i32, i32) {
    %c0_i32 = arith.constant 0 : i32
    %c0_i32_0 = arith.constant 0 : i32
    %c0_i32_1 = arith.constant 0 : i32
    return %c0_i32, %c0_i32_0 : i32, i32
  }
  func.func @transform_3(%arg0: i32) -> (i32, i32) {
    %c0_i32 = arith.constant 0 : i32
    %c0_i32_0 = arith.constant 0 : i32
    %c0_i32_1 = arith.constant 0 : i32
    return %c0_i32, %c0_i32_0 : i32, i32
  }
  func.func @transform_4(%arg0: i32) -> (i32, i32) {
    %c0_i32 = arith.constant 0 : i32
    %c0_i32_0 = arith.constant 0 : i32
    return %arg0, %c0_i32 : i32, i32
  }
}

</mosaic_0001>

<bundles_post_ra>
// kernel: tpu_custom_call.1
= control target key start
LH: loop header
LB: loop body
LE: loop exit
PB: predicated region body
PF: predicated region fallthrough
CT: control target
= control target key end

     0   :  { %9 = vsyncpa [#allocation3], 0  ;;  %s7126_s0 = inlined_call_operand.vmem [shape: s32[16,8], index: 0, kind: input, shape index: {}]   ;;  %s7127_s1 = inlined_call_operand.hbm [shape: f32[64,1024], index: 1, kind: input, shape index: {}]   ;;  %s7128_s2 = inlined_call_operand.hbm [shape: f32[8,256], index: 2, kind: input, shape index: {}]   ;;  %s7129_s3 = inlined_call_operand.vmem [shape: f32[2048,64], index: 3, kind: input, shape index: {}]   ;;  %s7130_s4 = inlined_call_operand.hbm [shape: f32[2048,256], index: 4, kind: output, shape index: {}]  }
   0x1   :  { %10 = vsyncpa [#allocation6], 0 }
   0x2   :  { %11 = vsyncpa [#allocation4], 0  ;;  %s5219_s15 = smov [#allocation2]  }
   0x3   :  { %s19_s16 = sshll.u32 %s5219_s15, 4  ;;  %s20_s16 = int_to_ptr.vmem [resolvable:$true] %s19_s16 }
   0x4   :  { %s5161_s17 = scalar_lea.vmem %s20_s16, 8192  ;;  %p5166_p1 = scmp.lt.s32.totalorder %s20_s16, %s20_s16 }
   0x5   :  { %p5162_p0 = scmp.ne.s32.totalorder %s20_s16, %s5161_s17  ;;  %p5167_p2 = scmp.lt.s32.totalorder %s5161_s17, %s5161_s17 }
   0x7   :  { %p5168_p3 = por %p5167_p2, %p5166_p1 }
   0x9   :  { %p5169_p4 = pnand %p5168_p3, %p5162_p0 }
   0xb   :  { %5172 = shalt.err (!%p5169_p4)
}
   0xc   :  { %s5220_s18 = smov 1024   ;;  %s5221_s19 = smov 64  }
   0xd   :  { %25 = dma.hbm_to_vmem [thread:$0]  %s7127_s1, 8192, %s20_s16, [#allocation3], %s5220_s18, %s5220_s18, %s5221_s19  }
   0xe   :  { %s5222_s22 = smov [#allocation5]  }
   0xf   :  { %s32_s23 = sshll.u32 %s5222_s22, 4  ;;  %s33_s23 = int_to_ptr.vmem [resolvable:$true] %s32_s23 }
  0x10   :  { %s5181_s24 = scalar_lea.vmem %s33_s23, 256  ;;  %p5186_p6 = scmp.lt.s32.totalorder %s33_s23, %s33_s23 }
  0x11   :  { %p5182_p5 = scmp.ne.s32.totalorder %s33_s23, %s5181_s24  ;;  %p5187_p7 = scmp.lt.s32.totalorder %s5181_s24, %s5181_s24 }
  0x13   :  { %p5188_p8 = por %p5187_p7, %p5186_p6 }
  0x15   :  { %p5189_p9 = pnand %p5188_p8, %p5182_p5 }
  0x17   :  { %5192 = shalt.err (!%p5189_p9)
}
  0x18   :  { %35 = dma.hbm_to_vmem [thread:$0]  %s7128_s2, 256, %s33_s23, [#allocation6]  }
  0x19   :  { %5213 = dma.done.wait [#allocation3], 8192  }
  0x1a   :  { %5214 = vsyncadd [#allocation3], 4294959104 }
  0x1b   :  { %5215 = dma.done.wait [#allocation6], 256  }
  0x1c   :  { %5216 = vsyncadd [#allocation6], 4294967040  ;;  %v46_v0 = vlaneseq  ;;  %v5223_v1 = vmov 1966171168   ;;  %v44_v6 = vld [vmem:[%s7126_s0] sm:$0xff]  ;;  %v602_v7 = vld [vmem:[#allocation2 + $0x8] sm:$0xff] }
  0x1d   :  { %v57_v2 = vunpack.c.l.s4 %v5223_v1  ;;  %v55_v9 = vcombine.high %v44_v6, %v44_v6  ;;  %729 = vmatprep.mubr.f32.mxu0 %v602_v7  ;;  %v604_v10 = vld [vmem:[#allocation2 + $0x18] sm:$0xff]  ;;  %v5224_v27 = vmov 1.0   ;;  %v45_v30 = vld [vmem:[%s7126_s0 + $0x8] sm:$0xff]  ;;  %v601_v52 = vld [vmem:[#allocation2] sm:$0xff] }
  0x1e   :  { %v5260_v3 = vshrl.u32 %v46_v0, 7  ;;  %834 = vmatprep.mubr.f32.mxu1 %v604_v10  ;;  %v104_v33 = vcombine.high %v45_v30, %v45_v30  ;;  %v603_v55 = vld [vmem:[#allocation2 + $0x10] sm:$0xff]  ;;  %v610_v56 = vld [vmem:[#allocation2 + $0x48] sm:$0xff]  ;;  %v609_v58 = vld [vmem:[#allocation2 + $0x40] sm:$0xff] }
  0x1f   :  { %v58_v4 = vunpack.c.0.s8 %v57_v2  ;;  %v612_v60 = vld [vmem:[#allocation2 + $0x58] sm:$0xff]  ;;  %v611_v62 = vld [vmem:[#allocation2 + $0x50] sm:$0xff]  ;;  %v618_v0 = vld [vmem:[#allocation2 + $0x88] sm:$0xff] }
  0x20   :  { %v5270_v12 = vsub.s32 0, %v5260_v3  ;;  %v5275_v16 = vadd.s32 56, %v5260_v3  ;;  %v5281_v19 = vadd.s32 48, %v5260_v3  ;;  %v5288_v23 = vadd.s32 40, %v5260_v3  ;;  %v617_v1 = vld [vmem:[#allocation2 + $0x80] sm:$0xff]  ;;  %v620_v2 = vld [vmem:[#allocation2 + $0x98] sm:$0xff] }
  0x21   :  { %v5263_v5 = vsub.s32 %v58_v4, %v5260_v3  ;;  %v5303_v26 = vadd.s32 32, %v5260_v3  ;;  %v5311_v28 = vadd.s32 24, %v5260_v3  ;;  %v5337_v31 = vadd.s32 16, %v5260_v3  ;;  %v619_v4 = vld [vmem:[#allocation2 + $0x90] sm:$0xff]  ;;  %v625_v7 = vld [vmem:[#allocation2 + $0xc0] sm:$0xff] }
  0x22   :  { %v5353_v34 = vadd.s32 8, %v5260_v3  ;;  %v627_v10 = vld [vmem:[#allocation2 + $0xd0] sm:$0xff] }
  0x23   :  { %v62_v8 = vrot.slane %v44_v6, %v5263_v5  ;;  %v69_v13 = vrot.slane %v55_v9, %v5263_v5  ;;  %v5362_v36 = vrot.slane %v45_v30, %v5263_v5  ;;  %v5377_v38 = vrot.slane %v104_v33, %v5263_v5  ;;  %v605_v30 = vld [vmem:[#allocation2 + $0x20] sm:$0xff]  ;;  %v614_v33 = vld [vmem:[#allocation2 + $0x68] sm:$0xff] }
  0x25   :  { %v70_v11 = vcombine.high %v62_v8, %v62_v8  ;;  %v71_v15 = vcombine.high %v69_v13, %v69_v13  ;;  %v78_v29 = vrot.slane %v62_v8, %v5263_v5  ;;  %v85_v32 = vrot.slane %v69_v13, %v5263_v5  ;;  %v628_v8 = vld [vmem:[#allocation2 + $0xd8] sm:$0xff]  ;;  %v634_v13 = vld [vmem:[#allocation2 + $0x108] sm:$0xff] }
  0x26   :  { %v119_v43 = vcombine.high %v5362_v36, %v5362_v36  ;;  %v120_v44 = vcombine.high %v5377_v38, %v5377_v38  ;;  %v134_v53 = vrot.slane %v5377_v38, %v5263_v5  ;;  %v127_v63 = vrot.slane %v5362_v36, %v5263_v5  ;;  %v616_v36 = vld [vmem:[#allocation2 + $0x78] sm:$0xff]  ;;  %v621_v38 = vld [vmem:[#allocation2 + $0xa0] sm:$0xff] }
  0x27   :  { %v92_v14 = vrot.slane %v70_v11, %v5263_v5  ;;  %v99_v20 = vrot.slane %v71_v15, %v5263_v5  ;;  %v100_v35 = vcombine.high %v78_v29, %v78_v29  ;;  %v101_v37 = vcombine.high %v85_v32, %v85_v32  ;;  %v635_v15 = vld [vmem:[#allocation2 + $0x110] sm:$0xff] }
  0x28   :  { %v5395_v40 = vrot.slane %v78_v29, %v5270_v12  ;;  %v5413_v42 = vrot.slane %v85_v32, %v5270_v12  ;;  %v141_v45 = vrot.slane %v119_v43, %v5263_v5  ;;  %v148_v46 = vrot.slane %v120_v44, %v5263_v5  ;;  %v626_v5 = vld [vmem:[#allocation2 + $0xc8] sm:$0xff]  ;;  %v660_v29 = vld [vmem:[#allocation2 + $0x1d8] sm:$0xff] }
  0x29   :  { %v102_v17 = vcombine.high %v92_v14, %v92_v14  ;;  %v5278_v18 = vrot.slane %v92_v14, %v5270_v12  ;;  %v103_v22 = vcombine.high %v99_v20, %v99_v20  ;;  %v5293_v24 = vrot.slane %v99_v20, %v5270_v12  ;;  %v633_v14 = vld [vmem:[#allocation2 + $0x100] sm:$0xff]  ;;  %v644_v20 = vld [vmem:[#allocation2 + $0x158] sm:$0xff]  ;;  %v638_v44 = vld [vmem:[#allocation2 + $0x128] sm:$0xff] }
  0x2a   :  { %v5386_v39 = vrot.slane %v100_v35, %v5270_v12  ;;  %v5404_v41 = vrot.slane %v101_v37, %v5270_v12  ;;  %v151_v47 = vcombine.high %v141_v45, %v141_v45  ;;  %v152_v48 = vcombine.high %v148_v46, %v148_v46  ;;  %v608_v32 = vld [vmem:[#allocation2 + $0x38] sm:$0xff]  ;;  %v613_v35 = vld [vmem:[#allocation2 + $0x60] sm:$0xff]  ;;  %v622_v37 = vld [vmem:[#allocation2 + $0xa8] sm:$0xff] }
  0x2b   :  { %v5285_v21 = vrot.slane %v102_v17, %v5270_v12  ;;  %vm232_vm0 = vcmp.eq.s32.totalorder %v5278_v18, %v5275_v16  ;;  %v5300_v25 = vrot.slane %v103_v22, %v5270_v12  ;;  %vm231_vm3 = vcmp.eq.s32.totalorder %v5278_v18, %v5281_v19  ;;  %v642_v17 = vld [vmem:[#allocation2 + $0x148] sm:$0xff]  ;;  %v652_v22 = vld [vmem:[#allocation2 + $0x198] sm:$0xff] }
  0x2c   :  { %vm264_vm4 = vcmp.eq.s32.totalorder %v5293_v24, %v5275_v16  ;;  %vm230_vm8 = vcmp.eq.s32.totalorder %v5278_v18, %v5288_v23  ;;  %vm263_vm9 = vcmp.eq.s32.totalorder %v5293_v24, %v5281_v19  ;;  %vm229_vm12 = vcmp.eq.s32.totalorder %v5278_v18, %v5303_v26  ;;  %v632_v43 = vld [vmem:[#allocation2 + $0xf8] sm:$0xff] }
  0x2d   :  { %vm248_vm1 = vcmp.eq.s32.totalorder %v5285_v21, %v5275_v16  ;;  %vm247_vm2 = vcmp.eq.s32.totalorder %v5285_v21, %v5281_v19  ;;  %vm280_vm5 = vcmp.eq.s32.totalorder %v5300_v25, %v5275_v16  ;;  %vm246_vm6 = vcmp.eq.s32.totalorder %v5285_v21, %v5288_v23 }
  0x2e   :  { %4901 = vmatprep.subr.msk.mxu0 %vm248_vm1, %v5224_v27  ;;  %vm279_vm7 = vcmp.eq.s32.totalorder %v5300_v25, %v5281_v19  ;;  %4957 = vmatprep.subr.msk.mxu1 %vm280_vm5, %v5224_v27  ;;  %vm245_vm10 = vcmp.eq.s32.totalorder %v5285_v21, %v5303_v26  ;;  %vm278_vm11 = vcmp.eq.s32.totalorder %v5300_v25, %v5288_v23 }
  0x2f   :  { %4902 = vmatpush3.msk.msra.mxu0 %vm232_vm0, %v5224_v27  ;;  %4958 = vmatpush3.msk.msra.mxu1 %vm264_vm4, %v5224_v27  ;;  %vm262_vm13 = vcmp.eq.s32.totalorder %v5293_v24, %v5288_v23  ;;  %vm244_vm14 = vcmp.eq.s32.totalorder %v5285_v21, %v5311_v28  ;;  %vm277_vm15 = vcmp.eq.s32.totalorder %v5300_v25, %v5303_v26 }
  0x30   :  { %4903 = vmatprep.subr.msk.mxu0 %vm247_vm2, %v5224_v27  ;;  %4959 = vmatprep.subr.msk.mxu1 %vm279_vm7, %v5224_v27  ;;  %vm228_vm0 = vcmp.eq.s32.totalorder %v5278_v18, %v5311_v28  ;;  %vm261_vm1 = vcmp.eq.s32.totalorder %v5293_v24, %v5303_v26  ;;  %vm243_vm2 = vcmp.eq.s32.totalorder %v5285_v21, %v5337_v31 }
  0x31   :  { %4904 = vmatpush3.msk.msra.mxu0 %vm231_vm3, %v5224_v27  ;;  %4960 = vmatpush3.msk.msra.mxu1 %vm263_vm9, %v5224_v27  ;;  %vm276_vm3 = vcmp.eq.s32.totalorder %v5300_v25, %v5311_v28  ;;  %vm227_vm4 = vcmp.eq.s32.totalorder %v5278_v18, %v5337_v31  ;;  %vm260_vm5 = vcmp.eq.s32.totalorder %v5293_v24, %v5311_v28 }
  0x32   :  { %4905 = vmatprep.subr.msk.mxu0 %vm246_vm6, %v5224_v27  ;;  %4961 = vmatprep.subr.msk.mxu1 %vm278_vm11, %v5224_v27  ;;  %vm242_vm6 = vcmp.eq.s32.totalorder %v5285_v21, %v5353_v34  ;;  %vm275_vm7 = vcmp.eq.s32.totalorder %v5300_v25, %v5337_v31  ;;  %vm259_vm9 = vcmp.eq.s32.totalorder %v5293_v24, %v5337_v31 }
  0x33   :  { %4906 = vmatpush3.msk.msra.mxu0 %vm230_vm8, %v5224_v27  ;;  %4962 = vmatpush3.msk.msra.mxu1 %vm262_vm13, %v5224_v27  ;;  %vm226_vm8 = vcmp.eq.s32.totalorder %v5278_v18, %v5353_v34  ;;  %vm274_vm11 = vcmp.eq.s32.totalorder %v5300_v25, %v5353_v34  ;;  %vm258_vm13 = vcmp.eq.s32.totalorder %v5293_v24, %v5353_v34 }
  0x34   :  { %4907 = vmatprep.subr.msk.mxu0 %vm245_vm10, %v5224_v27  ;;  %4963 = vmatprep.subr.msk.mxu1 %vm277_vm15, %v5224_v27  ;;  %vm241_vm10 = vcmp.eq.s32.totalorder %v5285_v21, %v5260_v3  ;;  %vm273_vm15 = vcmp.eq.s32.totalorder %v5300_v25, %v5260_v3  ;;  %v5506_v49 = vrot.slane %v151_v47, %v5270_v12  ;;  %v650_v21 = vld [vmem:[#allocation2 + $0x188] sm:$0xff]  ;;  %v639_v47 = vld [vmem:[#allocation2 + $0x130] sm:$0xff] }
  0x35   :  { %4908 = vmatpush3.msk.msra.mxu0 %vm229_vm12, %v5224_v27  ;;  %4964 = vmatpush3.msk.msra.mxu1 %vm261_vm1, %v5224_v27  ;;  %vm225_vm12 = vcmp.eq.s32.totalorder %v5278_v18, %v5260_v3  ;;  %vm257_vm1 = vcmp.eq.s32.totalorder %v5293_v24, %v5260_v3  ;;  %v5515_v50 = vrot.slane %v141_v45, %v5270_v12  ;;  %v641_v18 = vld [vmem:[#allocation2 + $0x140] sm:$0xff]  ;;  %v651_v24 = vld [vmem:[#allocation2 + $0x190] sm:$0xff]  ;;  %v658_v25 = vld [vmem:[#allocation2 + $0x1c8] sm:$0xff] }
  0x36   :  { %4909 = vmatprep.subr.msk.mxu0 %vm244_vm14, %v5224_v27  ;;  %4965 = vmatprep.subr.msk.mxu1 %vm276_vm3, %v5224_v27  ;;  %vm240_vm14 = vcmp.eq.s32.totalorder %v5386_v39, %v5275_v16  ;;  %vm272_vm3 = vcmp.eq.s32.totalorder %v5404_v41, %v5275_v16  ;;  %v5524_v51 = vrot.slane %v152_v48, %v5270_v12  ;;  %v640_v45 = vld [vmem:[#allocation2 + $0x138] sm:$0xff]  ;;  %v645_v48 = vld [vmem:[#allocation2 + $0x160] sm:$0xff] }
  0x37   :  { %4910 = vmatpush3.msk.msra.mxu0 %vm228_vm0, %v5224_v27  ;;  %4966 = vmatpush3.msk.msra.mxu1 %vm260_vm5, %v5224_v27  ;;  %vm224_vm0 = vcmp.eq.s32.totalorder %v5395_v40, %v5275_v16  ;;  %vm256_vm5 = vcmp.eq.s32.totalorder %v5413_v42, %v5275_v16  ;;  %v5539_v54 = vrot.slane %v148_v46, %v5270_v12  ;;  %v646_v46 = vld [vmem:[#allocation2 + $0x168] sm:$0xff] }
  0x38   :  { %4911 = vmatprep.subr.msk.mxu0 %vm243_vm2, %v5224_v27  ;;  %4967 = vmatprep.subr.msk.mxu1 %vm275_vm7, %v5224_v27  ;;  %vm239_vm2 = vcmp.eq.s32.totalorder %v5386_v39, %v5281_v19  ;;  %vm271_vm7 = vcmp.eq.s32.totalorder %v5404_v41, %v5281_v19  ;;  %v150_v57 = vcombine.high %v134_v53, %v134_v53 }
  0x39   :  { %4912 = vmatpush3.msk.msra.mxu0 %vm227_vm4, %v5224_v27  ;;  %4968 = vmatpush3.msk.msra.mxu1 %vm259_vm9, %v5224_v27  ;;  %vm223_vm4 = vcmp.eq.s32.totalorder %v5395_v40, %v5281_v19  ;;  %vm255_vm9 = vcmp.eq.s32.totalorder %v5413_v42, %v5281_v19  ;;  %v5564_v59 = vrot.slane %v134_v53, %v5270_v12  ;;  %v656_v53 = vld [vmem:[#allocation2 + $0x1b8] sm:$0xff] }
  0x3a   :  { %4913 = vmatprep.subr.msk.mxu0 %vm242_vm6, %v5224_v27  ;;  %4969 = vmatprep.subr.msk.mxu1 %vm274_vm11, %v5224_v27  ;;  %vm238_vm6 = vcmp.eq.s32.totalorder %v5386_v39, %v5288_v23  ;;  %vm270_vm11 = vcmp.eq.s32.totalorder %v5404_v41, %v5288_v23  ;;  %v5575_v61 = vrot.slane %v150_v57, %v5270_v12  ;;  %v664_v57 = vld [vmem:[#allocation2 + $0x1f8] sm:$0xff] }
  0x3b   :  { %4914 = vmatpush3.msk.msra.mxu0 %vm226_vm8, %v5224_v27  ;;  %4970 = vmatpush3.msk.msra.mxu1 %vm258_vm13, %v5224_v27  ;;  %vm222_vm8 = vcmp.eq.s32.totalorder %v5395_v40, %v5288_v23  ;;  %vm254_vm13 = vcmp.eq.s32.totalorder %v5413_v42, %v5288_v23  ;;  %v149_v6 = vcombine.high %v127_v63, %v127_v63 }
  0x3c   :  { %4915 = vmatprep.subr.msk.mxu0 %vm241_vm10, %v5224_v27  ;;  %4971 = vmatprep.subr.msk.mxu1 %vm273_vm15, %v5224_v27  ;;  %vm237_vm10 = vcmp.eq.s32.totalorder %v5386_v39, %v5303_v26  ;;  %vm269_vm15 = vcmp.eq.s32.totalorder %v5404_v41, %v5303_v26  ;;  %v5667_v11 = vrot.slane %v127_v63, %v5270_v12 }
  0x3d   :  { %4916 = vmatpush3.msk.msra.mxu0 %vm225_vm12, %v5224_v27  ;;  %4972 = vmatpush3.msk.msra.mxu1 %vm257_vm1, %v5224_v27  ;;  %vm221_vm12 = vcmp.eq.s32.totalorder %v5395_v40, %v5303_v26  ;;  %vm253_vm1 = vcmp.eq.s32.totalorder %v5413_v42, %v5303_v26  ;;  %v5660_v9 = vrot.slane %v149_v6, %v5270_v12  ;;  %v636_v12 = vld [vmem:[#allocation2 + $0x118] sm:$0xff] }
  0x3e   :  { %4917 = vmatprep.subr.msk.mxu0 %vm240_vm14, %v5224_v27  ;;  %4973 = vmatprep.subr.msk.mxu1 %vm272_vm3, %v5224_v27  ;;  %vm236_vm14 = vcmp.eq.s32.totalorder %v5386_v39, %v5311_v28  ;;  %vm268_vm3 = vcmp.eq.s32.totalorder %v5404_v41, %v5311_v28 }
  0x3f   :  { %4918 = vmatpush3.msk.msra.mxu0 %vm224_vm0, %v5224_v27  ;;  %4974 = vmatpush3.msk.msra.mxu1 %vm256_vm5, %v5224_v27  ;;  %vm220_vm0 = vcmp.eq.s32.totalorder %v5395_v40, %v5311_v28  ;;  %vm252_vm5 = vcmp.eq.s32.totalorder %v5413_v42, %v5311_v28 }
  0x40   :  { %4919 = vmatprep.subr.msk.mxu0 %vm239_vm2, %v5224_v27  ;;  %4975 = vmatprep.subr.msk.mxu1 %vm271_vm7, %v5224_v27  ;;  %vm235_vm2 = vcmp.eq.s32.totalorder %v5386_v39, %v5337_v31  ;;  %vm267_vm7 = vcmp.eq.s32.totalorder %v5404_v41, %v5337_v31 }
  0x41   :  { %4920 = vmatpush3.msk.msra.mxu0 %vm223_vm4, %v5224_v27  ;;  %4976 = vmatpush3.msk.msra.mxu1 %vm255_vm9, %v5224_v27  ;;  %vm219_vm4 = vcmp.eq.s32.totalorder %v5395_v40, %v5337_v31  ;;  %vm251_vm9 = vcmp.eq.s32.totalorder %v5413_v42, %v5337_v31 }
  0x42   :  { %4921 = vmatprep.subr.msk.mxu0 %vm238_vm6, %v5224_v27  ;;  %4977 = vmatprep.subr.msk.mxu1 %vm270_vm11, %v5224_v27  ;;  %vm234_vm6 = vcmp.eq.s32.totalorder %v5386_v39, %v5353_v34  ;;  %vm266_vm11 = vcmp.eq.s32.totalorder %v5404_v41, %v5353_v34 }
  0x43   :  { %4922 = vmatpush3.msk.msra.mxu0 %vm222_vm8, %v5224_v27  ;;  %4978 = vmatpush3.msk.msra.mxu1 %vm254_vm13, %v5224_v27  ;;  %vm218_vm8 = vcmp.eq.s32.totalorder %v5395_v40, %v5353_v34  ;;  %vm250_vm13 = vcmp.eq.s32.totalorder %v5413_v42, %v5353_v34 }
  0x44   :  { %4923 = vmatprep.subr.msk.mxu0 %vm237_vm10, %v5224_v27  ;;  %4979 = vmatprep.subr.msk.mxu1 %vm269_vm15, %v5224_v27  ;;  %vm233_vm10 = vcmp.eq.s32.totalorder %v5386_v39, %v5260_v3  ;;  %vm312_vm15 = vcmp.eq.s32.totalorder %v5506_v49, %v5275_v16  ;;  %v624_v39 = vld [vmem:[#allocation2 + $0xb8] sm:$0xff] }
  0x45   :  { %4924 = vmatpush3.msk.msra.mxu0 %vm221_vm12, %v5224_v27  ;;  %4980 = vmatpush3.msk.msra.mxu1 %vm253_vm1, %v5224_v27  ;;  %vm217_vm12 = vcmp.eq.s32.totalorder %v5395_v40, %v5260_v3  ;;  %vm296_vm1 = vcmp.eq.s32.totalorder %v5515_v50, %v5275_v16  ;;  %v630_v40 = vld [vmem:[#allocation2 + $0xe8] sm:$0xff] }
  0x46   :  { %4925 = vmatprep.subr.msk.mxu0 %vm236_vm14, %v5224_v27  ;;  %4981 = vmatprep.subr.msk.mxu1 %vm268_vm3, %v5224_v27  ;;  %vm265_vm14 = vcmp.eq.s32.totalorder %v5404_v41, %v5260_v3  ;;  %vm344_vm3 = vcmp.eq.s32.totalorder %v5524_v51, %v5275_v16  ;;  %v623_v41 = vld [vmem:[#allocation2 + $0xb0] sm:$0xff] }
  0x47   :  { %4926 = vmatpush3.msk.msra.mxu0 %vm220_vm0, %v5224_v27  ;;  %4982 = vmatpush3.msk.msra.mxu1 %vm252_vm5, %v5224_v27  ;;  %vm249_vm0 = vcmp.eq.s32.totalorder %v5413_v42, %v5260_v3  ;;  %vm328_vm5 = vcmp.eq.s32.totalorder %v5539_v54, %v5275_v16  ;;  %v629_v42 = vld [vmem:[#allocation2 + $0xe0] sm:$0xff] }
  0x48   :  { %4927 = vmatprep.subr.msk.mxu0 %vm235_vm2, %v5224_v27  ;;  %4983 = vmatprep.subr.msk.mxu1 %vm267_vm7, %v5224_v27  ;;  %vm311_vm2 = vcmp.eq.s32.totalorder %v5506_v49, %v5281_v19  ;;  %vm343_vm7 = vcmp.eq.s32.totalorder %v5524_v51, %v5281_v19 }
  0x49   :  { %4928 = vmatpush3.msk.msra.mxu0 %vm219_vm4, %v5224_v27  ;;  %4984 = vmatpush3.msk.msra.mxu1 %vm251_vm9, %v5224_v27  ;;  %vm295_vm4 = vcmp.eq.s32.totalorder %v5515_v50, %v5281_v19  ;;  %vm327_vm9 = vcmp.eq.s32.totalorder %v5539_v54, %v5281_v19 }
  0x4a   :  { %4929 = vmatprep.subr.msk.mxu0 %vm234_vm6, %v5224_v27  ;;  %4985 = vmatprep.subr.msk.mxu1 %vm266_vm11, %v5224_v27  ;;  %vm310_vm6 = vcmp.eq.s32.totalorder %v5506_v49, %v5288_v23  ;;  %vm318_vm11 = vcmp.eq.s32.totalorder %v5564_v59, %v5288_v23 }
  0x4b   :  { %4930 = vmatpush3.msk.msra.mxu0 %vm218_vm8, %v5224_v27  ;;  %4986 = vmatpush3.msk.msra.mxu1 %vm250_vm13, %v5224_v27  ;;  %vm294_vm8 = vcmp.eq.s32.totalorder %v5515_v50, %v5288_v23  ;;  %vm317_vm13 = vcmp.eq.s32.totalorder %v5564_v59, %v5303_v26 }
  0x4c   :  { %4931 = vmatprep.subr.msk.mxu0 %vm233_vm10, %v5224_v27  ;;  %4987 = vmatprep.subr.msk.mxu1 %vm265_vm14, %v5224_v27  ;;  %vm309_vm10 = vcmp.eq.s32.totalorder %v5506_v49, %v5303_v26  ;;  %vm293_vm14 = vcmp.eq.s32.totalorder %v5515_v50, %v5303_v26 }
  0x4d   :  { %4932 = vmatpush3.msk.msra.mxu0 %vm217_vm12, %v5224_v27  ;;  %4988 = vmatpush3.msk.msra.mxu1 %vm249_vm0, %v5224_v27  ;;  %vm342_vm12 = vcmp.eq.s32.totalorder %v5524_v51, %v5288_v23  ;;  %vm316_vm0 = vcmp.eq.s32.totalorder %v5564_v59, %v5311_v28 }
  0x4e   :  { %730 = vmatmul.mubr.f32.vlgmr.msra.gmra.mxu0 %v601_v52  ;;  %5013 = vmatprep.subr.msk.mxu0 %vm312_vm15, %v5224_v27  ;;  %vm332_vm15 = vcmp.eq.s32.totalorder %v5575_v61, %v5311_v28  ;;  %v653_v52 = vld [vmem:[#allocation2 + $0x1a0] sm:$0xff] }
  0x4f   :  { %5014 = vmatpush3.msk.msra.mxu0 %vm296_vm1, %v5224_v27  ;;  %835 = vmatmul.mubr.f32.vlgmr.msra.gmra.mxu1 %v603_v55  ;;  %vm326_vm1 = vcmp.eq.s32.totalorder %v5539_v54, %v5288_v23  ;;  %v655_v55 = vld [vmem:[#allocation2 + $0x1b0] sm:$0xff] }
  0x50   :  { %5015 = vmatprep.subr.msk.mxu0 %vm311_vm2, %v5224_v27  ;;  %5069 = vmatprep.subr.msk.mxu1 %vm344_vm3, %v5224_v27  ;;  %vm308_vm2 = vcmp.eq.s32.totalorder %v5506_v49, %v5311_v28  ;;  %vm331_vm3 = vcmp.eq.s32.totalorder %v5575_v61, %v5337_v31 }
  0x51   :  { %734 = vmatprep.mubr.f32.mxu0 %v610_v56  ;;  %5016 = vmatpush3.msk.msra.mxu0 %vm295_vm4, %v5224_v27  ;;  %vm341_vm4 = vcmp.eq.s32.totalorder %v5524_v51, %v5303_v26  ;;  %v661_v56 = vld [vmem:[#allocation2 + $0x1e0] sm:$0xff] }
  0x52   :  { %5070 = vmatpush3.msk.msra.mxu1 %vm328_vm5, %v5224_v27  ;;  %735 = vmatmul.mubr.f32.gmra.mxu0 %v609_v58  ;;  %vm315_vm5 = vcmp.eq.s32.totalorder %v5564_v59, %v5337_v31  ;;  %v663_v58 = vld [vmem:[#allocation2 + $0x1f0] sm:$0xff] }
  0x53   :  { %5017 = vmatprep.subr.msk.mxu0 %vm310_vm6, %v5224_v27  ;;  %5071 = vmatprep.subr.msk.mxu1 %vm343_vm7, %v5224_v27  ;;  %vm330_vm6 = vcmp.eq.s32.totalorder %v5575_v61, %v5353_v34  ;;  %vm292_vm7 = vcmp.eq.s32.totalorder %v5515_v50, %v5311_v28 }
  0x54   :  { %839 = vmatprep.mubr.f32.mxu1 %v612_v60  ;;  %5018 = vmatpush3.msk.msra.mxu0 %vm294_vm8, %v5224_v27  ;;  %vm314_vm8 = vcmp.eq.s32.totalorder %v5564_v59, %v5353_v34  ;;  %v1085_v60 = vld [vmem:[#allocation5] sm:$0xff] }
  0x55   :  { %5072 = vmatpush3.msk.msra.mxu1 %vm327_vm9, %v5224_v27  ;;  %5019 = vmatprep.subr.msk.mxu0 %vm309_vm10, %v5224_v27  ;;  %vm325_vm10 = vcmp.eq.s32.totalorder %v5539_v54, %v5303_v26  ;;  %vm291_vm9 = vcmp.eq.s32.totalorder %v5515_v50, %v5337_v31 }
  0x56   :  { %840 = vmatmul.mubr.f32.gmra.mxu1 %v611_v62  ;;  %5073 = vmatprep.subr.msk.mxu1 %vm342_vm12, %v5224_v27  ;;  %vm307_vm12 = vcmp.eq.s32.totalorder %v5506_v49, %v5337_v31 }
  0x57   :  { %739 = vmatprep.mubr.f32.mxu0 %v618_v0  ;;  %5020 = vmatpush3.msk.msra.mxu0 %vm293_vm14, %v5224_v27  ;;  %vm313_vm14 = vcmp.eq.s32.totalorder %v5564_v59, %v5260_v3 }
  0x58   :  { %5074 = vmatpush3.msk.msra.mxu1 %vm326_vm1, %v5224_v27  ;;  %740 = vmatmul.mubr.f32.gmra.mxu0 %v617_v1  ;;  %vm340_vm1 = vcmp.eq.s32.totalorder %v5524_v51, %v5311_v28 }
  0x59   :  { %5021 = vmatprep.subr.msk.mxu0 %vm308_vm2, %v5224_v27  ;;  %5075 = vmatprep.subr.msk.mxu1 %vm341_vm4, %v5224_v27  ;;  %vm324_vm2 = vcmp.eq.s32.totalorder %v5539_v54, %v5311_v28  ;;  %vm306_vm4 = vcmp.eq.s32.totalorder %v5506_v49, %v5353_v34 }
  0x5a   :  { %844 = vmatprep.mubr.f32.mxu1 %v620_v2  ;;  %5022 = vmatpush3.msk.msra.mxu0 %vm292_vm7, %v5224_v27  ;;  %vm339_vm7 = vcmp.eq.s32.totalorder %v5524_v51, %v5337_v31 }
  0x5b   :  { %5076 = vmatpush3.msk.msra.mxu1 %vm325_vm10, %v5224_v27  ;;  %5023 = vmatprep.subr.msk.mxu0 %vm307_vm12, %v5224_v27  ;;  %vm290_vm10 = vcmp.eq.s32.totalorder %v5515_v50, %v5353_v34  ;;  %vm323_vm12 = vcmp.eq.s32.totalorder %v5539_v54, %v5337_v31 }
  0x5c   :  { %845 = vmatmul.mubr.f32.gmra.mxu1 %v619_v4  ;;  %5077 = vmatprep.subr.msk.mxu1 %vm340_vm1, %v5224_v27  ;;  %vm305_vm1 = vcmp.eq.s32.totalorder %v5506_v49, %v5260_v3  ;;  %v648_v49 = vld [vmem:[#allocation2 + $0x178] sm:$0xff] }
  0x5d   :  { %744 = vmatprep.mubr.f32.mxu0 %v626_v5  ;;  %5024 = vmatpush3.msk.msra.mxu0 %vm291_vm9, %v5224_v27  ;;  %vm338_vm9 = vcmp.eq.s32.totalorder %v5524_v51, %v5353_v34 }
  0x5e   :  { %5078 = vmatpush3.msk.msra.mxu1 %vm324_vm2, %v5224_v27  ;;  %745 = vmatmul.mubr.f32.gmra.mxu0 %v625_v7  ;;  %vm289_vm2 = vcmp.eq.s32.totalorder %v5515_v50, %v5260_v3  ;;  %v654_v50 = vld [vmem:[#allocation2 + $0x1a8] sm:$0xff] }
  0x5f   :  { %5025 = vmatprep.subr.msk.mxu0 %vm306_vm4, %v5224_v27  ;;  %5079 = vmatprep.subr.msk.mxu1 %vm339_vm7, %v5224_v27  ;;  %vm322_vm4 = vcmp.eq.s32.totalorder %v5539_v54, %v5353_v34  ;;  %vm304_vm7 = vcmp.eq.s32.totalorder %v5660_v9, %v5275_v16 }
  0x60   :  { %849 = vmatprep.mubr.f32.mxu1 %v628_v8  ;;  %5026 = vmatpush3.msk.msra.mxu0 %vm290_vm10, %v5224_v27  ;;  %vm337_vm10 = vcmp.eq.s32.totalorder %v5524_v51, %v5260_v3  ;;  %v647_v51 = vld [vmem:[#allocation2 + $0x170] sm:$0xff] }
  0x61   :  { %5080 = vmatpush3.msk.msra.mxu1 %vm323_vm12, %v5224_v27  ;;  %5027 = vmatprep.subr.msk.mxu0 %vm305_vm1, %v5224_v27  ;;  %vm288_vm12 = vcmp.eq.s32.totalorder %v5667_v11, %v5275_v16  ;;  %vm321_vm1 = vcmp.eq.s32.totalorder %v5539_v54, %v5260_v3  ;;  %v662_v54 = vld [vmem:[#allocation2 + $0x1e8] sm:$0xff] }
  0x62   :  { %850 = vmatmul.mubr.f32.gmra.mxu1 %v627_v10  ;;  %5081 = vmatprep.subr.msk.mxu1 %vm338_vm9, %v5224_v27  ;;  %vm303_vm9 = vcmp.eq.s32.totalorder %v5660_v9, %v5281_v19 }
  0x63   :  { %749 = vmatprep.mubr.f32.mxu0 %v634_v13  ;;  %5028 = vmatpush3.msk.msra.mxu0 %vm289_vm2, %v5224_v27  ;;  %vm336_vm2 = vcmp.eq.s32.totalorder %v5575_v61, %v5275_v16 }
  0x64   :  { %5082 = vmatpush3.msk.msra.mxu1 %vm322_vm4, %v5224_v27  ;;  %750 = vmatmul.mubr.f32.gmra.mxu0 %v633_v14  ;;  %vm287_vm4 = vcmp.eq.s32.totalorder %v5667_v11, %v5281_v19 }
  0x65   :  { %5029 = vmatprep.subr.msk.mxu0 %vm304_vm7, %v5224_v27  ;;  %5083 = vmatprep.subr.msk.mxu1 %vm337_vm10, %v5224_v27  ;;  %vm320_vm7 = vcmp.eq.s32.totalorder %v5564_v59, %v5275_v16  ;;  %vm302_vm10 = vcmp.eq.s32.totalorder %v5660_v9, %v5288_v23  ;;  %v643_v16 = vld [vmem:[#allocation2 + $0x150] sm:$0xff] }
  0x66   :  { %854 = vmatprep.mubr.f32.mxu1 %v636_v12  ;;  %5030 = vmatpush3.msk.msra.mxu0 %vm288_vm12, %v5224_v27  ;;  %vm335_vm12 = vcmp.eq.s32.totalorder %v5575_v61, %v5281_v19 }
  0x67   :  { %5084 = vmatpush3.msk.msra.mxu1 %vm321_vm1, %v5224_v27  ;;  %5031 = vmatprep.subr.msk.mxu0 %vm303_vm9, %v5224_v27  ;;  %vm286_vm1 = vcmp.eq.s32.totalorder %v5667_v11, %v5288_v23  ;;  %vm319_vm9 = vcmp.eq.s32.totalorder %v5564_v59, %v5281_v19  ;;  %v649_v19 = vld [vmem:[#allocation2 + $0x180] sm:$0xff]  ;;  %v1086_v59 = vld [vmem:[#allocation5 + $0x8] sm:$0xff] }
  0x68   :  { %855 = vmatmul.mubr.f32.gmra.mxu1 %v635_v15  ;;  %5085 = vmatprep.subr.msk.mxu1 %vm336_vm2, %v5224_v27  ;;  %vm301_vm2 = vcmp.eq.s32.totalorder %v5660_v9, %v5303_v26 }
  0x69   :  { %754 = vmatprep.mubr.f32.mxu0 %v642_v17  ;;  %5032 = vmatpush3.msk.msra.mxu0 %vm287_vm4, %v5224_v27  ;;  %vm334_vm4 = vcmp.eq.s32.totalorder %v5575_v61, %v5288_v23  ;;  %v657_v23 = vld [vmem:[#allocation2 + $0x1c0] sm:$0xff] }
  0x6a   :  { %5086 = vmatpush3.msk.msra.mxu1 %vm320_vm7, %v5224_v27  ;;  %755 = vmatmul.mubr.f32.gmra.mxu0 %v641_v18  ;;  %vm285_vm7 = vcmp.eq.s32.totalorder %v5667_v11, %v5303_v26 }
  0x6b   :  { %5033 = vmatprep.subr.msk.mxu0 %vm302_vm10, %v5224_v27  ;;  %5087 = vmatprep.subr.msk.mxu1 %vm335_vm12, %v5224_v27  ;;  %vm300_vm10 = vcmp.eq.s32.totalorder %v5660_v9, %v5311_v28  ;;  %vm333_vm12 = vcmp.eq.s32.totalorder %v5575_v61, %v5303_v26  ;;  %v659_v26 = vld [vmem:[#allocation2 + $0x1d0] sm:$0xff] }
  0x6c   :  { %859 = vmatprep.mubr.f32.mxu1 %v644_v20  ;;  %5034 = vmatpush3.msk.msra.mxu0 %vm286_vm1, %v5224_v27  ;;  %vm284_vm1 = vcmp.eq.s32.totalorder %v5667_v11, %v5311_v28  ;;  %v606_v28 = vld [vmem:[#allocation2 + $0x28] sm:$0xff] }
  0x6d   :  { %5088 = vmatpush3.msk.msra.mxu1 %vm319_vm9, %v5224_v27  ;;  %5035 = vmatprep.subr.msk.mxu0 %vm301_vm2, %v5224_v27  ;;  %vm299_vm9 = vcmp.eq.s32.totalorder %v5660_v9, %v5337_v31  ;;  %vm283_vm2 = vcmp.eq.s32.totalorder %v5667_v11, %v5337_v31  ;;  %v607_v31 = vld [vmem:[#allocation2 + $0x30] sm:$0xff] }
  0x6e   :  { %860 = vmatmul.mubr.f32.gmra.mxu1 %v643_v16  ;;  %5089 = vmatprep.subr.msk.mxu1 %vm334_vm4, %v5224_v27  ;;  %vm282_vm4 = vcmp.eq.s32.totalorder %v5667_v11, %v5353_v34 }
  0x6f   :  { %759 = vmatprep.mubr.f32.mxu0 %v650_v21  ;;  %5036 = vmatpush3.msk.msra.mxu0 %vm285_vm7, %v5224_v27 }
  0x70   :  { %5090 = vmatpush3.msk.msra.mxu1 %vm318_vm11, %v5224_v27  ;;  %760 = vmatmul.mubr.f32.gmra.mxu0 %v649_v19  ;;  %vm298_vm11 = vcmp.eq.s32.totalorder %v5660_v9, %v5353_v34  ;;  %v615_v34 = vld [vmem:[#allocation2 + $0x70] sm:$0xff] }
  0x71   :  { %5037 = vmatprep.subr.msk.mxu0 %vm300_vm10, %v5224_v27  ;;  %5091 = vmatprep.subr.msk.mxu1 %vm333_vm12, %v5224_v27 }
  0x72   :  { %864 = vmatprep.mubr.f32.mxu1 %v652_v22  ;;  %5038 = vmatpush3.msk.msra.mxu0 %vm284_vm1, %v5224_v27 }
  0x73   :  { %5092 = vmatpush3.msk.msra.mxu1 %vm317_vm13, %v5224_v27  ;;  %5039 = vmatprep.subr.msk.mxu0 %vm299_vm9, %v5224_v27  ;;  %vm297_vm13 = vcmp.eq.s32.totalorder %v5660_v9, %v5260_v3 }
  0x74   :  { %865 = vmatmul.mubr.f32.gmra.mxu1 %v651_v24  ;;  %5093 = vmatprep.subr.msk.mxu1 %vm332_vm15, %v5224_v27  ;;  %vm281_vm15 = vcmp.eq.s32.totalorder %v5667_v11, %v5260_v3 }
  0x75   :  { %764 = vmatprep.mubr.f32.mxu0 %v658_v25  ;;  %5040 = vmatpush3.msk.msra.mxu0 %vm283_vm2, %v5224_v27 }
  0x76   :  { %5094 = vmatpush3.msk.msra.mxu1 %vm316_vm0, %v5224_v27  ;;  %765 = vmatmul.mubr.f32.gmra.mxu0 %v657_v23  ;;  %vm7131_vm0 = vcmp.eq.s32.totalorder %v5575_v61, %v5260_v3  ;;  %v631_v3 = vld [vmem:[#allocation2 + $0xf0] sm:$0xff]  ;;  %v5225_v61 = vmov 0.0  }
  0x77   :  { %5041 = vmatprep.subr.msk.mxu0 %vm298_vm11, %v5224_v27  ;;  %5095 = vmatprep.subr.msk.mxu1 %vm331_vm3, %v5224_v27  ;;  %vm1087_vm3 = vcmask 64512  }
  0x78   :  { %869 = vmatprep.mubr.f32.mxu1 %v660_v29  ;;  %5042 = vmatpush3.msk.msra.mxu0 %vm282_vm4, %v5224_v27 }
  0x79   :  { %5096 = vmatpush3.msk.msra.mxu1 %vm315_vm5, %v5224_v27  ;;  %5043 = vmatprep.subr.msk.mxu0 %vm297_vm13, %v5224_v27  ;;  %vm1481_vm5 = vcmask 523264  }
  0x7a   :  { %870 = vmatmul.mubr.f32.gmra.mxu1 %v659_v26  ;;  %5097 = vmatprep.subr.msk.mxu1 %vm330_vm6, %v5224_v27 }
  0x7b   :  { %5044 = vmatpush3.msk.msra.mxu0 %vm281_vm15, %v5224_v27  ;;  %939 = vmatprep.mubr.f32.mxu0 %v606_v28 }
  0x7c   :  { %5098 = vmatpush3.msk.msra.mxu1 %vm314_vm8, %v5224_v27  ;;  %940 = vmatmul.mubr.f32.vlgmr.msra.gmra.mxu0 %v605_v30 }
  0x7d   :  { %5099 = vmatprep.subr.msk.mxu1 %vm7131_vm0, %v5224_v27  ;;  %1044 = vmatprep.mubr.f32.mxu1 %v608_v32 }
  0x7e   :  { %5100 = vmatpush3.msk.msra.mxu1 %vm313_vm14, %v5224_v27  ;;  %944 = vmatprep.mubr.f32.mxu0 %v614_v33  ;;  %v637_v27 = vld [vmem:[#allocation2 + $0x120] sm:$0xff] }
  0x7f   :  { %1045 = vmatmul.mubr.f32.vlgmr.msra.gmra.mxu1 %v607_v31  ;;  %1142 = vmatprep.subr.mxu0 %v1086_v59 }
  0x80   :  { %945 = vmatmul.mubr.f32.gmra.mxu0 %v613_v35  ;;  %1049 = vmatprep.mubr.f32.mxu1 %v616_v36 }
  0x81   :  { %949 = vmatprep.mubr.f32.mxu0 %v622_v37  ;;  %1143 = vmatpush1.msra.mxu0 %v1085_v60 }
  0x83   :  { %1050 = vmatmul.mubr.f32.gmra.mxu1 %v615_v34 }
  0x84   :  { %950 = vmatmul.mubr.f32.gmra.mxu0 %v621_v38  ;;  %1054 = vmatprep.mubr.f32.mxu1 %v624_v39 }
  0x85   :  { %954 = vmatprep.mubr.f32.mxu0 %v630_v40 }
  0x87   :  { %1055 = vmatmul.mubr.f32.gmra.mxu1 %v623_v41 }
  0x88   :  { %955 = vmatmul.mubr.f32.gmra.mxu0 %v629_v42  ;;  %1059 = vmatprep.mubr.f32.mxu1 %v632_v43 }
  0x89   :  { %959 = vmatprep.mubr.f32.mxu0 %v638_v44 }
  0x8b   :  { %1060 = vmatmul.mubr.f32.gmra.mxu1 %v631_v3 }
  0x8c   :  { %960 = vmatmul.mubr.f32.gmra.mxu0 %v637_v27  ;;  %1064 = vmatprep.mubr.f32.mxu1 %v640_v45 }
  0x8d   :  { %964 = vmatprep.mubr.f32.mxu0 %v646_v46 }
  0x8f   :  { %1065 = vmatmul.mubr.f32.gmra.mxu1 %v639_v47 }
  0x90   :  { %965 = vmatmul.mubr.f32.gmra.mxu0 %v645_v48  ;;  %1069 = vmatprep.mubr.f32.mxu1 %v648_v49 }
  0x91   :  { %969 = vmatprep.mubr.f32.mxu0 %v654_v50 }
  0x93   :  { %1070 = vmatmul.mubr.f32.gmra.mxu1 %v647_v51 }
  0x94   :  { %970 = vmatmul.mubr.f32.gmra.mxu0 %v653_v52  ;;  %1074 = vmatprep.mubr.f32.mxu1 %v656_v53 }
  0x95   :  { %974 = vmatprep.mubr.f32.mxu0 %v662_v54 }
  0x97   :  { %1075 = vmatmul.mubr.f32.gmra.mxu1 %v655_v55 }
  0x98   :  { %975 = vmatmul.mubr.f32.gmra.mxu0 %v661_v56  ;;  %1079 = vmatprep.mubr.f32.mxu1 %v664_v57 }
  0x99   :  { %1176 = vmatprep.mubr.f32.mxu0 %v5225_v61 }
  0x9b   :  { %1080 = vmatmul.mubr.f32.gmra.mxu1 %v663_v58 }
  0x9c   :  { %3058 = vmatprep.mubr.f32.mxu1 %v5225_v61 }
 0x10e   :  { %v4933_v62 = vpop.f32.mrf.mxu0 }
 0x10f   :  { %v4989_v0 = vpop.f32.mrf.mxu1 }
 0x110   :  { %v4934_v63 = vpop.f32.mrf.mxu0 }
 0x111   :  { %v4990_v2 = vpop.f32.mrf.mxu1  ;;  %v4935_v35 = vadd.f32 %v4934_v63, %v4933_v62 }
 0x112   :  { %v4936_v1 = vpop.f32.mrf.mxu0  ;;  %v4991_v32 = vadd.f32 %v4990_v2, %v4989_v0 }
 0x114   :  { %v4937_v4 = vpop.f32.mrf.mxu0  ;;  %v837_v37 = vadd.f32 %v4991_v32, %v4935_v35 }
 0x115   :  { %v4938_v41 = vadd.f32 %v4937_v4, %v4936_v1 }
 0x116   :  { %v4992_v5 = vpop.f32.mrf.mxu1 }
 0x118   :  { %v4939_v6 = vpop.f32.mrf.mxu0  ;;  %v4993_v7 = vpop.f32.mrf.mxu1 }
 0x119   :  { %v4994_v34 = vadd.f32 %v4993_v7, %v4992_v5 }
 0x11a   :  { %v4940_v8 = vpop.f32.mrf.mxu0 }
 0x11b   :  { %v842_v27 = vadd.f32 %v4994_v34, %v4938_v41  ;;  %v4941_v50 = vadd.f32 %v4940_v8, %v4939_v6 }
 0x11c   :  { %v4995_v9 = vpop.f32.mrf.mxu1 }
 0x11e   :  { %v4942_v10 = vpop.f32.mrf.mxu0  ;;  %v4996_v11 = vpop.f32.mrf.mxu1 }
 0x11f   :  { %v4997_v45 = vadd.f32 %v4996_v11, %v4995_v9 }
 0x120   :  { %v4943_v13 = vpop.f32.mrf.mxu0 }
 0x121   :  { %v847_v55 = vadd.f32 %v4997_v45, %v4941_v50  ;;  %v4944_v62 = vadd.f32 %v4943_v13, %v4942_v10 }
 0x122   :  { %v4998_v14 = vpop.f32.mrf.mxu1 }
 0x124   :  { %v5793_v12 = vpop.f32.mrf.mxu0  ;;  %v4999_v15 = vpop.f32.mrf.mxu1 }
 0x125   :  { %v5000_v56 = vadd.f32 %v4999_v15, %v4998_v14 }
 0x126   :  { %v4946_v17 = vpop.f32.mrf.mxu0 }
 0x127   :  { %v852_v4 = vadd.f32 %v5000_v56, %v4944_v62  ;;  %v4947_v11 = vadd.f32 %v4946_v17, %v5793_v12 }
 0x128   :  { %v5001_v18 = vpop.f32.mrf.mxu1 }
 0x12a   :  { %v5795_v20 = vpop.f32.mrf.mxu0  ;;  %v5002_v16 = vpop.f32.mrf.mxu1 }
 0x12b   :  { %v5003_v5 = vadd.f32 %v5002_v16, %v5001_v18 }
 0x12c   :  { %v5797_v21 = vpop.f32.mrf.mxu0 }
 0x12d   :  { %v857_v13 = vadd.f32 %v5003_v5, %v4947_v11  ;;  %v1225_v11 = vld [vmem:[%s7129_s3] sm:$0xff] }
 0x12e   :  { %v5799_v19 = vpop.f32.mrf.mxu1 }
 0x130   :  { %v5801_v22 = vpop.f32.mrf.mxu0  ;;  %v5005_v24 = vpop.f32.mrf.mxu1 }
 0x132   :  { %v5803_v25 = vpop.f32.mrf.mxu0 }
 0x134   :  { %v5805_v23 = vpop.f32.mrf.mxu1 }
 0x136   :  { %v5807_v29 = vpop.f32.mrf.mxu0  ;;  %v5809_v26 = vpop.f32.mrf.mxu1 }
 0x138   :  { %v5811_v28 = vpop.f32.mrf.mxu0 }
 0x13a   :  { %v5813_v30 = vpop.f32.mrf.mxu1 }
 0x13c   :  { %v5815_v33 = vpop.f32.mrf.mxu1  ;;  %v5045_v31 = vpop.f32.mrf.mxu0 }
 0x13d   :  { %v5012_v45 = vadd.f32 %v5815_v33, %v5813_v30 }
 0x13e   :  { %v5046_v36 = vpop.f32.mrf.mxu0 }
 0x13f   :  { %v5047_v38 = vadd.f32 %v5046_v36, %v5045_v31  ;;  %v5101_v39 = vpop.f32.mrf.mxu1  ;;  %v5006_v31 = vadd.f32 %v5005_v24, %v5799_v19 }
 0x140   :  { %v5048_v40 = vpop.f32.mrf.mxu0 }
 0x141   :  { %v942_v42 = vadd.f32 %v5047_v38, %v837_v37  ;;  %v5102_v43 = vpop.f32.mrf.mxu1  ;;  %v4950_v37 = vadd.f32 %v5797_v21, %v5795_v20 }
 0x142   :  { %v5103_v44 = vadd.f32 %v5102_v43, %v5101_v39  ;;  %v5049_v3 = vpop.f32.mrf.mxu0  ;;  %v4953_v43 = vadd.f32 %v5803_v25, %v5801_v22 }
 0x143   :  { %v5050_v46 = vadd.f32 %v5049_v3, %v5048_v40  ;;  %v5104_v47 = vpop.f32.mrf.mxu1  ;;  %v862_v39 = vadd.f32 %v5006_v31, %v4950_v37  ;;  %v5009_v40 = vadd.f32 %v5809_v26, %v5805_v23  ;;  %v1228_v31 = vld [vmem:[%s7129_s3 + $0x18] sm:$0xff]  ;;  %v1355_v37 = vld [vmem:[%s7129_s3 + $0x410] sm:$0xff] }
 0x144   :  { %v1047_v48 = vadd.f32 %v5103_v44, %v942_v42  ;;  %v5051_v49 = vpop.f32.mrf.mxu0 }
 0x145   :  { %v947_v51 = vadd.f32 %v5050_v46, %v842_v27  ;;  %v5105_v52 = vpop.f32.mrf.mxu1  ;;  %v867_v27 = vadd.f32 %v5009_v40, %v4953_v43  ;;  %v1358_v40 = vld [vmem:[%s7129_s3 + $0x428] sm:$0xff]  ;;  %v1236_v43 = vld [vmem:[%s7129_s3 + $0x58] sm:$0xff] }
 0x146   :  { %v5106_v53 = vadd.f32 %v5105_v52, %v5104_v47  ;;  %4637 = vmatmul.mubr.msk.f32.vlgmr.msra.gmra.mxu0 %vm1087_vm3, %v1047_v48  ;;  %v5052_v54 = vpop.f32.mrf.mxu0  ;;  %v4956_v48 = vadd.f32 %v5811_v28, %v5807_v29 }
 0x147   :  { %v5053_v57 = vadd.f32 %v5052_v54, %v5051_v49  ;;  %v5107_v58 = vpop.f32.mrf.mxu1  ;;  %1182 = vmatprep.mubr.f32.mxu0 %v5225_v61 }
 0x148   :  { %v1052_v59 = vadd.f32 %v5106_v53, %v947_v51  ;;  %v5054_v60 = vpop.f32.mrf.mxu0  ;;  %v872_v51 = vadd.f32 %v5012_v45, %v4956_v48  ;;  %v1239_v45 = vld [vmem:[%s7129_s3 + $0x70] sm:$0xff]  ;;  %v1366_v48 = vld [vmem:[%s7129_s3 + $0x468] sm:$0xff] }
 0x149   :  { %v952_v63 = vadd.f32 %v5053_v57, %v847_v55  ;;  %v5108_v0 = vpop.f32.mrf.mxu1 }
 0x14a   :  { %v5109_v1 = vadd.f32 %v5108_v0, %v5107_v58  ;;  %4638 = vmatmul.mubr.msk.f32.gmra.mxu0 %vm1087_vm3, %v1052_v59  ;;  %v5055_v2 = vpop.f32.mrf.mxu0 }
 0x14b   :  { %v5056_v6 = vadd.f32 %v5055_v2, %v5054_v60  ;;  %v5110_v7 = vpop.f32.mrf.mxu1  ;;  %1188 = vmatprep.mubr.f32.mxu0 %v5225_v61 }
 0x14c   :  { %v1057_v8 = vadd.f32 %v5109_v1, %v952_v63  ;;  %v5057_v9 = vpop.f32.mrf.mxu0 }
 0x14d   :  { %v957_v14 = vadd.f32 %v5056_v6, %v852_v4  ;;  %v5111_v15 = vpop.f32.mrf.mxu1 }
 0x14e   :  { %v5112_v32 = vadd.f32 %v5111_v15, %v5110_v7  ;;  %4639 = vmatmul.mubr.msk.f32.gmra.mxu0 %vm1087_vm3, %v1057_v8  ;;  %v5058_v10 = vpop.f32.mrf.mxu0  ;;  %v1226_v15 = vld [vmem:[%s7129_s3 + $0x8] sm:$0xff] }
 0x14f   :  { %v5059_v35 = vadd.f32 %v5058_v10, %v5057_v9  ;;  %v5113_v36 = vpop.f32.mrf.mxu1  ;;  %1194 = vmatprep.mubr.f32.mxu0 %v5225_v61  ;;  %v1349_v9 = vld [vmem:[%s7129_s3 + $0x3e0] sm:$0xff]  ;;  %v1227_v10 = vld [vmem:[%s7129_s3 + $0x10] sm:$0xff] }
 0x150   :  { %v1062_v18 = vadd.f32 %v5112_v32, %v957_v14  ;;  %v5060_v16 = vpop.f32.mrf.mxu0  ;;  %v1350_v14 = vld [vmem:[%s7129_s3 + $0x3e8] sm:$0xff]  ;;  %v1351_v32 = vld [vmem:[%s7129_s3 + $0x3f0] sm:$0xff] }
 0x151   :  { %v962_v34 = vadd.f32 %v5059_v35, %v857_v13  ;;  %v5114_v12 = vpop.f32.mrf.mxu1  ;;  %v1352_v13 = vld [vmem:[%s7129_s3 + $0x3f8] sm:$0xff]  ;;  %v1353_v35 = vld [vmem:[%s7129_s3 + $0x400] sm:$0xff] }
 0x152   :  { %v5115_v17 = vadd.f32 %v5114_v12, %v5113_v36  ;;  %4640 = vmatmul.mubr.msk.f32.gmra.mxu0 %vm1087_vm3, %v1062_v18  ;;  %v5061_v38 = vpop.f32.mrf.mxu0  ;;  %v1229_v36 = vld [vmem:[%s7129_s3 + $0x20] sm:$0xff]  ;;  %v1354_v18 = vld [vmem:[%s7129_s3 + $0x408] sm:$0xff]  ;;  %v1356_v12 = vld [vmem:[%s7129_s3 + $0x418] sm:$0xff] }
 0x153   :  { %v5062_v19 = vadd.f32 %v5061_v38, %v5060_v16  ;;  %v5116_v24 = vpop.f32.mrf.mxu1  ;;  %1200 = vmatprep.mubr.f32.mxu0 %v5225_v61  ;;  %v1230_v16 = vld [vmem:[%s7129_s3 + $0x28] sm:$0xff]  ;;  %v1357_v38 = vld [vmem:[%s7129_s3 + $0x420] sm:$0xff] }
 0x154   :  { %v1067_v41 = vadd.f32 %v5115_v17, %v962_v34  ;;  %v5063_v42 = vpop.f32.mrf.mxu0  ;;  %v1231_v34 = vld [vmem:[%s7129_s3 + $0x30] sm:$0xff]  ;;  %v1232_v17 = vld [vmem:[%s7129_s3 + $0x38] sm:$0xff] }
 0x155   :  { %v967_v20 = vadd.f32 %v5062_v19, %v862_v39  ;;  %v5117_v21 = vpop.f32.mrf.mxu1  ;;  %v1233_v39 = vld [vmem:[%s7129_s3 + $0x40] sm:$0xff]  ;;  %v1234_v19 = vld [vmem:[%s7129_s3 + $0x48] sm:$0xff] }
 0x156   :  { %v5118_v44 = vadd.f32 %v5117_v21, %v5116_v24  ;;  %4641 = vmatmul.mubr.msk.f32.gmra.mxu0 %vm1087_vm3, %v1067_v41  ;;  %v5064_v3 = vpop.f32.mrf.mxu0  ;;  %v1359_v24 = vld [vmem:[%s7129_s3 + $0x430] sm:$0xff]  ;;  %v1237_v21 = vld [vmem:[%s7129_s3 + $0x60] sm:$0xff] }
 0x157   :  { %v5065_v23 = vadd.f32 %v5064_v3, %v5063_v42  ;;  %v5119_v26 = vpop.f32.mrf.mxu1  ;;  %1206 = vmatprep.mubr.f32.mxu0 %v5225_v61  ;;  %v1235_v41 = vld [vmem:[%s7129_s3 + $0x50] sm:$0xff]  ;;  %v1360_v42 = vld [vmem:[%s7129_s3 + $0x438] sm:$0xff]  ;;  %v1238_v3 = vld [vmem:[%s7129_s3 + $0x68] sm:$0xff] }
 0x158   :  { %v1072_v46 = vadd.f32 %v5118_v44, %v967_v20  ;;  %v5066_v47 = vpop.f32.mrf.mxu0  ;;  %v1361_v20 = vld [vmem:[%s7129_s3 + $0x440] sm:$0xff]  ;;  %v1362_v44 = vld [vmem:[%s7129_s3 + $0x448] sm:$0xff] }
 0x159   :  { %v972_v22 = vadd.f32 %v5065_v23, %v867_v27  ;;  %v5120_v25 = vpop.f32.mrf.mxu1  ;;  %v1363_v27 = vld [vmem:[%s7129_s3 + $0x450] sm:$0xff]  ;;  %v1364_v23 = vld [vmem:[%s7129_s3 + $0x458] sm:$0xff] }
 0x15a   :  { %v5121_v49 = vadd.f32 %v5120_v25, %v5119_v26  ;;  %4642 = vmatmul.mubr.msk.f32.gmra.mxu0 %vm1087_vm3, %v1072_v46  ;;  %v5067_v50 = vpop.f32.mrf.mxu0  ;;  %v1240_v26 = vld [vmem:[%s7129_s3 + $0x78] sm:$0xff]  ;;  %v1365_v46 = vld [vmem:[%s7129_s3 + $0x460] sm:$0xff]  ;;  %v1367_v25 = vld [vmem:[%s7129_s3 + $0x470] sm:$0xff] }
 0x15b   :  { %v5068_v52 = vadd.f32 %v5067_v50, %v5066_v47  ;;  %v5122_v53 = vpop.f32.mrf.mxu1  ;;  %1212 = vmatprep.mubr.f32.mxu0 %v5225_v61  ;;  %v1241_v47 = vld [vmem:[%s7129_s3 + $0x80] sm:$0xff]  ;;  %v1368_v50 = vld [vmem:[%s7129_s3 + $0x478] sm:$0xff] }
 0x15c   :  { %v1077_v30 = vadd.f32 %v5121_v49, %v972_v22  ;;  %v1242_v22 = vld [vmem:[%s7129_s3 + $0x88] sm:$0xff]  ;;  %v1243_v49 = vld [vmem:[%s7129_s3 + $0x90] sm:$0xff] }
 0x15d   :  { %v977_v33 = vadd.f32 %v5068_v52, %v872_v51  ;;  %v5123_v54 = vpop.f32.mrf.mxu1  ;;  %v1244_v51 = vld [vmem:[%s7129_s3 + $0x98] sm:$0xff]  ;;  %v1369_v52 = vld [vmem:[%s7129_s3 + $0x480] sm:$0xff] }
 0x15e   :  { %v5124_v55 = vadd.f32 %v5123_v54, %v5122_v53  ;;  %4643 = vmatmul.mubr.msk.f32.gmra.mxu0 %vm1087_vm3, %v1077_v30  ;;  %v1245_v53 = vld [vmem:[%s7129_s3 + $0xa0] sm:$0xff]  ;;  %v1370_v30 = vld [vmem:[%s7129_s3 + $0x488] sm:$0xff]  ;;  %v1371_v54 = vld [vmem:[%s7129_s3 + $0x490] sm:$0xff] }
 0x15f   :  { %1218 = vmatprep.mubr.f32.mxu0 %v5225_v61 }
 0x160   :  { %v1082_v29 = vadd.f32 %v5124_v55, %v977_v33  ;;  %v1246_v33 = vld [vmem:[%s7129_s3 + $0xa8] sm:$0xff]  ;;  %v1247_v55 = vld [vmem:[%s7129_s3 + $0xb0] sm:$0xff] }
 0x162   :  { %4644 = vmatmul.mubr.msk.f32.gmra.mxu0 %vm1087_vm3, %v1082_v29  ;;  %v1372_v29 = vld [vmem:[%s7129_s3 + $0x498] sm:$0xff] }
 0x163   :  { %2314 = vmatprep.mubr.f32.mxu0 %v5225_v61 }
 0x206   :  { %v1178_v28 = vpop.f32.mrf.mxu0 }
 0x208   :  { %v1180_v56 = vpop.f32.mrf.mxu0 }
 0x20a   :  { %v1184_v57 = vpop.f32.mrf.mxu0 }
 0x20c   :  { %v1186_v58 = vpop.f32.mrf.mxu0 }
 0x20e   :  { %v1190_v59 = vpop.f32.mrf.mxu0 }
 0x210   :  { %v1192_v60 = vpop.f32.mrf.mxu0 }
 0x212   :  { %v1196_v62 = vpop.f32.mrf.mxu0 }
 0x214   :  { %v1198_v63 = vpop.f32.mrf.mxu0 }
 0x216   :  { %v1202_v0 = vpop.f32.mrf.mxu0 }
 0x218   :  { %v1204_v1 = vpop.f32.mrf.mxu0 }
 0x21a   :  { %v1208_v2 = vpop.f32.mrf.mxu0 }
 0x21c   :  { %v1210_v4 = vpop.f32.mrf.mxu0 }
 0x21e   :  { %v1214_v5 = vpop.f32.mrf.mxu0 }
 0x220   :  { %v1216_v6 = vpop.f32.mrf.mxu0 }
 0x222   :  { %v1220_v7 = vpop.f32.mrf.mxu0 }
 0x224   :  { %v1222_v8 = vpop.f32.mrf.mxu0 }
 0x225   :  { %2266 = vmatprep.subr.mxu0 %v1222_v8  ;;  %5125 = vmatprep.subr.mxu1 %v1222_v8  ;;  %v1380_v8 = vld [vmem:[%s7129_s3 + $0x4d8] sm:$0xff] }
 0x226   :  { %2267 = vmatpush1.msra.mxu0 %v1220_v7  ;;  %5133 = vmatpush1.msra.mxu1 %v1220_v7  ;;  %v1255_v7 = vld [vmem:[%s7129_s3 + $0xf0] sm:$0xff] }
 0x227   :  { %2268 = vmatprep.subr.mxu0 %v1216_v6  ;;  %5126 = vmatprep.subr.mxu1 %v1216_v6  ;;  %v1379_v6 = vld [vmem:[%s7129_s3 + $0x4d0] sm:$0xff] }
 0x228   :  { %2269 = vmatpush1.msra.mxu0 %v1214_v5  ;;  %5134 = vmatpush1.msra.mxu1 %v1214_v5  ;;  %v1254_v5 = vld [vmem:[%s7129_s3 + $0xe8] sm:$0xff] }
 0x229   :  { %2270 = vmatprep.subr.mxu0 %v1210_v4  ;;  %5127 = vmatprep.subr.mxu1 %v1210_v4  ;;  %v1378_v4 = vld [vmem:[%s7129_s3 + $0x4c8] sm:$0xff] }
 0x22a   :  { %2271 = vmatpush1.msra.mxu0 %v1208_v2  ;;  %5135 = vmatpush1.msra.mxu1 %v1208_v2  ;;  %v1253_v2 = vld [vmem:[%s7129_s3 + $0xe0] sm:$0xff] }
 0x22b   :  { %2272 = vmatprep.subr.mxu0 %v1204_v1  ;;  %5128 = vmatprep.subr.mxu1 %v1204_v1  ;;  %v1377_v1 = vld [vmem:[%s7129_s3 + $0x4c0] sm:$0xff] }
 0x22c   :  { %2273 = vmatpush1.msra.mxu0 %v1202_v0  ;;  %5136 = vmatpush1.msra.mxu1 %v1202_v0  ;;  %v1252_v0 = vld [vmem:[%s7129_s3 + $0xd8] sm:$0xff] }
 0x22d   :  { %2274 = vmatprep.subr.mxu0 %v1198_v63  ;;  %5129 = vmatprep.subr.mxu1 %v1198_v63  ;;  %v1376_v63 = vld [vmem:[%s7129_s3 + $0x4b8] sm:$0xff] }
 0x22e   :  { %2275 = vmatpush1.msra.mxu0 %v1196_v62  ;;  %5137 = vmatpush1.msra.mxu1 %v1196_v62  ;;  %v1251_v62 = vld [vmem:[%s7129_s3 + $0xd0] sm:$0xff] }
 0x22f   :  { %2276 = vmatprep.subr.mxu0 %v1192_v60  ;;  %5130 = vmatprep.subr.mxu1 %v1192_v60  ;;  %v1375_v60 = vld [vmem:[%s7129_s3 + $0x4b0] sm:$0xff] }
 0x230   :  { %2277 = vmatpush1.msra.mxu0 %v1190_v59  ;;  %5138 = vmatpush1.msra.mxu1 %v1190_v59  ;;  %v1250_v59 = vld [vmem:[%s7129_s3 + $0xc8] sm:$0xff] }
 0x231   :  { %2278 = vmatprep.subr.mxu0 %v1186_v58  ;;  %5131 = vmatprep.subr.mxu1 %v1186_v58  ;;  %v1374_v58 = vld [vmem:[%s7129_s3 + $0x4a8] sm:$0xff] }
 0x232   :  { %2279 = vmatpush1.msra.mxu0 %v1184_v57  ;;  %5139 = vmatpush1.msra.mxu1 %v1184_v57  ;;  %v1249_v57 = vld [vmem:[%s7129_s3 + $0xc0] sm:$0xff] }
 0x233   :  { %2280 = vmatprep.subr.mxu0 %v1180_v56  ;;  %5132 = vmatprep.subr.mxu1 %v1180_v56  ;;  %v1373_v56 = vld [vmem:[%s7129_s3 + $0x4a0] sm:$0xff] }
 0x234   :  { %2281 = vmatpush1.msra.mxu0 %v1178_v28  ;;  %5140 = vmatpush1.msra.mxu1 %v1178_v28  ;;  %v1248_v28 = vld [vmem:[%s7129_s3 + $0xb8] sm:$0xff] }
 0x235   :  { %4769 = vmatmul.mubr.msk.f32.vlgmr.msra.gmra.mxu1 %vm1481_vm5, %v1349_v9  ;;  %4645 = vmatmul.mubr.msk.f32.vlgmr.msra.gmra.mxu0 %vm1481_vm5, %v1225_v11  ;;  %v1256_v9 = vld [vmem:[%s7129_s3 + $0xf8] sm:$0xff]  ;;  %v1381_v11 = vld [vmem:[%s7129_s3 + $0x4e0] sm:$0xff] }
 0x236   :  { %3064 = vmatprep.mubr.f32.mxu1 %v5225_v61  ;;  %2320 = vmatprep.mubr.f32.mxu0 %v5225_v61 }
 0x239   :  { %4770 = vmatmul.mubr.msk.f32.gmra.mxu1 %vm1481_vm5, %v1350_v14  ;;  %4646 = vmatmul.mubr.msk.f32.gmra.mxu0 %vm1481_vm5, %v1226_v15  ;;  %v1257_v14 = vld [vmem:[%s7129_s3 + $0x100] sm:$0xff]  ;;  %v1382_v15 = vld [vmem:[%s7129_s3 + $0x4e8] sm:$0xff] }
 0x23a   :  { %3070 = vmatprep.mubr.f32.mxu1 %v5225_v61  ;;  %2326 = vmatprep.mubr.f32.mxu0 %v5225_v61 }
 0x23d   :  { %4771 = vmatmul.mubr.msk.f32.gmra.mxu1 %vm1481_vm5, %v1351_v32  ;;  %4647 = vmatmul.mubr.msk.f32.gmra.mxu0 %vm1481_vm5, %v1227_v10  ;;  %v1258_v32 = vld [vmem:[%s7129_s3 + $0x108] sm:$0xff]  ;;  %v1383_v10 = vld [vmem:[%s7129_s3 + $0x4f0] sm:$0xff] }
 0x23e   :  { %3076 = vmatprep.mubr.f32.mxu1 %v5225_v61  ;;  %2332 = vmatprep.mubr.f32.mxu0 %v5225_v61 }
 0x241   :  { %4772 = vmatmul.mubr.msk.f32.gmra.mxu1 %vm1481_vm5, %v1352_v13  ;;  %4648 = vmatmul.mubr.msk.f32.gmra.mxu0 %vm1481_vm5, %v1228_v31  ;;  %v1259_v13 = vld [vmem:[%s7129_s3 + $0x110] sm:$0xff]  ;;  %v1384_v31 = vld [vmem:[%s7129_s3 + $0x4f8] sm:$0xff] }
 0x242   :  { %3082 = vmatprep.mubr.f32.mxu1 %v5225_v61  ;;  %2338 = vmatprep.mubr.f32.mxu0 %v5225_v61 }
 0x245   :  { %4773 = vmatmul.mubr.msk.f32.gmra.mxu1 %vm1481_vm5, %v1353_v35  ;;  %4649 = vmatmul.mubr.msk.f32.gmra.mxu0 %vm1481_vm5, %v1229_v36  ;;  %v1260_v35 = vld [vmem:[%s7129_s3 + $0x118] sm:$0xff]  ;;  %v1385_v36 = vld [vmem:[%s7129_s3 + $0x500] sm:$0xff] }
 0x246   :  { %3088 = vmatprep.mubr.f32.mxu1 %v5225_v61  ;;  %2344 = vmatprep.mubr.f32.mxu0 %v5225_v61 }
 0x249   :  { %4774 = vmatmul.mubr.msk.f32.gmra.mxu1 %vm1481_vm5, %v1354_v18  ;;  %4650 = vmatmul.mubr.msk.f32.gmra.mxu0 %vm1481_vm5, %v1230_v16  ;;  %v1261_v18 = vld [vmem:[%s7129_s3 + $0x120] sm:$0xff]  ;;  %v1386_v16 = vld [vmem:[%s7129_s3 + $0x508] sm:$0xff] }
 0x24a   :  { %3094 = vmatprep.mubr.f32.mxu1 %v5225_v61  ;;  %2350 = vmatprep.mubr.f32.mxu0 %v5225_v61 }
 0x24d   :  { %4775 = vmatmul.mubr.msk.f32.gmra.mxu1 %vm1481_vm5, %v1355_v37  ;;  %4651 = vmatmul.mubr.msk.f32.gmra.mxu0 %vm1481_vm5, %v1231_v34  ;;  %v1262_v37 = vld [vmem:[%s7129_s3 + $0x128] sm:$0xff]  ;;  %v1387_v34 = vld [vmem:[%s7129_s3 + $0x510] sm:$0xff] }
 0x24e   :  { %3100 = vmatprep.mubr.f32.mxu1 %v5225_v61  ;;  %2356 = vmatprep.mubr.f32.mxu0 %v5225_v61 }
 0x251   :  { %4776 = vmatmul.mubr.msk.f32.gmra.mxu1 %vm1481_vm5, %v1356_v12  ;;  %4652 = vmatmul.mubr.msk.f32.gmra.mxu0 %vm1481_vm5, %v1232_v17  ;;  %v1263_v12 = vld [vmem:[%s7129_s3 + $0x130] sm:$0xff]  ;;  %v1388_v17 = vld [vmem:[%s7129_s3 + $0x518] sm:$0xff] }
 0x252   :  { %3106 = vmatprep.mubr.f32.mxu1 %v5225_v61  ;;  %2362 = vmatprep.mubr.f32.mxu0 %v5225_v61 }
 0x255   :  { %4777 = vmatmul.mubr.msk.f32.gmra.mxu1 %vm1481_vm5, %v1357_v38  ;;  %4653 = vmatmul.mubr.msk.f32.gmra.mxu0 %vm1481_vm5, %v1233_v39  ;;  %v1264_v38 = vld [vmem:[%s7129_s3 + $0x138] sm:$0xff]  ;;  %v1389_v39 = vld [vmem:[%s7129_s3 + $0x520] sm:$0xff] }
 0x256   :  { %3112 = vmatprep.mubr.f32.mxu1 %v5225_v61  ;;  %2368 = vmatprep.mubr.f32.mxu0 %v5225_v61 }
 0x259   :  { %4778 = vmatmul.mubr.msk.f32.gmra.mxu1 %vm1481_vm5, %v1358_v40  ;;  %4654 = vmatmul.mubr.msk.f32.gmra.mxu0 %vm1481_vm5, %v1234_v19  ;;  %v1265_v40 = vld [vmem:[%s7129_s3 + $0x140] sm:$0xff]  ;;  %v1390_v19 = vld [vmem:[%s7129_s3 + $0x528] sm:$0xff] }
 0x25a   :  { %3118 = vmatprep.mubr.f32.mxu1 %v5225_v61  ;;  %2374 = vmatprep.mubr.f32.mxu0 %v5225_v61 }
 0x25d   :  { %4779 = vmatmul.mubr.msk.f32.gmra.mxu1 %vm1481_vm5, %v1359_v24  ;;  %4655 = vmatmul.mubr.msk.f32.gmra.mxu0 %vm1481_vm5, %v1235_v41  ;;  %v1266_v24 = vld [vmem:[%s7129_s3 + $0x148] sm:$0xff]  ;;  %v1391_v41 = vld [vmem:[%s7129_s3 + $0x530] sm:$0xff] }
 0x25e   :  { %3124 = vmatprep.mubr.f32.mxu1 %v5225_v61  ;;  %2380 = vmatprep.mubr.f32.mxu0 %v5225_v61 }
 0x261   :  { %4780 = vmatmul.mubr.msk.f32.gmra.mxu1 %vm1481_vm5, %v1360_v42  ;;  %4656 = vmatmul.mubr.msk.f32.gmra.mxu0 %vm1481_vm5, %v1236_v43  ;;  %v1267_v42 = vld [vmem:[%s7129_s3 + $0x150] sm:$0xff]  ;;  %v1392_v43 = vld [vmem:[%s7129_s3 + $0x538] sm:$0xff] }
 0x262   :  { %3130 = vmatprep.mubr.f32.mxu1 %v5225_v61  ;;  %2386 = vmatprep.mubr.f32.mxu0 %v5225_v61 }
 0x265   :  { %4781 = vmatmul.mubr.msk.f32.gmra.mxu1 %vm1481_vm5, %v1361_v20  ;;  %4657 = vmatmul.mubr.msk.f32.gmra.mxu0 %vm1481_vm5, %v1237_v21  ;;  %v1268_v20 = vld [vmem:[%s7129_s3 + $0x158] sm:$0xff]  ;;  %v1393_v21 = vld [vmem:[%s7129_s3 + $0x540] sm:$0xff] }
 0x266   :  { %3136 = vmatprep.mubr.f32.mxu1 %v5225_v61  ;;  %2392 = vmatprep.mubr.f32.mxu0 %v5225_v61 }
 0x269   :  { %4782 = vmatmul.mubr.msk.f32.gmra.mxu1 %vm1481_vm5, %v1362_v44  ;;  %4658 = vmatmul.mubr.msk.f32.gmra.mxu0 %vm1481_vm5, %v1238_v3  ;;  %v1269_v44 = vld [vmem:[%s7129_s3 + $0x160] sm:$0xff]  ;;  %v1394_v3 = vld [vmem:[%s7129_s3 + $0x548] sm:$0xff] }
 0x26a   :  { %3142 = vmatprep.mubr.f32.mxu1 %v5225_v61  ;;  %2398 = vmatprep.mubr.f32.mxu0 %v5225_v61 }
 0x26d   :  { %4783 = vmatmul.mubr.msk.f32.gmra.mxu1 %vm1481_vm5, %v1363_v27  ;;  %4659 = vmatmul.mubr.msk.f32.gmra.mxu0 %vm1481_vm5, %v1239_v45  ;;  %v1270_v27 = vld [vmem:[%s7129_s3 + $0x168] sm:$0xff]  ;;  %v1395_v45 = vld [vmem:[%s7129_s3 + $0x550] sm:$0xff] }
 0x26e   :  { %3148 = vmatprep.mubr.f32.mxu1 %v5225_v61  ;;  %2404 = vmatprep.mubr.f32.mxu0 %v5225_v61 }
 0x271   :  { %4784 = vmatmul.mubr.msk.f32.gmra.mxu1 %vm1481_vm5, %v1364_v23  ;;  %4660 = vmatmul.mubr.msk.f32.gmra.mxu0 %vm1481_vm5, %v1240_v26  ;;  %v1271_v23 = vld [vmem:[%s7129_s3 + $0x170] sm:$0xff]  ;;  %v1396_v26 = vld [vmem:[%s7129_s3 + $0x558] sm:$0xff] }
 0x272   :  { %3154 = vmatprep.mubr.f32.mxu1 %v5225_v61  ;;  %2410 = vmatprep.mubr.f32.mxu0 %v5225_v61 }
 0x275   :  { %4785 = vmatmul.mubr.msk.f32.gmra.mxu1 %vm1481_vm5, %v1365_v46  ;;  %4661 = vmatmul.mubr.msk.f32.gmra.mxu0 %vm1481_vm5, %v1241_v47  ;;  %v1272_v46 = vld [vmem:[%s7129_s3 + $0x178] sm:$0xff]  ;;  %v1397_v47 = vld [vmem:[%s7129_s3 + $0x560] sm:$0xff] }
 0x276   :  { %3160 = vmatprep.mubr.f32.mxu1 %v5225_v61  ;;  %2416 = vmatprep.mubr.f32.mxu0 %v5225_v61 }
 0x279   :  { %4786 = vmatmul.mubr.msk.f32.gmra.mxu1 %vm1481_vm5, %v1366_v48  ;;  %4662 = vmatmul.mubr.msk.f32.gmra.mxu0 %vm1481_vm5, %v1242_v22  ;;  %v1273_v48 = vld [vmem:[%s7129_s3 + $0x180] sm:$0xff] }
 0x27a   :  { %3166 = vmatprep.mubr.f32.mxu1 %v5225_v61  ;;  %2422 = vmatprep.mubr.f32.mxu0 %v5225_v61 }
 0x27d   :  { %4787 = vmatmul.mubr.msk.f32.gmra.mxu1 %vm1481_vm5, %v1367_v25  ;;  %4663 = vmatmul.mubr.msk.f32.gmra.mxu0 %vm1481_vm5, %v1243_v49  ;;  %v1398_v49 = vld [vmem:[%s7129_s3 + $0x568] sm:$0xff] }
 0x27e   :  { %3172 = vmatprep.mubr.f32.mxu1 %v5225_v61  ;;  %2428 = vmatprep.mubr.f32.mxu0 %v5225_v61 }
 0x281   :  { %4788 = vmatmul.mubr.msk.f32.gmra.mxu1 %vm1481_vm5, %v1368_v50  ;;  %4664 = vmatmul.mubr.msk.f32.gmra.mxu0 %vm1481_vm5, %v1244_v51  ;;  %v1274_v50 = vld [vmem:[%s7129_s3 + $0x188] sm:$0xff] }
 0x282   :  { %3178 = vmatprep.mubr.f32.mxu1 %v5225_v61  ;;  %2434 = vmatprep.mubr.f32.mxu0 %v5225_v61 }
 0x285   :  { %4789 = vmatmul.mubr.msk.f32.gmra.mxu1 %vm1481_vm5, %v1369_v52  ;;  %4665 = vmatmul.mubr.msk.f32.gmra.mxu0 %vm1481_vm5, %v1245_v53 }
 0x286   :  { %3184 = vmatprep.mubr.f32.mxu1 %v5225_v61  ;;  %2440 = vmatprep.mubr.f32.mxu0 %v5225_v61 }
 0x289   :  { %4790 = vmatmul.mubr.msk.f32.gmra.mxu1 %vm1481_vm5, %v1370_v30  ;;  %4666 = vmatmul.mubr.msk.f32.gmra.mxu0 %vm1481_vm5, %v1246_v33  ;;  %v1399_v33 = vld [vmem:[%s7129_s3 + $0x570] sm:$0xff] }
 0x28a   :  { %3190 = vmatprep.mubr.f32.mxu1 %v5225_v61  ;;  %2446 = vmatprep.mubr.f32.mxu0 %v5225_v61 }
 0x28d   :  { %4791 = vmatmul.mubr.msk.f32.gmra.mxu1 %vm1481_vm5, %v1371_v54  ;;  %4667 = vmatmul.mubr.msk.f32.gmra.mxu0 %vm1481_vm5, %v1247_v55  ;;  %v1275_v54 = vld [vmem:[%s7129_s3 + $0x190] sm:$0xff] }
 0x28e   :  { %3196 = vmatprep.mubr.f32.mxu1 %v5225_v61  ;;  %2452 = vmatprep.mubr.f32.mxu0 %v5225_v61 }
 0x291   :  { %4792 = vmatmul.mubr.msk.f32.gmra.mxu1 %vm1481_vm5, %v1372_v29  ;;  %4668 = vmatmul.mubr.msk.f32.gmra.mxu0 %vm1481_vm5, %v1248_v28 }
 0x292   :  { %3202 = vmatprep.mubr.f32.mxu1 %v5225_v61  ;;  %2458 = vmatprep.mubr.f32.mxu0 %v5225_v61 }
 0x295   :  { %4793 = vmatmul.mubr.msk.f32.gmra.mxu1 %vm1481_vm5, %v1373_v56  ;;  %4669 = vmatmul.mubr.msk.f32.gmra.mxu0 %vm1481_vm5, %v1249_v57  ;;  %v1400_v57 = vld [vmem:[%s7129_s3 + $0x578] sm:$0xff] }
 0x296   :  { %3208 = vmatprep.mubr.f32.mxu1 %v5225_v61  ;;  %2464 = vmatprep.mubr.f32.mxu0 %v5225_v61 }
 0x299   :  { %4794 = vmatmul.mubr.msk.f32.gmra.mxu1 %vm1481_vm5, %v1374_v58  ;;  %4670 = vmatmul.mubr.msk.f32.gmra.mxu0 %vm1481_vm5, %v1250_v59  ;;  %v1276_v58 = vld [vmem:[%s7129_s3 + $0x198] sm:$0xff] }
 0x29a   :  { %3214 = vmatprep.mubr.f32.mxu1 %v5225_v61  ;;  %2470 = vmatprep.mubr.f32.mxu0 %v5225_v61 }
 0x29d   :  { %4795 = vmatmul.mubr.msk.f32.gmra.mxu1 %vm1481_vm5, %v1375_v60  ;;  %4671 = vmatmul.mubr.msk.f32.gmra.mxu0 %vm1481_vm5, %v1251_v62 }
 0x29e   :  { %3220 = vmatprep.mubr.f32.mxu1 %v5225_v61  ;;  %2476 = vmatprep.mubr.f32.mxu0 %v5225_v61 }
 0x2a1   :  { %4796 = vmatmul.mubr.msk.f32.gmra.mxu1 %vm1481_vm5, %v1376_v63  ;;  %4672 = vmatmul.mubr.msk.f32.gmra.mxu0 %vm1481_vm5, %v1252_v0  ;;  %v1401_v0 = vld [vmem:[%s7129_s3 + $0x580] sm:$0xff] }
 0x2a2   :  { %3226 = vmatprep.mubr.f32.mxu1 %v5225_v61  ;;  %2482 = vmatprep.mubr.f32.mxu0 %v5225_v61 }
 0x2a5   :  { %4797 = vmatmul.mubr.msk.f32.gmra.mxu1 %vm1481_vm5, %v1377_v1  ;;  %4673 = vmatmul.mubr.msk.f32.gmra.mxu0 %vm1481_vm5, %v1253_v2  ;;  %v1277_v1 = vld [vmem:[%s7129_s3 + $0x1a0] sm:$0xff] }
 0x2a6   :  { %3232 = vmatprep.mubr.f32.mxu1 %v5225_v61  ;;  %2488 = vmatprep.mubr.f32.mxu0 %v5225_v61 }
 0x2a9   :  { %4798 = vmatmul.mubr.msk.f32.gmra.mxu1 %vm1481_vm5, %v1378_v4  ;;  %4674 = vmatmul.mubr.msk.f32.gmra.mxu0 %vm1481_vm5, %v1254_v5 }
 0x2aa   :  { %3238 = vmatprep.mubr.f32.mxu1 %v5225_v61  ;;  %2494 = vmatprep.mubr.f32.mxu0 %v5225_v61 }
 0x2ad   :  { %4799 = vmatmul.mubr.msk.f32.gmra.mxu1 %vm1481_vm5, %v1379_v6  ;;  %4675 = vmatmul.mubr.msk.f32.gmra.mxu0 %vm1481_vm5, %v1255_v7  ;;  %v1402_v7 = vld [vmem:[%s7129_s3 + $0x588] sm:$0xff] }
 0x2ae   :  { %3244 = vmatprep.mubr.f32.mxu1 %v5225_v61  ;;  %2500 = vmatprep.mubr.f32.mxu0 %v5225_v61 }
 0x2b1   :  { %4800 = vmatmul.mubr.msk.f32.gmra.mxu1 %vm1481_vm5, %v1380_v8  ;;  %4676 = vmatmul.mubr.msk.f32.gmra.mxu0 %vm1481_vm5, %v1256_v9  ;;  %v1278_v8 = vld [vmem:[%s7129_s3 + $0x1a8] sm:$0xff] }
 0x2b2   :  { %3250 = vmatprep.mubr.f32.mxu1 %v5225_v61  ;;  %2506 = vmatprep.mubr.f32.mxu0 %v5225_v61 }
 0x2b5   :  { %4801 = vmatmul.mubr.msk.f32.gmra.mxu1 %vm1481_vm5, %v1381_v11  ;;  %4677 = vmatmul.mubr.msk.f32.gmra.mxu0 %vm1481_vm5, %v1257_v14 }
 0x2b6   :  { %3256 = vmatprep.mubr.f32.mxu1 %v5225_v61  ;;  %2512 = vmatprep.mubr.f32.mxu0 %v5225_v61 }
 0x2b9   :  { %4802 = vmatmul.mubr.msk.f32.gmra.mxu1 %vm1481_vm5, %v1382_v15  ;;  %4678 = vmatmul.mubr.msk.f32.gmra.mxu0 %vm1481_vm5, %v1258_v32  ;;  %v1403_v32 = vld [vmem:[%s7129_s3 + $0x590] sm:$0xff] }
 0x2ba   :  { %3262 = vmatprep.mubr.f32.mxu1 %v5225_v61  ;;  %2518 = vmatprep.mubr.f32.mxu0 %v5225_v61 }
 0x2bd   :  { %4803 = vmatmul.mubr.msk.f32.gmra.mxu1 %vm1481_vm5, %v1383_v10  ;;  %4679 = vmatmul.mubr.msk.f32.gmra.mxu0 %vm1481_vm5, %v1259_v13  ;;  %v1279_v10 = vld [vmem:[%s7129_s3 + $0x1b0] sm:$0xff] }
 0x2be   :  { %3268 = vmatprep.mubr.f32.mxu1 %v5225_v61  ;;  %2524 = vmatprep.mubr.f32.mxu0 %v5225_v61 }
 0x2c1   :  { %4804 = vmatmul.mubr.msk.f32.gmra.mxu1 %vm1481_vm5, %v1384_v31  ;;  %4680 = vmatmul.mubr.msk.f32.gmra.mxu0 %vm1481_vm5, %v1260_v35 }
 0x2c2   :  { %3274 = vmatprep.mubr.f32.mxu1 %v5225_v61  ;;  %2530 = vmatprep.mubr.f32.mxu0 %v5225_v61 }
 0x2c5   :  { %4805 = vmatmul.mubr.msk.f32.gmra.mxu1 %vm1481_vm5, %v1385_v36  ;;  %4681 = vmatmul.mubr.msk.f32.gmra.mxu0 %vm1481_vm5, %v1261_v18  ;;  %v1404_v18 = vld [vmem:[%s7129_s3 + $0x598] sm:$0xff] }
 0x2c6   :  { %3280 = vmatprep.mubr.f32.mxu1 %v5225_v61  ;;  %2536 = vmatprep.mubr.f32.mxu0 %v5225_v61 }
 0x2c9   :  { %4806 = vmatmul.mubr.msk.f32.gmra.mxu1 %vm1481_vm5, %v1386_v16  ;;  %4682 = vmatmul.mubr.msk.f32.gmra.mxu0 %vm1481_vm5, %v1262_v37  ;;  %v1280_v16 = vld [vmem:[%s7129_s3 + $0x1b8] sm:$0xff] }
 0x2ca   :  { %3286 = vmatprep.mubr.f32.mxu1 %v5225_v61  ;;  %2542 = vmatprep.mubr.f32.mxu0 %v5225_v61 }
 0x2cd   :  { %4807 = vmatmul.mubr.msk.f32.gmra.mxu1 %vm1481_vm5, %v1387_v34  ;;  %4683 = vmatmul.mubr.msk.f32.gmra.mxu0 %vm1481_vm5, %v1263_v12 }
 0x2ce   :  { %3292 = vmatprep.mubr.f32.mxu1 %v5225_v61  ;;  %2548 = vmatprep.mubr.f32.mxu0 %v5225_v61 }
 0x2d1   :  { %4808 = vmatmul.mubr.msk.f32.gmra.mxu1 %vm1481_vm5, %v1388_v17  ;;  %4684 = vmatmul.mubr.msk.f32.gmra.mxu0 %vm1481_vm5, %v1264_v38  ;;  %v1405_v38 = vld [vmem:[%s7129_s3 + $0x5a0] sm:$0xff] }
 0x2d2   :  { %3298 = vmatprep.mubr.f32.mxu1 %v5225_v61  ;;  %2554 = vmatprep.mubr.f32.mxu0 %v5225_v61 }
 0x2d5   :  { %4809 = vmatmul.mubr.msk.f32.gmra.mxu1 %vm1481_vm5, %v1389_v39  ;;  %4685 = vmatmul.mubr.msk.f32.gmra.mxu0 %vm1481_vm5, %v1265_v40  ;;  %v1281_v39 = vld [vmem:[%s7129_s3 + $0x1c0] sm:$0xff] }
 0x2d6   :  { %3304 = vmatprep.mubr.f32.mxu1 %v5225_v61  ;;  %2560 = vmatprep.mubr.f32.mxu0 %v5225_v61 }
 0x2d9   :  { %4810 = vmatmul.mubr.msk.f32.gmra.mxu1 %vm1481_vm5, %v1390_v19  ;;  %4686 = vmatmul.mubr.msk.f32.gmra.mxu0 %vm1481_vm5, %v1266_v24 }
 0x2da   :  { %3310 = vmatprep.mubr.f32.mxu1 %v5225_v61  ;;  %2566 = vmatprep.mubr.f32.mxu0 %v5225_v61 }
 0x2dd   :  { %4811 = vmatmul.mubr.msk.f32.gmra.mxu1 %vm1481_vm5, %v1391_v41  ;;  %4687 = vmatmul.mubr.msk.f32.gmra.mxu0 %vm1481_vm5, %v1267_v42  ;;  %v1406_v42 = vld [vmem:[%s7129_s3 + $0x5a8] sm:$0xff] }
 0x2de   :  { %3316 = vmatprep.mubr.f32.mxu1 %v5225_v61  ;;  %2572 = vmatprep.mubr.f32.mxu0 %v5225_v61 }
 0x2e1   :  { %4812 = vmatmul.mubr.msk.f32.gmra.mxu1 %vm1481_vm5, %v1392_v43  ;;  %4688 = vmatmul.mubr.msk.f32.gmra.mxu0 %vm1481_vm5, %v1268_v20  ;;  %v1282_v43 = vld [vmem:[%s7129_s3 + $0x1c8] sm:$0xff] }
 0x2e2   :  { %3322 = vmatprep.mubr.f32.mxu1 %v5225_v61  ;;  %2578 = vmatprep.mubr.f32.mxu0 %v5225_v61 }
 0x2e5   :  { %4813 = vmatmul.mubr.msk.f32.gmra.mxu1 %vm1481_vm5, %v1393_v21  ;;  %4689 = vmatmul.mubr.msk.f32.gmra.mxu0 %vm1481_vm5, %v1269_v44 }
 0x2e6   :  { %3328 = vmatprep.mubr.f32.mxu1 %v5225_v61  ;;  %2584 = vmatprep.mubr.f32.mxu0 %v5225_v61 }
 0x2e9   :  { %4814 = vmatmul.mubr.msk.f32.gmra.mxu1 %vm1481_vm5, %v1394_v3  ;;  %4690 = vmatmul.mubr.msk.f32.gmra.mxu0 %vm1481_vm5, %v1270_v27  ;;  %v1407_v27 = vld [vmem:[%s7129_s3 + $0x5b0] sm:$0xff] }
 0x2ea   :  { %3334 = vmatprep.mubr.f32.mxu1 %v5225_v61  ;;  %2590 = vmatprep.mubr.f32.mxu0 %v5225_v61 }
 0x2ed   :  { %4815 = vmatmul.mubr.msk.f32.gmra.mxu1 %vm1481_vm5, %v1395_v45  ;;  %4691 = vmatmul.mubr.msk.f32.gmra.mxu0 %vm1481_vm5, %v1271_v23  ;;  %v1283_v45 = vld [vmem:[%s7129_s3 + $0x1d0] sm:$0xff] }
 0x2ee   :  { %3340 = vmatprep.mubr.f32.mxu1 %v5225_v61  ;;  %2596 = vmatprep.mubr.f32.mxu0 %v5225_v61 }
 0x2f1   :  { %4816 = vmatmul.mubr.msk.f32.gmra.mxu1 %vm1481_vm5, %v1396_v26  ;;  %4692 = vmatmul.mubr.msk.f32.gmra.mxu0 %vm1481_vm5, %v1272_v46 }
 0x2f2   :  { %3346 = vmatprep.mubr.f32.mxu1 %v5225_v61  ;;  %2602 = vmatprep.mubr.f32.mxu0 %v5225_v61 }
 0x2f5   :  { %v3060_v22 = vpop.f32.mrf.mxu1  ;;  %4817 = vmatmul.mubr.msk.f32.gmra.mxu1 %vm1481_vm5, %v1397_v47  ;;  %v2316_v25 = vpop.f32.mrf.mxu0  ;;  %4693 = vmatmul.mubr.msk.f32.gmra.mxu0 %vm1481_vm5, %v1273_v48  ;;  %v1408_v48 = vld [vmem:[%s7129_s3 + $0x5b8] sm:$0xff] }
 0x2f6   :  { %4099 = vst [vmem:[#allocation7 + $0x7c0] sm:$0xff] %v3060_v22  ;;  %3352 = vmatprep.mubr.f32.mxu1 %v5225_v61  ;;  %3851 = vst [vmem:[#allocation7] sm:$0xff] %v2316_v25  ;;  %2608 = vmatprep.mubr.f32.mxu0 %v5225_v61  ;;  %v1284_v22 = vld [vmem:[%s7129_s3 + $0x1d8] sm:$0xff] }
 0x2f7   :  { %v3062_v51 = vpop.f32.mrf.mxu1  ;;  %v2318_v52 = vpop.f32.mrf.mxu0 }
 0x2f8   :  { %4100 = vst [vmem:[#allocation7 + $0x7c8] sm:$0xff] %v3062_v51  ;;  %3852 = vst [vmem:[#allocation7 + $0x8] sm:$0xff] %v2318_v52  ;;  %v1409_v52 = vld [vmem:[%s7129_s3 + $0x5c0] sm:$0xff] }
 0x2f9   :  { %v3066_v53 = vpop.f32.mrf.mxu1  ;;  %4818 = vmatmul.mubr.msk.f32.gmra.mxu1 %vm1481_vm5, %v1398_v49  ;;  %v2322_v30 = vpop.f32.mrf.mxu0  ;;  %4694 = vmatmul.mubr.msk.f32.gmra.mxu0 %vm1481_vm5, %v1274_v50 }
 0x2fa   :  { %4101 = vst [vmem:[#allocation7 + $0x7d0] sm:$0xff] %v3066_v53  ;;  %3358 = vmatprep.mubr.f32.mxu1 %v5225_v61  ;;  %3853 = vst [vmem:[#allocation7 + $0x10] sm:$0xff] %v2322_v30  ;;  %2614 = vmatprep.mubr.f32.mxu0 %v5225_v61  ;;  %v1285_v53 = vld [vmem:[%s7129_s3 + $0x1e0] sm:$0xff] }
 0x2fb   :  { %v3068_v55 = vpop.f32.mrf.mxu1  ;;  %v2324_v29 = vpop.f32.mrf.mxu0 }
 0x2fc   :  { %4102 = vst [vmem:[#allocation7 + $0x7d8] sm:$0xff] %v3068_v55  ;;  %3854 = vst [vmem:[#allocation7 + $0x18] sm:$0xff] %v2324_v29  ;;  %v1410_v29 = vld [vmem:[%s7129_s3 + $0x5c8] sm:$0xff] }
 0x2fd   :  { %v3072_v28 = vpop.f32.mrf.mxu1  ;;  %4819 = vmatmul.mubr.msk.f32.gmra.mxu1 %vm1481_vm5, %v1399_v33  ;;  %v2328_v56 = vpop.f32.mrf.mxu0  ;;  %4695 = vmatmul.mubr.msk.f32.gmra.mxu0 %vm1481_vm5, %v1275_v54 }
 0x2fe   :  { %4103 = vst [vmem:[#allocation7 + $0x7e0] sm:$0xff] %v3072_v28  ;;  %3364 = vmatprep.mubr.f32.mxu1 %v5225_v61  ;;  %3855 = vst [vmem:[#allocation7 + $0x20] sm:$0xff] %v2328_v56  ;;  %2620 = vmatprep.mubr.f32.mxu0 %v5225_v61  ;;  %v1286_v28 = vld [vmem:[%s7129_s3 + $0x1e8] sm:$0xff] }
 0x2ff   :  { %v3074_v59 = vpop.f32.mrf.mxu1  ;;  %v2330_v60 = vpop.f32.mrf.mxu0 }
 0x300   :  { %4104 = vst [vmem:[#allocation7 + $0x7e8] sm:$0xff] %v3074_v59  ;;  %3856 = vst [vmem:[#allocation7 + $0x28] sm:$0xff] %v2330_v60  ;;  %v1411_v60 = vld [vmem:[%s7129_s3 + $0x5d0] sm:$0xff] }
 0x301   :  { %v3078_v62 = vpop.f32.mrf.mxu1  ;;  %4820 = vmatmul.mubr.msk.f32.gmra.mxu1 %vm1481_vm5, %v1400_v57  ;;  %v2334_v63 = vpop.f32.mrf.mxu0  ;;  %4696 = vmatmul.mubr.msk.f32.gmra.mxu0 %vm1481_vm5, %v1276_v58 }
 0x302   :  { %4105 = vst [vmem:[#allocation7 + $0x7f0] sm:$0xff] %v3078_v62  ;;  %3370 = vmatprep.mubr.f32.mxu1 %v5225_v61  ;;  %3857 = vst [vmem:[#allocation7 + $0x30] sm:$0xff] %v2334_v63  ;;  %2626 = vmatprep.mubr.f32.mxu0 %v5225_v61  ;;  %v1287_v62 = vld [vmem:[%s7129_s3 + $0x1f0] sm:$0xff] }
 0x303   :  { %v3080_v2 = vpop.f32.mrf.mxu1  ;;  %v2336_v4 = vpop.f32.mrf.mxu0 }
 0x304   :  { %4106 = vst [vmem:[#allocation7 + $0x7f8] sm:$0xff] %v3080_v2  ;;  %3858 = vst [vmem:[#allocation7 + $0x38] sm:$0xff] %v2336_v4  ;;  %v1412_v4 = vld [vmem:[%s7129_s3 + $0x5d8] sm:$0xff] }
 0x305   :  { %v3084_v5 = vpop.f32.mrf.mxu1  ;;  %4821 = vmatmul.mubr.msk.f32.gmra.mxu1 %vm1481_vm5, %v1401_v0  ;;  %v2340_v6 = vpop.f32.mrf.mxu0  ;;  %4697 = vmatmul.mubr.msk.f32.gmra.mxu0 %vm1481_vm5, %v1277_v1 }
 0x306   :  { %4107 = vst [vmem:[#allocation7 + $0x800] sm:$0xff] %v3084_v5  ;;  %3376 = vmatprep.mubr.f32.mxu1 %v5225_v61  ;;  %3859 = vst [vmem:[#allocation7 + $0x40] sm:$0xff] %v2340_v6  ;;  %2632 = vmatprep.mubr.f32.mxu0 %v5225_v61  ;;  %v1288_v5 = vld [vmem:[%s7129_s3 + $0x1f8] sm:$0xff] }
 0x307   :  { %v3086_v9 = vpop.f32.mrf.mxu1  ;;  %v2342_v11 = vpop.f32.mrf.mxu0 }
 0x308   :  { %4108 = vst [vmem:[#allocation7 + $0x808] sm:$0xff] %v3086_v9  ;;  %3860 = vst [vmem:[#allocation7 + $0x48] sm:$0xff] %v2342_v11  ;;  %v1413_v11 = vld [vmem:[%s7129_s3 + $0x5e0] sm:$0xff] }
 0x309   :  { %v3090_v14 = vpop.f32.mrf.mxu1  ;;  %4822 = vmatmul.mubr.msk.f32.gmra.mxu1 %vm1481_vm5, %v1402_v7  ;;  %v2346_v15 = vpop.f32.mrf.mxu0  ;;  %4698 = vmatmul.mubr.msk.f32.gmra.mxu0 %vm1481_vm5, %v1278_v8 }
 0x30a   :  { %4109 = vst [vmem:[#allocation7 + $0x810] sm:$0xff] %v3090_v14  ;;  %3382 = vmatprep.mubr.f32.mxu1 %v5225_v61  ;;  %3861 = vst [vmem:[#allocation7 + $0x50] sm:$0xff] %v2346_v15  ;;  %2638 = vmatprep.mubr.f32.mxu0 %v5225_v61  ;;  %v1289_v14 = vld [vmem:[%s7129_s3 + $0x200] sm:$0xff] }
 0x30b   :  { %v3092_v13 = vpop.f32.mrf.mxu1  ;;  %v2348_v31 = vpop.f32.mrf.mxu0 }
 0x30c   :  { %4110 = vst [vmem:[#allocation7 + $0x818] sm:$0xff] %v3092_v13  ;;  %3862 = vst [vmem:[#allocation7 + $0x58] sm:$0xff] %v2348_v31  ;;  %v1414_v31 = vld [vmem:[%s7129_s3 + $0x5e8] sm:$0xff] }
 0x30d   :  { %v3096_v35 = vpop.f32.mrf.mxu1  ;;  %4823 = vmatmul.mubr.msk.f32.gmra.mxu1 %vm1481_vm5, %v1403_v32  ;;  %v2352_v36 = vpop.f32.mrf.mxu0  ;;  %4699 = vmatmul.mubr.msk.f32.gmra.mxu0 %vm1481_vm5, %v1279_v10 }
 0x30e   :  { %4111 = vst [vmem:[#allocation7 + $0x820] sm:$0xff] %v3096_v35  ;;  %3388 = vmatprep.mubr.f32.mxu1 %v5225_v61  ;;  %3863 = vst [vmem:[#allocation7 + $0x60] sm:$0xff] %v2352_v36  ;;  %2644 = vmatprep.mubr.f32.mxu0 %v5225_v61  ;;  %v1290_v35 = vld [vmem:[%s7129_s3 + $0x208] sm:$0xff] }
 0x30f   :  { %v3098_v37 = vpop.f32.mrf.mxu1  ;;  %v2354_v34 = vpop.f32.mrf.mxu0 }
 0x310   :  { %4112 = vst [vmem:[#allocation7 + $0x828] sm:$0xff] %v3098_v37  ;;  %3864 = vst [vmem:[#allocation7 + $0x68] sm:$0xff] %v2354_v34  ;;  %v1415_v34 = vld [vmem:[%s7129_s3 + $0x5f0] sm:$0xff] }
 0x311   :  { %v3102_v12 = vpop.f32.mrf.mxu1  ;;  %4824 = vmatmul.mubr.msk.f32.gmra.mxu1 %vm1481_vm5, %v1404_v18  ;;  %v2358_v17 = vpop.f32.mrf.mxu0  ;;  %4700 = vmatmul.mubr.msk.f32.gmra.mxu0 %vm1481_vm5, %v1280_v16 }
 0x312   :  { %4113 = vst [vmem:[#allocation7 + $0x830] sm:$0xff] %v3102_v12  ;;  %3394 = vmatprep.mubr.f32.mxu1 %v5225_v61  ;;  %3865 = vst [vmem:[#allocation7 + $0x70] sm:$0xff] %v2358_v17  ;;  %2650 = vmatprep.mubr.f32.mxu0 %v5225_v61  ;;  %v1291_v12 = vld [vmem:[%s7129_s3 + $0x210] sm:$0xff] }
 0x313   :  { %v3104_v40 = vpop.f32.mrf.mxu1  ;;  %v2360_v19 = vpop.f32.mrf.mxu0 }
 0x314   :  { %4114 = vst [vmem:[#allocation7 + $0x838] sm:$0xff] %v3104_v40  ;;  %3866 = vst [vmem:[#allocation7 + $0x78] sm:$0xff] %v2360_v19  ;;  %v1416_v19 = vld [vmem:[%s7129_s3 + $0x5f8] sm:$0xff] }
 0x315   :  { %v3108_v24 = vpop.f32.mrf.mxu1  ;;  %4825 = vmatmul.mubr.msk.f32.gmra.mxu1 %vm1481_vm5, %v1405_v38  ;;  %v2364_v41 = vpop.f32.mrf.mxu0  ;;  %4701 = vmatmul.mubr.msk.f32.gmra.mxu0 %vm1481_vm5, %v1281_v39 }
 0x316   :  { %4115 = vst [vmem:[#allocation7 + $0x840] sm:$0xff] %v3108_v24  ;;  %3400 = vmatprep.mubr.f32.mxu1 %v5225_v61  ;;  %3867 = vst [vmem:[#allocation7 + $0x80] sm:$0xff] %v2364_v41  ;;  %2656 = vmatprep.mubr.f32.mxu0 %v5225_v61  ;;  %v1292_v24 = vld [vmem:[%s7129_s3 + $0x218] sm:$0xff] }
 0x317   :  { %v3110_v20 = vpop.f32.mrf.mxu1  ;;  %v2366_v21 = vpop.f32.mrf.mxu0 }
 0x318   :  { %4116 = vst [vmem:[#allocation7 + $0x848] sm:$0xff] %v3110_v20  ;;  %3868 = vst [vmem:[#allocation7 + $0x88] sm:$0xff] %v2366_v21  ;;  %v1417_v21 = vld [vmem:[%s7129_s3 + $0x600] sm:$0xff] }
 0x319   :  { %v3114_v44 = vpop.f32.mrf.mxu1  ;;  %4826 = vmatmul.mubr.msk.f32.gmra.mxu1 %vm1481_vm5, %v1406_v42  ;;  %v2370_v3 = vpop.f32.mrf.mxu0  ;;  %4702 = vmatmul.mubr.msk.f32.gmra.mxu0 %vm1481_vm5, %v1282_v43 }
 0x31a   :  { %4117 = vst [vmem:[#allocation7 + $0x850] sm:$0xff] %v3114_v44  ;;  %3406 = vmatprep.mubr.f32.mxu1 %v5225_v61  ;;  %3869 = vst [vmem:[#allocation7 + $0x90] sm:$0xff] %v2370_v3  ;;  %2662 = vmatprep.mubr.f32.mxu0 %v5225_v61  ;;  %v1293_v44 = vld [vmem:[%s7129_s3 + $0x220] sm:$0xff] }
 0x31b   :  { %v3116_v23 = vpop.f32.mrf.mxu1  ;;  %v2372_v26 = vpop.f32.mrf.mxu0 }
 0x31c   :  { %4118 = vst [vmem:[#allocation7 + $0x858] sm:$0xff] %v3116_v23  ;;  %3870 = vst [vmem:[#allocation7 + $0x98] sm:$0xff] %v2372_v26  ;;  %v1418_v26 = vld [vmem:[%s7129_s3 + $0x608] sm:$0xff] }
 0x31d   :  { %v3120_v46 = vpop.f32.mrf.mxu1  ;;  %4827 = vmatmul.mubr.msk.f32.gmra.mxu1 %vm1481_vm5, %v1407_v27  ;;  %v2376_v47 = vpop.f32.mrf.mxu0  ;;  %4703 = vmatmul.mubr.msk.f32.gmra.mxu0 %vm1481_vm5, %v1283_v45 }
 0x31e   :  { %4119 = vst [vmem:[#allocation7 + $0x860] sm:$0xff] %v3120_v46  ;;  %3412 = vmatprep.mubr.f32.mxu1 %v5225_v61  ;;  %3871 = vst [vmem:[#allocation7 + $0xa0] sm:$0xff] %v2376_v47  ;;  %2668 = vmatprep.mubr.f32.mxu0 %v5225_v61  ;;  %v1294_v46 = vld [vmem:[%s7129_s3 + $0x228] sm:$0xff] }
 0x31f   :  { %v3122_v25 = vpop.f32.mrf.mxu1  ;;  %v2378_v49 = vpop.f32.mrf.mxu0 }
 0x320   :  { %4120 = vst [vmem:[#allocation7 + $0x868] sm:$0xff] %v3122_v25  ;;  %3872 = vst [vmem:[#allocation7 + $0xa8] sm:$0xff] %v2378_v49  ;;  %v1419_v49 = vld [vmem:[%s7129_s3 + $0x610] sm:$0xff] }
 0x321   :  { %v3126_v50 = vpop.f32.mrf.mxu1  ;;  %4828 = vmatmul.mubr.msk.f32.gmra.mxu1 %vm1481_vm5, %v1408_v48  ;;  %v2382_v51 = vpop.f32.mrf.mxu0  ;;  %4704 = vmatmul.mubr.msk.f32.gmra.mxu0 %vm1481_vm5, %v1284_v22 }
 0x322   :  { %4121 = vst [vmem:[#allocation7 + $0x870] sm:$0xff] %v3126_v50  ;;  %3418 = vmatprep.mubr.f32.mxu1 %v5225_v61  ;;  %3873 = vst [vmem:[#allocation7 + $0xb0] sm:$0xff] %v2382_v51  ;;  %2674 = vmatprep.mubr.f32.mxu0 %v5225_v61  ;;  %v1295_v50 = vld [vmem:[%s7129_s3 + $0x230] sm:$0xff] }
 0x323   :  { %v3128_v30 = vpop.f32.mrf.mxu1  ;;  %v2384_v33 = vpop.f32.mrf.mxu0 }
 0x324   :  { %4122 = vst [vmem:[#allocation7 + $0x878] sm:$0xff] %v3128_v30  ;;  %3874 = vst [vmem:[#allocation7 + $0xb8] sm:$0xff] %v2384_v33  ;;  %v1420_v33 = vld [vmem:[%s7129_s3 + $0x618] sm:$0xff] }
 0x325   :  { %v3132_v54 = vpop.f32.mrf.mxu1  ;;  %4829 = vmatmul.mubr.msk.f32.gmra.mxu1 %vm1481_vm5, %v1409_v52  ;;  %v2388_v55 = vpop.f32.mrf.mxu0  ;;  %4705 = vmatmul.mubr.msk.f32.gmra.mxu0 %vm1481_vm5, %v1285_v53 }
 0x326   :  { %4123 = vst [vmem:[#allocation7 + $0x880] sm:$0xff] %v3132_v54  ;;  %3424 = vmatprep.mubr.f32.mxu1 %v5225_v61  ;;  %3875 = vst [vmem:[#allocation7 + $0xc0] sm:$0xff] %v2388_v55  ;;  %2680 = vmatprep.mubr.f32.mxu0 %v5225_v61  ;;  %v1296_v54 = vld [vmem:[%s7129_s3 + $0x238] sm:$0xff] }
 0x327   :  { %v3134_v56 = vpop.f32.mrf.mxu1  ;;  %v2390_v57 = vpop.f32.mrf.mxu0 }
 0x328   :  { %4124 = vst [vmem:[#allocation7 + $0x888] sm:$0xff] %v3134_v56  ;;  %3876 = vst [vmem:[#allocation7 + $0xc8] sm:$0xff] %v2390_v57  ;;  %v1421_v57 = vld [vmem:[%s7129_s3 + $0x620] sm:$0xff] }
 0x329   :  { %v3138_v58 = vpop.f32.mrf.mxu1  ;;  %4830 = vmatmul.mubr.msk.f32.gmra.mxu1 %vm1481_vm5, %v1410_v29  ;;  %v2394_v59 = vpop.f32.mrf.mxu0  ;;  %4706 = vmatmul.mubr.msk.f32.gmra.mxu0 %vm1481_vm5, %v1286_v28 }
 0x32a   :  { %4125 = vst [vmem:[#allocation7 + $0x890] sm:$0xff] %v3138_v58  ;;  %3430 = vmatprep.mubr.f32.mxu1 %v5225_v61  ;;  %3877 = vst [vmem:[#allocation7 + $0xd0] sm:$0xff] %v2394_v59  ;;  %2686 = vmatprep.mubr.f32.mxu0 %v5225_v61  ;;  %v1297_v58 = vld [vmem:[%s7129_s3 + $0x240] sm:$0xff] }
 0x32b   :  { %v3140_v63 = vpop.f32.mrf.mxu1  ;;  %v2396_v0 = vpop.f32.mrf.mxu0 }
 0x32c   :  { %4126 = vst [vmem:[#allocation7 + $0x898] sm:$0xff] %v3140_v63  ;;  %3878 = vst [vmem:[#allocation7 + $0xd8] sm:$0xff] %v2396_v0  ;;  %v1422_v0 = vld [vmem:[%s7129_s3 + $0x628] sm:$0xff] }
 0x32d   :  { %v3144_v1 = vpop.f32.mrf.mxu1  ;;  %4831 = vmatmul.mubr.msk.f32.gmra.mxu1 %vm1481_vm5, %v1411_v60  ;;  %v2400_v2 = vpop.f32.mrf.mxu0  ;;  %4707 = vmatmul.mubr.msk.f32.gmra.mxu0 %vm1481_vm5, %v1287_v62 }
 0x32e   :  { %4127 = vst [vmem:[#allocation7 + $0x8a0] sm:$0xff] %v3144_v1  ;;  %3436 = vmatprep.mubr.f32.mxu1 %v5225_v61  ;;  %3879 = vst [vmem:[#allocation7 + $0xe0] sm:$0xff] %v2400_v2  ;;  %2692 = vmatprep.mubr.f32.mxu0 %v5225_v61  ;;  %v1298_v1 = vld [vmem:[%s7129_s3 + $0x248] sm:$0xff] }
 0x32f   :  { %v3146_v6 = vpop.f32.mrf.mxu1  ;;  %v2402_v7 = vpop.f32.mrf.mxu0 }
 0x330   :  { %4128 = vst [vmem:[#allocation7 + $0x8a8] sm:$0xff] %v3146_v6  ;;  %3880 = vst [vmem:[#allocation7 + $0xe8] sm:$0xff] %v2402_v7  ;;  %v1423_v7 = vld [vmem:[%s7129_s3 + $0x630] sm:$0xff] }
 0x331   :  { %v3150_v8 = vpop.f32.mrf.mxu1  ;;  %4832 = vmatmul.mubr.msk.f32.gmra.mxu1 %vm1481_vm5, %v1412_v4  ;;  %v2406_v9 = vpop.f32.mrf.mxu0  ;;  %4708 = vmatmul.mubr.msk.f32.gmra.mxu0 %vm1481_vm5, %v1288_v5 }
 0x332   :  { %4129 = vst [vmem:[#allocation7 + $0x8b0] sm:$0xff] %v3150_v8  ;;  %3442 = vmatprep.mubr.f32.mxu1 %v5225_v61  ;;  %3881 = vst [vmem:[#allocation7 + $0xf0] sm:$0xff] %v2406_v9  ;;  %2698 = vmatprep.mubr.f32.mxu0 %v5225_v61  ;;  %v1299_v8 = vld [vmem:[%s7129_s3 + $0x250] sm:$0xff] }
 0x333   :  { %v3152_v15 = vpop.f32.mrf.mxu1  ;;  %v2408_v32 = vpop.f32.mrf.mxu0 }
 0x334   :  { %4130 = vst [vmem:[#allocation7 + $0x8b8] sm:$0xff] %v3152_v15  ;;  %3882 = vst [vmem:[#allocation7 + $0xf8] sm:$0xff] %v2408_v32  ;;  %v1424_v32 = vld [vmem:[%s7129_s3 + $0x638] sm:$0xff] }
 0x335   :  { %v3156_v10 = vpop.f32.mrf.mxu1  ;;  %4833 = vmatmul.mubr.msk.f32.gmra.mxu1 %vm1481_vm5, %v1413_v11  ;;  %v2412_v13 = vpop.f32.mrf.mxu0  ;;  %4709 = vmatmul.mubr.msk.f32.gmra.mxu0 %vm1481_vm5, %v1289_v14 }
 0x336   :  { %4131 = vst [vmem:[#allocation7 + $0x8c0] sm:$0xff] %v3156_v10  ;;  %3448 = vmatprep.mubr.f32.mxu1 %v5225_v61  ;;  %3883 = vst [vmem:[#allocation7 + $0x100] sm:$0xff] %v2412_v13  ;;  %2704 = vmatprep.mubr.f32.mxu0 %v5225_v61  ;;  %v1300_v10 = vld [vmem:[%s7129_s3 + $0x258] sm:$0xff] }
 0x337   :  { %v3158_v36 = vpop.f32.mrf.mxu1  ;;  %v2414_v18 = vpop.f32.mrf.mxu0 }
 0x338   :  { %4132 = vst [vmem:[#allocation7 + $0x8c8] sm:$0xff] %v3158_v36  ;;  %3884 = vst [vmem:[#allocation7 + $0x108] sm:$0xff] %v2414_v18  ;;  %v1425_v18 = vld [vmem:[%s7129_s3 + $0x640] sm:$0xff] }
 0x339   :  { %v3162_v16 = vpop.f32.mrf.mxu1  ;;  %4834 = vmatmul.mubr.msk.f32.gmra.mxu1 %vm1481_vm5, %v1414_v31  ;;  %v2418_v37 = vpop.f32.mrf.mxu0  ;;  %4710 = vmatmul.mubr.msk.f32.gmra.mxu0 %vm1481_vm5, %v1290_v35 }
 0x33a   :  { %4133 = vst [vmem:[#allocation7 + $0x8d0] sm:$0xff] %v3162_v16  ;;  %3454 = vmatprep.mubr.f32.mxu1 %v5225_v61  ;;  %3885 = vst [vmem:[#allocation7 + $0x110] sm:$0xff] %v2418_v37  ;;  %2710 = vmatprep.mubr.f32.mxu0 %v5225_v61  ;;  %v1301_v16 = vld [vmem:[%s7129_s3 + $0x260] sm:$0xff] }
 0x33b   :  { %v3164_v17 = vpop.f32.mrf.mxu1  ;;  %v2420_v38 = vpop.f32.mrf.mxu0 }
 0x33c   :  { %4134 = vst [vmem:[#allocation7 + $0x8d8] sm:$0xff] %v3164_v17  ;;  %3886 = vst [vmem:[#allocation7 + $0x118] sm:$0xff] %v2420_v38  ;;  %v1426_v38 = vld [vmem:[%s7129_s3 + $0x648] sm:$0xff] }
 0x33d   :  { %v3168_v39 = vpop.f32.mrf.mxu1  ;;  %4835 = vmatmul.mubr.msk.f32.gmra.mxu1 %vm1481_vm5, %v1415_v34  ;;  %v2424_v40 = vpop.f32.mrf.mxu0  ;;  %4711 = vmatmul.mubr.msk.f32.gmra.mxu0 %vm1481_vm5, %v1291_v12 }
 0x33e   :  { %4135 = vst [vmem:[#allocation7 + $0x8e0] sm:$0xff] %v3168_v39  ;;  %3460 = vmatprep.mubr.f32.mxu1 %v5225_v61  ;;  %3887 = vst [vmem:[#allocation7 + $0x120] sm:$0xff] %v2424_v40  ;;  %2716 = vmatprep.mubr.f32.mxu0 %v5225_v61  ;;  %v1302_v39 = vld [vmem:[%s7129_s3 + $0x268] sm:$0xff] }
 0x33f   :  { %v3170_v41 = vpop.f32.mrf.mxu1  ;;  %v2426_v42 = vpop.f32.mrf.mxu0 }
 0x340   :  { %4136 = vst [vmem:[#allocation7 + $0x8e8] sm:$0xff] %v3170_v41  ;;  %3888 = vst [vmem:[#allocation7 + $0x128] sm:$0xff] %v2426_v42  ;;  %v1427_v42 = vld [vmem:[%s7129_s3 + $0x650] sm:$0xff] }
 0x341   :  { %v3174_v43 = vpop.f32.mrf.mxu1  ;;  %4836 = vmatmul.mubr.msk.f32.gmra.mxu1 %vm1481_vm5, %v1416_v19  ;;  %v2430_v20 = vpop.f32.mrf.mxu0  ;;  %4712 = vmatmul.mubr.msk.f32.gmra.mxu0 %vm1481_vm5, %v1292_v24 }
 0x342   :  { %4137 = vst [vmem:[#allocation7 + $0x8f0] sm:$0xff] %v3174_v43  ;;  %3466 = vmatprep.mubr.f32.mxu1 %v5225_v61  ;;  %3889 = vst [vmem:[#allocation7 + $0x130] sm:$0xff] %v2430_v20  ;;  %2722 = vmatprep.mubr.f32.mxu0 %v5225_v61  ;;  %v1303_v43 = vld [vmem:[%s7129_s3 + $0x270] sm:$0xff] }
 0x343   :  { %v3176_v3 = vpop.f32.mrf.mxu1  ;;  %v2432_v27 = vpop.f32.mrf.mxu0 }
 0x344   :  { %4138 = vst [vmem:[#allocation7 + $0x8f8] sm:$0xff] %v3176_v3  ;;  %3890 = vst [vmem:[#allocation7 + $0x138] sm:$0xff] %v2432_v27  ;;  %v1428_v27 = vld [vmem:[%s7129_s3 + $0x658] sm:$0xff] }
 0x345   :  { %v3180_v45 = vpop.f32.mrf.mxu1  ;;  %4837 = vmatmul.mubr.msk.f32.gmra.mxu1 %vm1481_vm5, %v1417_v21  ;;  %v2436_v23 = vpop.f32.mrf.mxu0  ;;  %4713 = vmatmul.mubr.msk.f32.gmra.mxu0 %vm1481_vm5, %v1293_v44 }
 0x346   :  { %4139 = vst [vmem:[#allocation7 + $0x900] sm:$0xff] %v3180_v45  ;;  %3472 = vmatprep.mubr.f32.mxu1 %v5225_v61  ;;  %3891 = vst [vmem:[#allocation7 + $0x140] sm:$0xff] %v2436_v23  ;;  %2728 = vmatprep.mubr.f32.mxu0 %v5225_v61  ;;  %v1304_v45 = vld [vmem:[%s7129_s3 + $0x278] sm:$0xff] }
 0x347   :  { %v3182_v47 = vpop.f32.mrf.mxu1  ;;  %v2438_v48 = vpop.f32.mrf.mxu0 }
 0x348   :  { %4140 = vst [vmem:[#allocation7 + $0x908] sm:$0xff] %v3182_v47  ;;  %3892 = vst [vmem:[#allocation7 + $0x148] sm:$0xff] %v2438_v48  ;;  %v1429_v48 = vld [vmem:[%s7129_s3 + $0x660] sm:$0xff] }
 0x349   :  { %v3186_v22 = vpop.f32.mrf.mxu1  ;;  %4838 = vmatmul.mubr.msk.f32.gmra.mxu1 %vm1481_vm5, %v1418_v26  ;;  %v2442_v25 = vpop.f32.mrf.mxu0  ;;  %4714 = vmatmul.mubr.msk.f32.gmra.mxu0 %vm1481_vm5, %v1294_v46 }
 0x34a   :  { %4141 = vst [vmem:[#allocation7 + $0x910] sm:$0xff] %v3186_v22  ;;  %3478 = vmatprep.mubr.f32.mxu1 %v5225_v61  ;;  %3893 = vst [vmem:[#allocation7 + $0x150] sm:$0xff] %v2442_v25  ;;  %2734 = vmatprep.mubr.f32.mxu0 %v5225_v61  ;;  %v1305_v22 = vld [vmem:[%s7129_s3 + $0x280] sm:$0xff] }
 0x34b   :  { %v3188_v51 = vpop.f32.mrf.mxu1  ;;  %v2444_v52 = vpop.f32.mrf.mxu0 }
 0x34c   :  { %4142 = vst [vmem:[#allocation7 + $0x918] sm:$0xff] %v3188_v51  ;;  %3894 = vst [vmem:[#allocation7 + $0x158] sm:$0xff] %v2444_v52  ;;  %v1430_v52 = vld [vmem:[%s7129_s3 + $0x668] sm:$0xff] }
 0x34d   :  { %v3192_v53 = vpop.f32.mrf.mxu1  ;;  %4839 = vmatmul.mubr.msk.f32.gmra.mxu1 %vm1481_vm5, %v1419_v49  ;;  %v2448_v30 = vpop.f32.mrf.mxu0  ;;  %4715 = vmatmul.mubr.msk.f32.gmra.mxu0 %vm1481_vm5, %v1295_v50 }
 0x34e   :  { %4143 = vst [vmem:[#allocation7 + $0x920] sm:$0xff] %v3192_v53  ;;  %3484 = vmatprep.mubr.f32.mxu1 %v5225_v61  ;;  %3895 = vst [vmem:[#allocation7 + $0x160] sm:$0xff] %v2448_v30  ;;  %2740 = vmatprep.mubr.f32.mxu0 %v5225_v61  ;;  %v1306_v53 = vld [vmem:[%s7129_s3 + $0x288] sm:$0xff] }
 0x34f   :  { %v3194_v55 = vpop.f32.mrf.mxu1  ;;  %v2450_v29 = vpop.f32.mrf.mxu0 }
 0x350   :  { %4144 = vst [vmem:[#allocation7 + $0x928] sm:$0xff] %v3194_v55  ;;  %3896 = vst [vmem:[#allocation7 + $0x168] sm:$0xff] %v2450_v29  ;;  %v1431_v29 = vld [vmem:[%s7129_s3 + $0x670] sm:$0xff] }
 0x351   :  { %v3198_v28 = vpop.f32.mrf.mxu1  ;;  %4840 = vmatmul.mubr.msk.f32.gmra.mxu1 %vm1481_vm5, %v1420_v33  ;;  %v2454_v56 = vpop.f32.mrf.mxu0  ;;  %4716 = vmatmul.mubr.msk.f32.gmra.mxu0 %vm1481_vm5, %v1296_v54 }
 0x352   :  { %4145 = vst [vmem:[#allocation7 + $0x930] sm:$0xff] %v3198_v28  ;;  %3490 = vmatprep.mubr.f32.mxu1 %v5225_v61  ;;  %3897 = vst [vmem:[#allocation7 + $0x170] sm:$0xff] %v2454_v56  ;;  %2746 = vmatprep.mubr.f32.mxu0 %v5225_v61  ;;  %v1307_v28 = vld [vmem:[%s7129_s3 + $0x290] sm:$0xff] }
 0x353   :  { %v3200_v59 = vpop.f32.mrf.mxu1  ;;  %v2456_v60 = vpop.f32.mrf.mxu0 }
 0x354   :  { %4146 = vst [vmem:[#allocation7 + $0x938] sm:$0xff] %v3200_v59  ;;  %3898 = vst [vmem:[#allocation7 + $0x178] sm:$0xff] %v2456_v60  ;;  %v1432_v60 = vld [vmem:[%s7129_s3 + $0x678] sm:$0xff] }
 0x355   :  { %v3204_v62 = vpop.f32.mrf.mxu1  ;;  %4841 = vmatmul.mubr.msk.f32.gmra.mxu1 %vm1481_vm5, %v1421_v57  ;;  %v2460_v63 = vpop.f32.mrf.mxu0  ;;  %4717 = vmatmul.mubr.msk.f32.gmra.mxu0 %vm1481_vm5, %v1297_v58 }
 0x356   :  { %4147 = vst [vmem:[#allocation7 + $0x940] sm:$0xff] %v3204_v62  ;;  %3496 = vmatprep.mubr.f32.mxu1 %v5225_v61  ;;  %3899 = vst [vmem:[#allocation7 + $0x180] sm:$0xff] %v2460_v63  ;;  %2752 = vmatprep.mubr.f32.mxu0 %v5225_v61  ;;  %v1308_v62 = vld [vmem:[%s7129_s3 + $0x298] sm:$0xff] }
 0x357   :  { %v3206_v2 = vpop.f32.mrf.mxu1  ;;  %v2462_v4 = vpop.f32.mrf.mxu0 }
 0x358   :  { %4148 = vst [vmem:[#allocation7 + $0x948] sm:$0xff] %v3206_v2  ;;  %3900 = vst [vmem:[#allocation7 + $0x188] sm:$0xff] %v2462_v4  ;;  %v1433_v4 = vld [vmem:[%s7129_s3 + $0x680] sm:$0xff] }
 0x359   :  { %v3210_v5 = vpop.f32.mrf.mxu1  ;;  %4842 = vmatmul.mubr.msk.f32.gmra.mxu1 %vm1481_vm5, %v1422_v0  ;;  %v2466_v6 = vpop.f32.mrf.mxu0  ;;  %4718 = vmatmul.mubr.msk.f32.gmra.mxu0 %vm1481_vm5, %v1298_v1 }
 0x35a   :  { %4149 = vst [vmem:[#allocation7 + $0x950] sm:$0xff] %v3210_v5  ;;  %3502 = vmatprep.mubr.f32.mxu1 %v5225_v61  ;;  %3901 = vst [vmem:[#allocation7 + $0x190] sm:$0xff] %v2466_v6  ;;  %2758 = vmatprep.mubr.f32.mxu0 %v5225_v61  ;;  %v1309_v5 = vld [vmem:[%s7129_s3 + $0x2a0] sm:$0xff] }
 0x35b   :  { %v3212_v9 = vpop.f32.mrf.mxu1  ;;  %v2468_v11 = vpop.f32.mrf.mxu0 }
 0x35c   :  { %4150 = vst [vmem:[#allocation7 + $0x958] sm:$0xff] %v3212_v9  ;;  %3902 = vst [vmem:[#allocation7 + $0x198] sm:$0xff] %v2468_v11  ;;  %v1434_v11 = vld [vmem:[%s7129_s3 + $0x688] sm:$0xff] }
 0x35d   :  { %v3216_v14 = vpop.f32.mrf.mxu1  ;;  %4843 = vmatmul.mubr.msk.f32.gmra.mxu1 %vm1481_vm5, %v1423_v7  ;;  %v2472_v15 = vpop.f32.mrf.mxu0  ;;  %4719 = vmatmul.mubr.msk.f32.gmra.mxu0 %vm1481_vm5, %v1299_v8 }
 0x35e   :  { %4151 = vst [vmem:[#allocation7 + $0x960] sm:$0xff] %v3216_v14  ;;  %3508 = vmatprep.mubr.f32.mxu1 %v5225_v61  ;;  %3903 = vst [vmem:[#allocation7 + $0x1a0] sm:$0xff] %v2472_v15  ;;  %2764 = vmatprep.mubr.f32.mxu0 %v5225_v61  ;;  %v1310_v14 = vld [vmem:[%s7129_s3 + $0x2a8] sm:$0xff] }
 0x35f   :  { %v3218_v13 = vpop.f32.mrf.mxu1  ;;  %v2474_v31 = vpop.f32.mrf.mxu0 }
 0x360   :  { %4152 = vst [vmem:[#allocation7 + $0x968] sm:$0xff] %v3218_v13  ;;  %3904 = vst [vmem:[#allocation7 + $0x1a8] sm:$0xff] %v2474_v31  ;;  %v1435_v31 = vld [vmem:[%s7129_s3 + $0x690] sm:$0xff] }
 0x361   :  { %v3222_v35 = vpop.f32.mrf.mxu1  ;;  %4844 = vmatmul.mubr.msk.f32.gmra.mxu1 %vm1481_vm5, %v1424_v32  ;;  %v2478_v36 = vpop.f32.mrf.mxu0  ;;  %4720 = vmatmul.mubr.msk.f32.gmra.mxu0 %vm1481_vm5, %v1300_v10 }
 0x362   :  { %4153 = vst [vmem:[#allocation7 + $0x970] sm:$0xff] %v3222_v35  ;;  %3514 = vmatprep.mubr.f32.mxu1 %v5225_v61  ;;  %3905 = vst [vmem:[#allocation7 + $0x1b0] sm:$0xff] %v2478_v36  ;;  %2770 = vmatprep.mubr.f32.mxu0 %v5225_v61  ;;  %v1311_v35 = vld [vmem:[%s7129_s3 + $0x2b0] sm:$0xff] }
 0x363   :  { %v3224_v37 = vpop.f32.mrf.mxu1  ;;  %v2480_v34 = vpop.f32.mrf.mxu0 }
 0x364   :  { %4154 = vst [vmem:[#allocation7 + $0x978] sm:$0xff] %v3224_v37  ;;  %3906 = vst [vmem:[#allocation7 + $0x1b8] sm:$0xff] %v2480_v34  ;;  %v1436_v34 = vld [vmem:[%s7129_s3 + $0x698] sm:$0xff] }
 0x365   :  { %v3228_v12 = vpop.f32.mrf.mxu1  ;;  %4845 = vmatmul.mubr.msk.f32.gmra.mxu1 %vm1481_vm5, %v1425_v18  ;;  %v2484_v17 = vpop.f32.mrf.mxu0  ;;  %4721 = vmatmul.mubr.msk.f32.gmra.mxu0 %vm1481_vm5, %v1301_v16 }
 0x366   :  { %4155 = vst [vmem:[#allocation7 + $0x980] sm:$0xff] %v3228_v12  ;;  %3520 = vmatprep.mubr.f32.mxu1 %v5225_v61  ;;  %3907 = vst [vmem:[#allocation7 + $0x1c0] sm:$0xff] %v2484_v17  ;;  %2776 = vmatprep.mubr.f32.mxu0 %v5225_v61  ;;  %v1312_v12 = vld [vmem:[%s7129_s3 + $0x2b8] sm:$0xff] }
 0x367   :  { %v3230_v40 = vpop.f32.mrf.mxu1  ;;  %v2486_v19 = vpop.f32.mrf.mxu0 }
 0x368   :  { %4156 = vst [vmem:[#allocation7 + $0x988] sm:$0xff] %v3230_v40  ;;  %3908 = vst [vmem:[#allocation7 + $0x1c8] sm:$0xff] %v2486_v19  ;;  %v1437_v19 = vld [vmem:[%s7129_s3 + $0x6a0] sm:$0xff] }
 0x369   :  { %v3234_v24 = vpop.f32.mrf.mxu1  ;;  %4846 = vmatmul.mubr.msk.f32.gmra.mxu1 %vm1481_vm5, %v1426_v38  ;;  %v2490_v41 = vpop.f32.mrf.mxu0  ;;  %4722 = vmatmul.mubr.msk.f32.gmra.mxu0 %vm1481_vm5, %v1302_v39 }
 0x36a   :  { %4157 = vst [vmem:[#allocation7 + $0x990] sm:$0xff] %v3234_v24  ;;  %3526 = vmatprep.mubr.f32.mxu1 %v5225_v61  ;;  %3909 = vst [vmem:[#allocation7 + $0x1d0] sm:$0xff] %v2490_v41  ;;  %2782 = vmatprep.mubr.f32.mxu0 %v5225_v61  ;;  %v1313_v24 = vld [vmem:[%s7129_s3 + $0x2c0] sm:$0xff] }
 0x36b   :  { %v3236_v20 = vpop.f32.mrf.mxu1  ;;  %v2492_v21 = vpop.f32.mrf.mxu0 }
 0x36c   :  { %4158 = vst [vmem:[#allocation7 + $0x998] sm:$0xff] %v3236_v20  ;;  %3910 = vst [vmem:[#allocation7 + $0x1d8] sm:$0xff] %v2492_v21  ;;  %v1438_v21 = vld [vmem:[%s7129_s3 + $0x6a8] sm:$0xff] }
 0x36d   :  { %v3240_v44 = vpop.f32.mrf.mxu1  ;;  %4847 = vmatmul.mubr.msk.f32.gmra.mxu1 %vm1481_vm5, %v1427_v42  ;;  %v2496_v3 = vpop.f32.mrf.mxu0  ;;  %4723 = vmatmul.mubr.msk.f32.gmra.mxu0 %vm1481_vm5, %v1303_v43 }
 0x36e   :  { %4159 = vst [vmem:[#allocation7 + $0x9a0] sm:$0xff] %v3240_v44  ;;  %3532 = vmatprep.mubr.f32.mxu1 %v5225_v61  ;;  %3911 = vst [vmem:[#allocation7 + $0x1e0] sm:$0xff] %v2496_v3  ;;  %2788 = vmatprep.mubr.f32.mxu0 %v5225_v61  ;;  %v1314_v44 = vld [vmem:[%s7129_s3 + $0x2c8] sm:$0xff] }
 0x36f   :  { %v3242_v23 = vpop.f32.mrf.mxu1  ;;  %v2498_v26 = vpop.f32.mrf.mxu0 }
 0x370   :  { %4160 = vst [vmem:[#allocation7 + $0x9a8] sm:$0xff] %v3242_v23  ;;  %3912 = vst [vmem:[#allocation7 + $0x1e8] sm:$0xff] %v2498_v26  ;;  %v1439_v26 = vld [vmem:[%s7129_s3 + $0x6b0] sm:$0xff] }
 0x371   :  { %v3246_v46 = vpop.f32.mrf.mxu1  ;;  %4848 = vmatmul.mubr.msk.f32.gmra.mxu1 %vm1481_vm5, %v1428_v27  ;;  %v2502_v47 = vpop.f32.mrf.mxu0  ;;  %4724 = vmatmul.mubr.msk.f32.gmra.mxu0 %vm1481_vm5, %v1304_v45 }
 0x372   :  { %4161 = vst [vmem:[#allocation7 + $0x9b0] sm:$0xff] %v3246_v46  ;;  %3538 = vmatprep.mubr.f32.mxu1 %v5225_v61  ;;  %3913 = vst [vmem:[#allocation7 + $0x1f0] sm:$0xff] %v2502_v47  ;;  %2794 = vmatprep.mubr.f32.mxu0 %v5225_v61  ;;  %v1315_v46 = vld [vmem:[%s7129_s3 + $0x2d0] sm:$0xff] }
 0x373   :  { %v3248_v25 = vpop.f32.mrf.mxu1  ;;  %v2504_v49 = vpop.f32.mrf.mxu0 }
 0x374   :  { %4162 = vst [vmem:[#allocation7 + $0x9b8] sm:$0xff] %v3248_v25  ;;  %3914 = vst [vmem:[#allocation7 + $0x1f8] sm:$0xff] %v2504_v49  ;;  %v1440_v49 = vld [vmem:[%s7129_s3 + $0x6b8] sm:$0xff] }
 0x375   :  { %v3252_v50 = vpop.f32.mrf.mxu1  ;;  %4849 = vmatmul.mubr.msk.f32.gmra.mxu1 %vm1481_vm5, %v1429_v48  ;;  %v2508_v51 = vpop.f32.mrf.mxu0  ;;  %4725 = vmatmul.mubr.msk.f32.gmra.mxu0 %vm1481_vm5, %v1305_v22 }
 0x376   :  { %4163 = vst [vmem:[#allocation7 + $0x9c0] sm:$0xff] %v3252_v50  ;;  %3544 = vmatprep.mubr.f32.mxu1 %v5225_v61  ;;  %3915 = vst [vmem:[#allocation7 + $0x200] sm:$0xff] %v2508_v51  ;;  %2800 = vmatprep.mubr.f32.mxu0 %v5225_v61  ;;  %v1316_v50 = vld [vmem:[%s7129_s3 + $0x2d8] sm:$0xff] }
 0x377   :  { %v3254_v30 = vpop.f32.mrf.mxu1  ;;  %v2510_v33 = vpop.f32.mrf.mxu0 }
 0x378   :  { %4164 = vst [vmem:[#allocation7 + $0x9c8] sm:$0xff] %v3254_v30  ;;  %3916 = vst [vmem:[#allocation7 + $0x208] sm:$0xff] %v2510_v33  ;;  %v1441_v33 = vld [vmem:[%s7129_s3 + $0x6c0] sm:$0xff] }
 0x379   :  { %v3258_v54 = vpop.f32.mrf.mxu1  ;;  %4850 = vmatmul.mubr.msk.f32.gmra.mxu1 %vm1481_vm5, %v1430_v52  ;;  %v2514_v55 = vpop.f32.mrf.mxu0  ;;  %4726 = vmatmul.mubr.msk.f32.gmra.mxu0 %vm1481_vm5, %v1306_v53 }
 0x37a   :  { %4165 = vst [vmem:[#allocation7 + $0x9d0] sm:$0xff] %v3258_v54  ;;  %3550 = vmatprep.mubr.f32.mxu1 %v5225_v61  ;;  %3917 = vst [vmem:[#allocation7 + $0x210] sm:$0xff] %v2514_v55  ;;  %2806 = vmatprep.mubr.f32.mxu0 %v5225_v61  ;;  %v1317_v54 = vld [vmem:[%s7129_s3 + $0x2e0] sm:$0xff] }
 0x37b   :  { %v3260_v56 = vpop.f32.mrf.mxu1  ;;  %v2516_v57 = vpop.f32.mrf.mxu0 }
 0x37c   :  { %4166 = vst [vmem:[#allocation7 + $0x9d8] sm:$0xff] %v3260_v56  ;;  %3918 = vst [vmem:[#allocation7 + $0x218] sm:$0xff] %v2516_v57  ;;  %v1442_v57 = vld [vmem:[%s7129_s3 + $0x6c8] sm:$0xff] }
 0x37d   :  { %v3264_v58 = vpop.f32.mrf.mxu1  ;;  %4851 = vmatmul.mubr.msk.f32.gmra.mxu1 %vm1481_vm5, %v1431_v29  ;;  %v2520_v59 = vpop.f32.mrf.mxu0  ;;  %4727 = vmatmul.mubr.msk.f32.gmra.mxu0 %vm1481_vm5, %v1307_v28 }
 0x37e   :  { %4167 = vst [vmem:[#allocation7 + $0x9e0] sm:$0xff] %v3264_v58  ;;  %3556 = vmatprep.mubr.f32.mxu1 %v5225_v61  ;;  %3919 = vst [vmem:[#allocation7 + $0x220] sm:$0xff] %v2520_v59  ;;  %2812 = vmatprep.mubr.f32.mxu0 %v5225_v61  ;;  %v1318_v58 = vld [vmem:[%s7129_s3 + $0x2e8] sm:$0xff] }
 0x37f   :  { %v3266_v63 = vpop.f32.mrf.mxu1  ;;  %v2522_v0 = vpop.f32.mrf.mxu0 }
 0x380   :  { %4168 = vst [vmem:[#allocation7 + $0x9e8] sm:$0xff] %v3266_v63  ;;  %3920 = vst [vmem:[#allocation7 + $0x228] sm:$0xff] %v2522_v0  ;;  %v1443_v0 = vld [vmem:[%s7129_s3 + $0x6d0] sm:$0xff] }
 0x381   :  { %v3270_v1 = vpop.f32.mrf.mxu1  ;;  %4852 = vmatmul.mubr.msk.f32.gmra.mxu1 %vm1481_vm5, %v1432_v60  ;;  %v2526_v2 = vpop.f32.mrf.mxu0  ;;  %4728 = vmatmul.mubr.msk.f32.gmra.mxu0 %vm1481_vm5, %v1308_v62 }
 0x382   :  { %4169 = vst [vmem:[#allocation7 + $0x9f0] sm:$0xff] %v3270_v1  ;;  %3562 = vmatprep.mubr.f32.mxu1 %v5225_v61  ;;  %3921 = vst [vmem:[#allocation7 + $0x230] sm:$0xff] %v2526_v2  ;;  %2818 = vmatprep.mubr.f32.mxu0 %v5225_v61  ;;  %v1319_v1 = vld [vmem:[%s7129_s3 + $0x2f0] sm:$0xff] }
 0x383   :  { %v3272_v6 = vpop.f32.mrf.mxu1  ;;  %v2528_v7 = vpop.f32.mrf.mxu0 }
 0x384   :  { %4170 = vst [vmem:[#allocation7 + $0x9f8] sm:$0xff] %v3272_v6  ;;  %3922 = vst [vmem:[#allocation7 + $0x238] sm:$0xff] %v2528_v7  ;;  %v1444_v7 = vld [vmem:[%s7129_s3 + $0x6d8] sm:$0xff] }
 0x385   :  { %v3276_v8 = vpop.f32.mrf.mxu1  ;;  %4853 = vmatmul.mubr.msk.f32.gmra.mxu1 %vm1481_vm5, %v1433_v4  ;;  %v2532_v9 = vpop.f32.mrf.mxu0  ;;  %4729 = vmatmul.mubr.msk.f32.gmra.mxu0 %vm1481_vm5, %v1309_v5 }
 0x386   :  { %4171 = vst [vmem:[#allocation7 + $0xa00] sm:$0xff] %v3276_v8  ;;  %3568 = vmatprep.mubr.f32.mxu1 %v5225_v61  ;;  %3923 = vst [vmem:[#allocation7 + $0x240] sm:$0xff] %v2532_v9  ;;  %2824 = vmatprep.mubr.f32.mxu0 %v5225_v61  ;;  %v1320_v8 = vld [vmem:[%s7129_s3 + $0x2f8] sm:$0xff] }
 0x387   :  { %v3278_v15 = vpop.f32.mrf.mxu1  ;;  %v2534_v32 = vpop.f32.mrf.mxu0 }
 0x388   :  { %4172 = vst [vmem:[#allocation7 + $0xa08] sm:$0xff] %v3278_v15  ;;  %3924 = vst [vmem:[#allocation7 + $0x248] sm:$0xff] %v2534_v32  ;;  %v1445_v32 = vld [vmem:[%s7129_s3 + $0x6e0] sm:$0xff] }
 0x389   :  { %v3282_v10 = vpop.f32.mrf.mxu1  ;;  %4854 = vmatmul.mubr.msk.f32.gmra.mxu1 %vm1481_vm5, %v1434_v11  ;;  %v2538_v13 = vpop.f32.mrf.mxu0  ;;  %4730 = vmatmul.mubr.msk.f32.gmra.mxu0 %vm1481_vm5, %v1310_v14 }
 0x38a   :  { %4173 = vst [vmem:[#allocation7 + $0xa10] sm:$0xff] %v3282_v10  ;;  %3574 = vmatprep.mubr.f32.mxu1 %v5225_v61  ;;  %3925 = vst [vmem:[#allocation7 + $0x250] sm:$0xff] %v2538_v13  ;;  %2830 = vmatprep.mubr.f32.mxu0 %v5225_v61  ;;  %v1321_v10 = vld [vmem:[%s7129_s3 + $0x300] sm:$0xff] }
 0x38b   :  { %v3284_v36 = vpop.f32.mrf.mxu1  ;;  %v2540_v18 = vpop.f32.mrf.mxu0 }
 0x38c   :  { %4174 = vst [vmem:[#allocation7 + $0xa18] sm:$0xff] %v3284_v36  ;;  %3926 = vst [vmem:[#allocation7 + $0x258] sm:$0xff] %v2540_v18  ;;  %v1446_v18 = vld [vmem:[%s7129_s3 + $0x6e8] sm:$0xff] }
 0x38d   :  { %v3288_v16 = vpop.f32.mrf.mxu1  ;;  %4855 = vmatmul.mubr.msk.f32.gmra.mxu1 %vm1481_vm5, %v1435_v31  ;;  %v2544_v37 = vpop.f32.mrf.mxu0  ;;  %4731 = vmatmul.mubr.msk.f32.gmra.mxu0 %vm1481_vm5, %v1311_v35 }
 0x38e   :  { %4175 = vst [vmem:[#allocation7 + $0xa20] sm:$0xff] %v3288_v16  ;;  %3580 = vmatprep.mubr.f32.mxu1 %v5225_v61  ;;  %3927 = vst [vmem:[#allocation7 + $0x260] sm:$0xff] %v2544_v37  ;;  %2836 = vmatprep.mubr.f32.mxu0 %v5225_v61  ;;  %v1322_v16 = vld [vmem:[%s7129_s3 + $0x308] sm:$0xff] }
 0x38f   :  { %v3290_v17 = vpop.f32.mrf.mxu1  ;;  %v2546_v38 = vpop.f32.mrf.mxu0 }
 0x390   :  { %4176 = vst [vmem:[#allocation7 + $0xa28] sm:$0xff] %v3290_v17  ;;  %3928 = vst [vmem:[#allocation7 + $0x268] sm:$0xff] %v2546_v38  ;;  %v1447_v38 = vld [vmem:[%s7129_s3 + $0x6f0] sm:$0xff] }
 0x391   :  { %v3294_v39 = vpop.f32.mrf.mxu1  ;;  %4856 = vmatmul.mubr.msk.f32.gmra.mxu1 %vm1481_vm5, %v1436_v34  ;;  %v2550_v40 = vpop.f32.mrf.mxu0  ;;  %4732 = vmatmul.mubr.msk.f32.gmra.mxu0 %vm1481_vm5, %v1312_v12 }
 0x392   :  { %4177 = vst [vmem:[#allocation7 + $0xa30] sm:$0xff] %v3294_v39  ;;  %3586 = vmatprep.mubr.f32.mxu1 %v5225_v61  ;;  %3929 = vst [vmem:[#allocation7 + $0x270] sm:$0xff] %v2550_v40  ;;  %2842 = vmatprep.mubr.f32.mxu0 %v5225_v61  ;;  %v1323_v39 = vld [vmem:[%s7129_s3 + $0x310] sm:$0xff] }
 0x393   :  { %v3296_v41 = vpop.f32.mrf.mxu1  ;;  %v2552_v42 = vpop.f32.mrf.mxu0 }
 0x394   :  { %4178 = vst [vmem:[#allocation7 + $0xa38] sm:$0xff] %v3296_v41  ;;  %3930 = vst [vmem:[#allocation7 + $0x278] sm:$0xff] %v2552_v42  ;;  %v1448_v42 = vld [vmem:[%s7129_s3 + $0x6f8] sm:$0xff] }
 0x395   :  { %v3300_v43 = vpop.f32.mrf.mxu1  ;;  %4857 = vmatmul.mubr.msk.f32.gmra.mxu1 %vm1481_vm5, %v1437_v19  ;;  %v2556_v20 = vpop.f32.mrf.mxu0  ;;  %4733 = vmatmul.mubr.msk.f32.gmra.mxu0 %vm1481_vm5, %v1313_v24 }
 0x396   :  { %4179 = vst [vmem:[#allocation7 + $0xa40] sm:$0xff] %v3300_v43  ;;  %3592 = vmatprep.mubr.f32.mxu1 %v5225_v61  ;;  %3931 = vst [vmem:[#allocation7 + $0x280] sm:$0xff] %v2556_v20  ;;  %2848 = vmatprep.mubr.f32.mxu0 %v5225_v61  ;;  %v1324_v43 = vld [vmem:[%s7129_s3 + $0x318] sm:$0xff] }
 0x397   :  { %v3302_v3 = vpop.f32.mrf.mxu1  ;;  %v2558_v27 = vpop.f32.mrf.mxu0 }
 0x398   :  { %4180 = vst [vmem:[#allocation7 + $0xa48] sm:$0xff] %v3302_v3  ;;  %3932 = vst [vmem:[#allocation7 + $0x288] sm:$0xff] %v2558_v27  ;;  %v1449_v27 = vld [vmem:[%s7129_s3 + $0x700] sm:$0xff] }
 0x399   :  { %v3306_v45 = vpop.f32.mrf.mxu1  ;;  %4858 = vmatmul.mubr.msk.f32.gmra.mxu1 %vm1481_vm5, %v1438_v21  ;;  %v2562_v23 = vpop.f32.mrf.mxu0  ;;  %4734 = vmatmul.mubr.msk.f32.gmra.mxu0 %vm1481_vm5, %v1314_v44 }
 0x39a   :  { %4181 = vst [vmem:[#allocation7 + $0xa50] sm:$0xff] %v3306_v45  ;;  %3598 = vmatprep.mubr.f32.mxu1 %v5225_v61  ;;  %3933 = vst [vmem:[#allocation7 + $0x290] sm:$0xff] %v2562_v23  ;;  %2854 = vmatprep.mubr.f32.mxu0 %v5225_v61  ;;  %v1325_v45 = vld [vmem:[%s7129_s3 + $0x320] sm:$0xff] }
 0x39b   :  { %v3308_v47 = vpop.f32.mrf.mxu1  ;;  %v2564_v48 = vpop.f32.mrf.mxu0 }
 0x39c   :  { %4182 = vst [vmem:[#allocation7 + $0xa58] sm:$0xff] %v3308_v47  ;;  %3934 = vst [vmem:[#allocation7 + $0x298] sm:$0xff] %v2564_v48  ;;  %v1450_v48 = vld [vmem:[%s7129_s3 + $0x708] sm:$0xff] }
 0x39d   :  { %v3312_v22 = vpop.f32.mrf.mxu1  ;;  %4859 = vmatmul.mubr.msk.f32.gmra.mxu1 %vm1481_vm5, %v1439_v26  ;;  %v2568_v25 = vpop.f32.mrf.mxu0  ;;  %4735 = vmatmul.mubr.msk.f32.gmra.mxu0 %vm1481_vm5, %v1315_v46 }
 0x39e   :  { %4183 = vst [vmem:[#allocation7 + $0xa60] sm:$0xff] %v3312_v22  ;;  %3604 = vmatprep.mubr.f32.mxu1 %v5225_v61  ;;  %3935 = vst [vmem:[#allocation7 + $0x2a0] sm:$0xff] %v2568_v25  ;;  %2860 = vmatprep.mubr.f32.mxu0 %v5225_v61  ;;  %v1326_v22 = vld [vmem:[%s7129_s3 + $0x328] sm:$0xff] }
 0x39f   :  { %v3314_v51 = vpop.f32.mrf.mxu1  ;;  %v2570_v52 = vpop.f32.mrf.mxu0 }
 0x3a0   :  { %4184 = vst [vmem:[#allocation7 + $0xa68] sm:$0xff] %v3314_v51  ;;  %3936 = vst [vmem:[#allocation7 + $0x2a8] sm:$0xff] %v2570_v52  ;;  %v1451_v52 = vld [vmem:[%s7129_s3 + $0x710] sm:$0xff] }
 0x3a1   :  { %v3318_v53 = vpop.f32.mrf.mxu1  ;;  %4860 = vmatmul.mubr.msk.f32.gmra.mxu1 %vm1481_vm5, %v1440_v49  ;;  %v2574_v30 = vpop.f32.mrf.mxu0  ;;  %4736 = vmatmul.mubr.msk.f32.gmra.mxu0 %vm1481_vm5, %v1316_v50 }
 0x3a2   :  { %4185 = vst [vmem:[#allocation7 + $0xa70] sm:$0xff] %v3318_v53  ;;  %3610 = vmatprep.mubr.f32.mxu1 %v5225_v61  ;;  %3937 = vst [vmem:[#allocation7 + $0x2b0] sm:$0xff] %v2574_v30  ;;  %2866 = vmatprep.mubr.f32.mxu0 %v5225_v61  ;;  %v1327_v53 = vld [vmem:[%s7129_s3 + $0x330] sm:$0xff] }
 0x3a3   :  { %v3320_v55 = vpop.f32.mrf.mxu1  ;;  %v2576_v29 = vpop.f32.mrf.mxu0 }
 0x3a4   :  { %4186 = vst [vmem:[#allocation7 + $0xa78] sm:$0xff] %v3320_v55  ;;  %3938 = vst [vmem:[#allocation7 + $0x2b8] sm:$0xff] %v2576_v29  ;;  %v1452_v29 = vld [vmem:[%s7129_s3 + $0x718] sm:$0xff] }
 0x3a5   :  { %v3324_v28 = vpop.f32.mrf.mxu1  ;;  %4861 = vmatmul.mubr.msk.f32.gmra.mxu1 %vm1481_vm5, %v1441_v33  ;;  %v2580_v56 = vpop.f32.mrf.mxu0  ;;  %4737 = vmatmul.mubr.msk.f32.gmra.mxu0 %vm1481_vm5, %v1317_v54 }
 0x3a6   :  { %4187 = vst [vmem:[#allocation7 + $0xa80] sm:$0xff] %v3324_v28  ;;  %3616 = vmatprep.mubr.f32.mxu1 %v5225_v61  ;;  %3939 = vst [vmem:[#allocation7 + $0x2c0] sm:$0xff] %v2580_v56  ;;  %2872 = vmatprep.mubr.f32.mxu0 %v5225_v61  ;;  %v1328_v28 = vld [vmem:[%s7129_s3 + $0x338] sm:$0xff] }
 0x3a7   :  { %v3326_v59 = vpop.f32.mrf.mxu1  ;;  %v2582_v60 = vpop.f32.mrf.mxu0 }
 0x3a8   :  { %4188 = vst [vmem:[#allocation7 + $0xa88] sm:$0xff] %v3326_v59  ;;  %3940 = vst [vmem:[#allocation7 + $0x2c8] sm:$0xff] %v2582_v60  ;;  %v1453_v60 = vld [vmem:[%s7129_s3 + $0x720] sm:$0xff] }
 0x3a9   :  { %v3330_v62 = vpop.f32.mrf.mxu1  ;;  %4862 = vmatmul.mubr.msk.f32.gmra.mxu1 %vm1481_vm5, %v1442_v57  ;;  %v2586_v63 = vpop.f32.mrf.mxu0  ;;  %4738 = vmatmul.mubr.msk.f32.gmra.mxu0 %vm1481_vm5, %v1318_v58 }
 0x3aa   :  { %4189 = vst [vmem:[#allocation7 + $0xa90] sm:$0xff] %v3330_v62  ;;  %3622 = vmatprep.mubr.f32.mxu1 %v5225_v61  ;;  %3941 = vst [vmem:[#allocation7 + $0x2d0] sm:$0xff] %v2586_v63  ;;  %2878 = vmatprep.mubr.f32.mxu0 %v5225_v61  ;;  %v1329_v62 = vld [vmem:[%s7129_s3 + $0x340] sm:$0xff] }
 0x3ab   :  { %v3332_v2 = vpop.f32.mrf.mxu1  ;;  %v2588_v4 = vpop.f32.mrf.mxu0 }
 0x3ac   :  { %4190 = vst [vmem:[#allocation7 + $0xa98] sm:$0xff] %v3332_v2  ;;  %3942 = vst [vmem:[#allocation7 + $0x2d8] sm:$0xff] %v2588_v4  ;;  %v1454_v4 = vld [vmem:[%s7129_s3 + $0x728] sm:$0xff] }
 0x3ad   :  { %v3336_v5 = vpop.f32.mrf.mxu1  ;;  %4863 = vmatmul.mubr.msk.f32.gmra.mxu1 %vm1481_vm5, %v1443_v0  ;;  %v2592_v6 = vpop.f32.mrf.mxu0  ;;  %4739 = vmatmul.mubr.msk.f32.gmra.mxu0 %vm1481_vm5, %v1319_v1 }
 0x3ae   :  { %4191 = vst [vmem:[#allocation7 + $0xaa0] sm:$0xff] %v3336_v5  ;;  %3628 = vmatprep.mubr.f32.mxu1 %v5225_v61  ;;  %3943 = vst [vmem:[#allocation7 + $0x2e0] sm:$0xff] %v2592_v6  ;;  %2884 = vmatprep.mubr.f32.mxu0 %v5225_v61  ;;  %v1330_v5 = vld [vmem:[%s7129_s3 + $0x348] sm:$0xff] }
 0x3af   :  { %v3338_v9 = vpop.f32.mrf.mxu1  ;;  %v2594_v11 = vpop.f32.mrf.mxu0 }
 0x3b0   :  { %4192 = vst [vmem:[#allocation7 + $0xaa8] sm:$0xff] %v3338_v9  ;;  %3944 = vst [vmem:[#allocation7 + $0x2e8] sm:$0xff] %v2594_v11  ;;  %v1455_v11 = vld [vmem:[%s7129_s3 + $0x730] sm:$0xff] }
 0x3b1   :  { %v3342_v14 = vpop.f32.mrf.mxu1  ;;  %4864 = vmatmul.mubr.msk.f32.gmra.mxu1 %vm1481_vm5, %v1444_v7  ;;  %v2598_v15 = vpop.f32.mrf.mxu0  ;;  %4740 = vmatmul.mubr.msk.f32.gmra.mxu0 %vm1481_vm5, %v1320_v8 }
 0x3b2   :  { %4193 = vst [vmem:[#allocation7 + $0xab0] sm:$0xff] %v3342_v14  ;;  %3634 = vmatprep.mubr.f32.mxu1 %v5225_v61  ;;  %3945 = vst [vmem:[#allocation7 + $0x2f0] sm:$0xff] %v2598_v15  ;;  %2890 = vmatprep.mubr.f32.mxu0 %v5225_v61  ;;  %v1331_v14 = vld [vmem:[%s7129_s3 + $0x350] sm:$0xff] }
 0x3b3   :  { %v3344_v13 = vpop.f32.mrf.mxu1  ;;  %v2600_v31 = vpop.f32.mrf.mxu0 }
 0x3b4   :  { %4194 = vst [vmem:[#allocation7 + $0xab8] sm:$0xff] %v3344_v13  ;;  %3946 = vst [vmem:[#allocation7 + $0x2f8] sm:$0xff] %v2600_v31  ;;  %v1456_v31 = vld [vmem:[%s7129_s3 + $0x738] sm:$0xff] }
 0x3b5   :  { %v3348_v35 = vpop.f32.mrf.mxu1  ;;  %4865 = vmatmul.mubr.msk.f32.gmra.mxu1 %vm1481_vm5, %v1445_v32  ;;  %v2604_v36 = vpop.f32.mrf.mxu0  ;;  %4741 = vmatmul.mubr.msk.f32.gmra.mxu0 %vm1481_vm5, %v1321_v10 }
 0x3b6   :  { %4195 = vst [vmem:[#allocation7 + $0xac0] sm:$0xff] %v3348_v35  ;;  %3640 = vmatprep.mubr.f32.mxu1 %v5225_v61  ;;  %3947 = vst [vmem:[#allocation7 + $0x300] sm:$0xff] %v2604_v36  ;;  %2896 = vmatprep.mubr.f32.mxu0 %v5225_v61  ;;  %v1332_v35 = vld [vmem:[%s7129_s3 + $0x358] sm:$0xff] }
 0x3b7   :  { %v3350_v37 = vpop.f32.mrf.mxu1  ;;  %v2606_v34 = vpop.f32.mrf.mxu0 }
 0x3b8   :  { %4196 = vst [vmem:[#allocation7 + $0xac8] sm:$0xff] %v3350_v37  ;;  %3948 = vst [vmem:[#allocation7 + $0x308] sm:$0xff] %v2606_v34  ;;  %v1457_v34 = vld [vmem:[%s7129_s3 + $0x740] sm:$0xff] }
 0x3b9   :  { %v3354_v12 = vpop.f32.mrf.mxu1  ;;  %4866 = vmatmul.mubr.msk.f32.gmra.mxu1 %vm1481_vm5, %v1446_v18  ;;  %v2610_v17 = vpop.f32.mrf.mxu0  ;;  %4742 = vmatmul.mubr.msk.f32.gmra.mxu0 %vm1481_vm5, %v1322_v16 }
 0x3ba   :  { %4197 = vst [vmem:[#allocation7 + $0xad0] sm:$0xff] %v3354_v12  ;;  %3646 = vmatprep.mubr.f32.mxu1 %v5225_v61  ;;  %3949 = vst [vmem:[#allocation7 + $0x310] sm:$0xff] %v2610_v17  ;;  %2902 = vmatprep.mubr.f32.mxu0 %v5225_v61  ;;  %v1333_v12 = vld [vmem:[%s7129_s3 + $0x360] sm:$0xff] }
 0x3bb   :  { %v3356_v40 = vpop.f32.mrf.mxu1  ;;  %v2612_v19 = vpop.f32.mrf.mxu0 }
 0x3bc   :  { %4198 = vst [vmem:[#allocation7 + $0xad8] sm:$0xff] %v3356_v40  ;;  %3950 = vst [vmem:[#allocation7 + $0x318] sm:$0xff] %v2612_v19  ;;  %v1458_v19 = vld [vmem:[%s7129_s3 + $0x748] sm:$0xff] }
 0x3bd   :  { %v3360_v24 = vpop.f32.mrf.mxu1  ;;  %4867 = vmatmul.mubr.msk.f32.gmra.mxu1 %vm1481_vm5, %v1447_v38  ;;  %v2616_v41 = vpop.f32.mrf.mxu0  ;;  %4743 = vmatmul.mubr.msk.f32.gmra.mxu0 %vm1481_vm5, %v1323_v39 }
 0x3be   :  { %4199 = vst [vmem:[#allocation7 + $0xae0] sm:$0xff] %v3360_v24  ;;  %3652 = vmatprep.mubr.f32.mxu1 %v5225_v61  ;;  %3951 = vst [vmem:[#allocation7 + $0x320] sm:$0xff] %v2616_v41  ;;  %2908 = vmatprep.mubr.f32.mxu0 %v5225_v61  ;;  %v1334_v24 = vld [vmem:[%s7129_s3 + $0x368] sm:$0xff] }
 0x3bf   :  { %v3362_v20 = vpop.f32.mrf.mxu1  ;;  %v2618_v21 = vpop.f32.mrf.mxu0 }
 0x3c0   :  { %4200 = vst [vmem:[#allocation7 + $0xae8] sm:$0xff] %v3362_v20  ;;  %3952 = vst [vmem:[#allocation7 + $0x328] sm:$0xff] %v2618_v21  ;;  %v1459_v21 = vld [vmem:[%s7129_s3 + $0x750] sm:$0xff] }
 0x3c1   :  { %v3366_v44 = vpop.f32.mrf.mxu1  ;;  %4868 = vmatmul.mubr.msk.f32.gmra.mxu1 %vm1481_vm5, %v1448_v42  ;;  %v2622_v3 = vpop.f32.mrf.mxu0  ;;  %4744 = vmatmul.mubr.msk.f32.gmra.mxu0 %vm1481_vm5, %v1324_v43 }
 0x3c2   :  { %4201 = vst [vmem:[#allocation7 + $0xaf0] sm:$0xff] %v3366_v44  ;;  %3658 = vmatprep.mubr.f32.mxu1 %v5225_v61  ;;  %3953 = vst [vmem:[#allocation7 + $0x330] sm:$0xff] %v2622_v3  ;;  %2914 = vmatprep.mubr.f32.mxu0 %v5225_v61  ;;  %v1335_v44 = vld [vmem:[%s7129_s3 + $0x370] sm:$0xff] }
 0x3c3   :  { %v3368_v23 = vpop.f32.mrf.mxu1  ;;  %v2624_v26 = vpop.f32.mrf.mxu0 }
 0x3c4   :  { %4202 = vst [vmem:[#allocation7 + $0xaf8] sm:$0xff] %v3368_v23  ;;  %3954 = vst [vmem:[#allocation7 + $0x338] sm:$0xff] %v2624_v26  ;;  %v1460_v26 = vld [vmem:[%s7129_s3 + $0x758] sm:$0xff] }
 0x3c5   :  { %v3372_v46 = vpop.f32.mrf.mxu1  ;;  %4869 = vmatmul.mubr.msk.f32.gmra.mxu1 %vm1481_vm5, %v1449_v27  ;;  %v2628_v47 = vpop.f32.mrf.mxu0  ;;  %4745 = vmatmul.mubr.msk.f32.gmra.mxu0 %vm1481_vm5, %v1325_v45 }
 0x3c6   :  { %4203 = vst [vmem:[#allocation7 + $0xb00] sm:$0xff] %v3372_v46  ;;  %3664 = vmatprep.mubr.f32.mxu1 %v5225_v61  ;;  %3955 = vst [vmem:[#allocation7 + $0x340] sm:$0xff] %v2628_v47  ;;  %2920 = vmatprep.mubr.f32.mxu0 %v5225_v61  ;;  %v1336_v46 = vld [vmem:[%s7129_s3 + $0x378] sm:$0xff] }
 0x3c7   :  { %v3374_v25 = vpop.f32.mrf.mxu1  ;;  %v2630_v49 = vpop.f32.mrf.mxu0 }
 0x3c8   :  { %4204 = vst [vmem:[#allocation7 + $0xb08] sm:$0xff] %v3374_v25  ;;  %3956 = vst [vmem:[#allocation7 + $0x348] sm:$0xff] %v2630_v49  ;;  %v1461_v49 = vld [vmem:[%s7129_s3 + $0x760] sm:$0xff] }
 0x3c9   :  { %v3378_v50 = vpop.f32.mrf.mxu1  ;;  %4870 = vmatmul.mubr.msk.f32.gmra.mxu1 %vm1481_vm5, %v1450_v48  ;;  %v2634_v51 = vpop.f32.mrf.mxu0  ;;  %4746 = vmatmul.mubr.msk.f32.gmra.mxu0 %vm1481_vm5, %v1326_v22 }
 0x3ca   :  { %4205 = vst [vmem:[#allocation7 + $0xb10] sm:$0xff] %v3378_v50  ;;  %3670 = vmatprep.mubr.f32.mxu1 %v5225_v61  ;;  %3957 = vst [vmem:[#allocation7 + $0x350] sm:$0xff] %v2634_v51  ;;  %2926 = vmatprep.mubr.f32.mxu0 %v5225_v61  ;;  %v1337_v50 = vld [vmem:[%s7129_s3 + $0x380] sm:$0xff] }
 0x3cb   :  { %v3380_v30 = vpop.f32.mrf.mxu1  ;;  %v2636_v33 = vpop.f32.mrf.mxu0 }
 0x3cc   :  { %4206 = vst [vmem:[#allocation7 + $0xb18] sm:$0xff] %v3380_v30  ;;  %3958 = vst [vmem:[#allocation7 + $0x358] sm:$0xff] %v2636_v33  ;;  %v1462_v33 = vld [vmem:[%s7129_s3 + $0x768] sm:$0xff] }
 0x3cd   :  { %v3384_v54 = vpop.f32.mrf.mxu1  ;;  %4871 = vmatmul.mubr.msk.f32.gmra.mxu1 %vm1481_vm5, %v1451_v52  ;;  %v2640_v55 = vpop.f32.mrf.mxu0  ;;  %4747 = vmatmul.mubr.msk.f32.gmra.mxu0 %vm1481_vm5, %v1327_v53 }
 0x3ce   :  { %4207 = vst [vmem:[#allocation7 + $0xb20] sm:$0xff] %v3384_v54  ;;  %3676 = vmatprep.mubr.f32.mxu1 %v5225_v61  ;;  %3959 = vst [vmem:[#allocation7 + $0x360] sm:$0xff] %v2640_v55  ;;  %2932 = vmatprep.mubr.f32.mxu0 %v5225_v61  ;;  %v1338_v54 = vld [vmem:[%s7129_s3 + $0x388] sm:$0xff] }
 0x3cf   :  { %v3386_v56 = vpop.f32.mrf.mxu1  ;;  %v2642_v57 = vpop.f32.mrf.mxu0 }
 0x3d0   :  { %4208 = vst [vmem:[#allocation7 + $0xb28] sm:$0xff] %v3386_v56  ;;  %3960 = vst [vmem:[#allocation7 + $0x368] sm:$0xff] %v2642_v57  ;;  %v1463_v57 = vld [vmem:[%s7129_s3 + $0x770] sm:$0xff] }
 0x3d1   :  { %v3390_v58 = vpop.f32.mrf.mxu1  ;;  %4872 = vmatmul.mubr.msk.f32.gmra.mxu1 %vm1481_vm5, %v1452_v29  ;;  %v2646_v59 = vpop.f32.mrf.mxu0  ;;  %4748 = vmatmul.mubr.msk.f32.gmra.mxu0 %vm1481_vm5, %v1328_v28 }
 0x3d2   :  { %4209 = vst [vmem:[#allocation7 + $0xb30] sm:$0xff] %v3390_v58  ;;  %3682 = vmatprep.mubr.f32.mxu1 %v5225_v61  ;;  %3961 = vst [vmem:[#allocation7 + $0x370] sm:$0xff] %v2646_v59  ;;  %2938 = vmatprep.mubr.f32.mxu0 %v5225_v61  ;;  %v1339_v58 = vld [vmem:[%s7129_s3 + $0x390] sm:$0xff] }
 0x3d3   :  { %v3392_v63 = vpop.f32.mrf.mxu1  ;;  %v2648_v0 = vpop.f32.mrf.mxu0 }
 0x3d4   :  { %4210 = vst [vmem:[#allocation7 + $0xb38] sm:$0xff] %v3392_v63  ;;  %3962 = vst [vmem:[#allocation7 + $0x378] sm:$0xff] %v2648_v0  ;;  %v1464_v0 = vld [vmem:[%s7129_s3 + $0x778] sm:$0xff] }
 0x3d5   :  { %v3396_v1 = vpop.f32.mrf.mxu1  ;;  %4873 = vmatmul.mubr.msk.f32.gmra.mxu1 %vm1481_vm5, %v1453_v60  ;;  %v2652_v2 = vpop.f32.mrf.mxu0  ;;  %4749 = vmatmul.mubr.msk.f32.gmra.mxu0 %vm1481_vm5, %v1329_v62 }
 0x3d6   :  { %4211 = vst [vmem:[#allocation7 + $0xb40] sm:$0xff] %v3396_v1  ;;  %3688 = vmatprep.mubr.f32.mxu1 %v5225_v61  ;;  %3963 = vst [vmem:[#allocation7 + $0x380] sm:$0xff] %v2652_v2  ;;  %2944 = vmatprep.mubr.f32.mxu0 %v5225_v61  ;;  %v1340_v1 = vld [vmem:[%s7129_s3 + $0x398] sm:$0xff] }
 0x3d7   :  { %v3398_v6 = vpop.f32.mrf.mxu1  ;;  %v2654_v7 = vpop.f32.mrf.mxu0 }
 0x3d8   :  { %4212 = vst [vmem:[#allocation7 + $0xb48] sm:$0xff] %v3398_v6  ;;  %3964 = vst [vmem:[#allocation7 + $0x388] sm:$0xff] %v2654_v7  ;;  %v1465_v7 = vld [vmem:[%s7129_s3 + $0x780] sm:$0xff] }
 0x3d9   :  { %v3402_v8 = vpop.f32.mrf.mxu1  ;;  %4874 = vmatmul.mubr.msk.f32.gmra.mxu1 %vm1481_vm5, %v1454_v4  ;;  %v2658_v9 = vpop.f32.mrf.mxu0  ;;  %4750 = vmatmul.mubr.msk.f32.gmra.mxu0 %vm1481_vm5, %v1330_v5 }
 0x3da   :  { %4213 = vst [vmem:[#allocation7 + $0xb50] sm:$0xff] %v3402_v8  ;;  %3694 = vmatprep.mubr.f32.mxu1 %v5225_v61  ;;  %3965 = vst [vmem:[#allocation7 + $0x390] sm:$0xff] %v2658_v9  ;;  %2950 = vmatprep.mubr.f32.mxu0 %v5225_v61  ;;  %v1341_v8 = vld [vmem:[%s7129_s3 + $0x3a0] sm:$0xff] }
 0x3db   :  { %v3404_v15 = vpop.f32.mrf.mxu1  ;;  %v2660_v32 = vpop.f32.mrf.mxu0 }
 0x3dc   :  { %4214 = vst [vmem:[#allocation7 + $0xb58] sm:$0xff] %v3404_v15  ;;  %3966 = vst [vmem:[#allocation7 + $0x398] sm:$0xff] %v2660_v32  ;;  %v1466_v32 = vld [vmem:[%s7129_s3 + $0x788] sm:$0xff] }
 0x3dd   :  { %v3408_v10 = vpop.f32.mrf.mxu1  ;;  %4875 = vmatmul.mubr.msk.f32.gmra.mxu1 %vm1481_vm5, %v1455_v11  ;;  %v2664_v13 = vpop.f32.mrf.mxu0  ;;  %4751 = vmatmul.mubr.msk.f32.gmra.mxu0 %vm1481_vm5, %v1331_v14 }
 0x3de   :  { %4215 = vst [vmem:[#allocation7 + $0xb60] sm:$0xff] %v3408_v10  ;;  %3700 = vmatprep.mubr.f32.mxu1 %v5225_v61  ;;  %3967 = vst [vmem:[#allocation7 + $0x3a0] sm:$0xff] %v2664_v13  ;;  %2956 = vmatprep.mubr.f32.mxu0 %v5225_v61  ;;  %v1342_v10 = vld [vmem:[%s7129_s3 + $0x3a8] sm:$0xff] }
 0x3df   :  { %v3410_v36 = vpop.f32.mrf.mxu1  ;;  %v2666_v18 = vpop.f32.mrf.mxu0 }
 0x3e0   :  { %4216 = vst [vmem:[#allocation7 + $0xb68] sm:$0xff] %v3410_v36  ;;  %3968 = vst [vmem:[#allocation7 + $0x3a8] sm:$0xff] %v2666_v18  ;;  %v1467_v18 = vld [vmem:[%s7129_s3 + $0x790] sm:$0xff] }
 0x3e1   :  { %v3414_v16 = vpop.f32.mrf.mxu1  ;;  %4876 = vmatmul.mubr.msk.f32.gmra.mxu1 %vm1481_vm5, %v1456_v31  ;;  %v2670_v37 = vpop.f32.mrf.mxu0  ;;  %4752 = vmatmul.mubr.msk.f32.gmra.mxu0 %vm1481_vm5, %v1332_v35 }
 0x3e2   :  { %4217 = vst [vmem:[#allocation7 + $0xb70] sm:$0xff] %v3414_v16  ;;  %3706 = vmatprep.mubr.f32.mxu1 %v5225_v61  ;;  %3969 = vst [vmem:[#allocation7 + $0x3b0] sm:$0xff] %v2670_v37  ;;  %2962 = vmatprep.mubr.f32.mxu0 %v5225_v61  ;;  %v1343_v16 = vld [vmem:[%s7129_s3 + $0x3b0] sm:$0xff] }
 0x3e3   :  { %v3416_v17 = vpop.f32.mrf.mxu1  ;;  %v2672_v38 = vpop.f32.mrf.mxu0 }
 0x3e4   :  { %4218 = vst [vmem:[#allocation7 + $0xb78] sm:$0xff] %v3416_v17  ;;  %3970 = vst [vmem:[#allocation7 + $0x3b8] sm:$0xff] %v2672_v38  ;;  %v1468_v38 = vld [vmem:[%s7129_s3 + $0x798] sm:$0xff] }
 0x3e5   :  { %v3420_v39 = vpop.f32.mrf.mxu1  ;;  %4877 = vmatmul.mubr.msk.f32.gmra.mxu1 %vm1481_vm5, %v1457_v34  ;;  %v2676_v40 = vpop.f32.mrf.mxu0  ;;  %4753 = vmatmul.mubr.msk.f32.gmra.mxu0 %vm1481_vm5, %v1333_v12 }
 0x3e6   :  { %4219 = vst [vmem:[#allocation7 + $0xb80] sm:$0xff] %v3420_v39  ;;  %3712 = vmatprep.mubr.f32.mxu1 %v5225_v61  ;;  %3971 = vst [vmem:[#allocation7 + $0x3c0] sm:$0xff] %v2676_v40  ;;  %2968 = vmatprep.mubr.f32.mxu0 %v5225_v61  ;;  %v1344_v39 = vld [vmem:[%s7129_s3 + $0x3b8] sm:$0xff] }
 0x3e7   :  { %v3422_v41 = vpop.f32.mrf.mxu1  ;;  %v2678_v42 = vpop.f32.mrf.mxu0 }
 0x3e8   :  { %4220 = vst [vmem:[#allocation7 + $0xb88] sm:$0xff] %v3422_v41  ;;  %3972 = vst [vmem:[#allocation7 + $0x3c8] sm:$0xff] %v2678_v42  ;;  %v1469_v42 = vld [vmem:[%s7129_s3 + $0x7a0] sm:$0xff] }
 0x3e9   :  { %v3426_v43 = vpop.f32.mrf.mxu1  ;;  %4878 = vmatmul.mubr.msk.f32.gmra.mxu1 %vm1481_vm5, %v1458_v19  ;;  %v2682_v20 = vpop.f32.mrf.mxu0  ;;  %4754 = vmatmul.mubr.msk.f32.gmra.mxu0 %vm1481_vm5, %v1334_v24 }
 0x3ea   :  { %4221 = vst [vmem:[#allocation7 + $0xb90] sm:$0xff] %v3426_v43  ;;  %3718 = vmatprep.mubr.f32.mxu1 %v5225_v61  ;;  %3973 = vst [vmem:[#allocation7 + $0x3d0] sm:$0xff] %v2682_v20  ;;  %2974 = vmatprep.mubr.f32.mxu0 %v5225_v61  ;;  %v1345_v43 = vld [vmem:[%s7129_s3 + $0x3c0] sm:$0xff] }
 0x3eb   :  { %v3428_v3 = vpop.f32.mrf.mxu1  ;;  %v2684_v27 = vpop.f32.mrf.mxu0 }
 0x3ec   :  { %4222 = vst [vmem:[#allocation7 + $0xb98] sm:$0xff] %v3428_v3  ;;  %3974 = vst [vmem:[#allocation7 + $0x3d8] sm:$0xff] %v2684_v27  ;;  %v1470_v27 = vld [vmem:[%s7129_s3 + $0x7a8] sm:$0xff] }
 0x3ed   :  { %v3432_v45 = vpop.f32.mrf.mxu1  ;;  %4879 = vmatmul.mubr.msk.f32.gmra.mxu1 %vm1481_vm5, %v1459_v21  ;;  %v2688_v23 = vpop.f32.mrf.mxu0  ;;  %4755 = vmatmul.mubr.msk.f32.gmra.mxu0 %vm1481_vm5, %v1335_v44 }
 0x3ee   :  { %4223 = vst [vmem:[#allocation7 + $0xba0] sm:$0xff] %v3432_v45  ;;  %3724 = vmatprep.mubr.f32.mxu1 %v5225_v61  ;;  %3975 = vst [vmem:[#allocation7 + $0x3e0] sm:$0xff] %v2688_v23  ;;  %2980 = vmatprep.mubr.f32.mxu0 %v5225_v61  ;;  %v1346_v45 = vld [vmem:[%s7129_s3 + $0x3c8] sm:$0xff] }
 0x3ef   :  { %v3434_v47 = vpop.f32.mrf.mxu1  ;;  %v2690_v48 = vpop.f32.mrf.mxu0 }
 0x3f0   :  { %4224 = vst [vmem:[#allocation7 + $0xba8] sm:$0xff] %v3434_v47  ;;  %3976 = vst [vmem:[#allocation7 + $0x3e8] sm:$0xff] %v2690_v48  ;;  %v1471_v48 = vld [vmem:[%s7129_s3 + $0x7b0] sm:$0xff] }
 0x3f1   :  { %v3438_v22 = vpop.f32.mrf.mxu1  ;;  %4880 = vmatmul.mubr.msk.f32.gmra.mxu1 %vm1481_vm5, %v1460_v26  ;;  %v2694_v25 = vpop.f32.mrf.mxu0  ;;  %4756 = vmatmul.mubr.msk.f32.gmra.mxu0 %vm1481_vm5, %v1336_v46 }
 0x3f2   :  { %4225 = vst [vmem:[#allocation7 + $0xbb0] sm:$0xff] %v3438_v22  ;;  %3730 = vmatprep.mubr.f32.mxu1 %v5225_v61  ;;  %3977 = vst [vmem:[#allocation7 + $0x3f0] sm:$0xff] %v2694_v25  ;;  %2986 = vmatprep.mubr.f32.mxu0 %v5225_v61  ;;  %v1347_v22 = vld [vmem:[%s7129_s3 + $0x3d0] sm:$0xff] }
 0x3f3   :  { %v3440_v51 = vpop.f32.mrf.mxu1  ;;  %v2696_v52 = vpop.f32.mrf.mxu0 }
 0x3f4   :  { %4226 = vst [vmem:[#allocation7 + $0xbb8] sm:$0xff] %v3440_v51  ;;  %3978 = vst [vmem:[#allocation7 + $0x3f8] sm:$0xff] %v2696_v52  ;;  %v1472_v52 = vld [vmem:[%s7129_s3 + $0x7b8] sm:$0xff] }
 0x3f5   :  { %v3444_v53 = vpop.f32.mrf.mxu1  ;;  %4881 = vmatmul.mubr.msk.f32.gmra.mxu1 %vm1481_vm5, %v1461_v49  ;;  %v2700_v30 = vpop.f32.mrf.mxu0  ;;  %4757 = vmatmul.mubr.msk.f32.gmra.mxu0 %vm1481_vm5, %v1337_v50 }
 0x3f6   :  { %4227 = vst [vmem:[#allocation7 + $0xbc0] sm:$0xff] %v3444_v53  ;;  %3736 = vmatprep.mubr.f32.mxu1 %v5225_v61  ;;  %3979 = vst [vmem:[#allocation7 + $0x400] sm:$0xff] %v2700_v30  ;;  %2992 = vmatprep.mubr.f32.mxu0 %v5225_v61  ;;  %v1348_v53 = vld [vmem:[%s7129_s3 + $0x3d8] sm:$0xff] }
 0x3f7   :  { %v3446_v55 = vpop.f32.mrf.mxu1  ;;  %v2702_v29 = vpop.f32.mrf.mxu0 }
 0x3f8   :  { %4228 = vst [vmem:[#allocation7 + $0xbc8] sm:$0xff] %v3446_v55  ;;  %3980 = vst [vmem:[#allocation7 + $0x408] sm:$0xff] %v2702_v29  ;;  %v1473_v29 = vld [vmem:[%s7129_s3 + $0x7c0] sm:$0xff] }
 0x3f9   :  { %v3450_v28 = vpop.f32.mrf.mxu1  ;;  %4882 = vmatmul.mubr.msk.f32.gmra.mxu1 %vm1481_vm5, %v1462_v33  ;;  %v2706_v56 = vpop.f32.mrf.mxu0  ;;  %4758 = vmatmul.mubr.msk.f32.gmra.mxu0 %vm1481_vm5, %v1338_v54 }
 0x3fa   :  { %4229 = vst [vmem:[#allocation7 + $0xbd0] sm:$0xff] %v3450_v28  ;;  %3742 = vmatprep.mubr.f32.mxu1 %v5225_v61  ;;  %3981 = vst [vmem:[#allocation7 + $0x410] sm:$0xff] %v2706_v56  ;;  %2998 = vmatprep.mubr.f32.mxu0 %v5225_v61 }
 0x3fb   :  { %v3452_v59 = vpop.f32.mrf.mxu1  ;;  %v2708_v60 = vpop.f32.mrf.mxu0 }
 0x3fc   :  { %4230 = vst [vmem:[#allocation7 + $0xbd8] sm:$0xff] %v3452_v59  ;;  %3982 = vst [vmem:[#allocation7 + $0x418] sm:$0xff] %v2708_v60  ;;  %v1474_v59 = vld [vmem:[%s7129_s3 + $0x7c8] sm:$0xff] }
 0x3fd   :  { %v3456_v62 = vpop.f32.mrf.mxu1  ;;  %4883 = vmatmul.mubr.msk.f32.gmra.mxu1 %vm1481_vm5, %v1463_v57  ;;  %v2712_v63 = vpop.f32.mrf.mxu0  ;;  %4759 = vmatmul.mubr.msk.f32.gmra.mxu0 %vm1481_vm5, %v1339_v58 }
 0x3fe   :  { %4231 = vst [vmem:[#allocation7 + $0xbe0] sm:$0xff] %v3456_v62  ;;  %3748 = vmatprep.mubr.f32.mxu1 %v5225_v61  ;;  %3983 = vst [vmem:[#allocation7 + $0x420] sm:$0xff] %v2712_v63  ;;  %3004 = vmatprep.mubr.f32.mxu0 %v5225_v61 }
 0x3ff   :  { %v3458_v2 = vpop.f32.mrf.mxu1  ;;  %v2714_v4 = vpop.f32.mrf.mxu0 }
 0x400   :  { %4232 = vst [vmem:[#allocation7 + $0xbe8] sm:$0xff] %v3458_v2  ;;  %3984 = vst [vmem:[#allocation7 + $0x428] sm:$0xff] %v2714_v4 }
 0x401   :  { %v3462_v5 = vpop.f32.mrf.mxu1  ;;  %4884 = vmatmul.mubr.msk.f32.gmra.mxu1 %vm1481_vm5, %v1464_v0  ;;  %v2718_v6 = vpop.f32.mrf.mxu0  ;;  %4760 = vmatmul.mubr.msk.f32.gmra.mxu0 %vm1481_vm5, %v1340_v1  ;;  %v1475_v1 = vld [vmem:[%s7129_s3 + $0x7d0] sm:$0xff] }
 0x402   :  { %4233 = vst [vmem:[#allocation7 + $0xbf0] sm:$0xff] %v3462_v5  ;;  %3754 = vmatprep.mubr.f32.mxu1 %v5225_v61  ;;  %3985 = vst [vmem:[#allocation7 + $0x430] sm:$0xff] %v2718_v6  ;;  %3010 = vmatprep.mubr.f32.mxu0 %v5225_v61 }
 0x403   :  { %v3464_v9 = vpop.f32.mrf.mxu1  ;;  %v2720_v11 = vpop.f32.mrf.mxu0 }
 0x404   :  { %4234 = vst [vmem:[#allocation7 + $0xbf8] sm:$0xff] %v3464_v9  ;;  %3986 = vst [vmem:[#allocation7 + $0x438] sm:$0xff] %v2720_v11 }
 0x405   :  { %v3468_v14 = vpop.f32.mrf.mxu1  ;;  %4885 = vmatmul.mubr.msk.f32.gmra.mxu1 %vm1481_vm5, %v1465_v7  ;;  %v2724_v15 = vpop.f32.mrf.mxu0  ;;  %4761 = vmatmul.mubr.msk.f32.gmra.mxu0 %vm1481_vm5, %v1341_v8  ;;  %v1476_v7 = vld [vmem:[%s7129_s3 + $0x7d8] sm:$0xff] }
 0x406   :  { %4235 = vst [vmem:[#allocation7 + $0xc00] sm:$0xff] %v3468_v14  ;;  %3760 = vmatprep.mubr.f32.mxu1 %v5225_v61  ;;  %3987 = vst [vmem:[#allocation7 + $0x440] sm:$0xff] %v2724_v15  ;;  %3016 = vmatprep.mubr.f32.mxu0 %v5225_v61  ;;  %v1477_v15 = vld [vmem:[%s7129_s3 + $0x7e0] sm:$0xff] }
 0x407   :  { %v3470_v13 = vpop.f32.mrf.mxu1  ;;  %v2726_v31 = vpop.f32.mrf.mxu0 }
 0x408   :  { %4236 = vst [vmem:[#allocation7 + $0xc08] sm:$0xff] %v3470_v13  ;;  %3988 = vst [vmem:[#allocation7 + $0x448] sm:$0xff] %v2726_v31 }
 0x409   :  { %v3474_v35 = vpop.f32.mrf.mxu1  ;;  %4886 = vmatmul.mubr.msk.f32.gmra.mxu1 %vm1481_vm5, %v1466_v32  ;;  %v2730_v36 = vpop.f32.mrf.mxu0  ;;  %4762 = vmatmul.mubr.msk.f32.gmra.mxu0 %vm1481_vm5, %v1342_v10 }
 0x40a   :  { %4237 = vst [vmem:[#allocation7 + $0xc10] sm:$0xff] %v3474_v35  ;;  %3766 = vmatprep.mubr.f32.mxu1 %v5225_v61  ;;  %3989 = vst [vmem:[#allocation7 + $0x450] sm:$0xff] %v2730_v36  ;;  %3022 = vmatprep.mubr.f32.mxu0 %v5225_v61  ;;  %v1478_v35 = vld [vmem:[%s7129_s3 + $0x7e8] sm:$0xff] }
 0x40b   :  { %v3476_v37 = vpop.f32.mrf.mxu1  ;;  %v2732_v34 = vpop.f32.mrf.mxu0 }
 0x40c   :  { %4238 = vst [vmem:[#allocation7 + $0xc18] sm:$0xff] %v3476_v37  ;;  %3990 = vst [vmem:[#allocation7 + $0x458] sm:$0xff] %v2732_v34  ;;  %v1479_v34 = vld [vmem:[%s7129_s3 + $0x7f0] sm:$0xff] }
 0x40d   :  { %v3480_v12 = vpop.f32.mrf.mxu1  ;;  %4887 = vmatmul.mubr.msk.f32.gmra.mxu1 %vm1481_vm5, %v1467_v18  ;;  %v2736_v17 = vpop.f32.mrf.mxu0  ;;  %4763 = vmatmul.mubr.msk.f32.gmra.mxu0 %vm1481_vm5, %v1343_v16 }
 0x40e   :  { %4239 = vst [vmem:[#allocation7 + $0xc20] sm:$0xff] %v3480_v12  ;;  %3772 = vmatprep.mubr.f32.mxu1 %v5225_v61  ;;  %3991 = vst [vmem:[#allocation7 + $0x460] sm:$0xff] %v2736_v17  ;;  %3028 = vmatprep.mubr.f32.mxu0 %v5225_v61 }
 0x40f   :  { %v3482_v40 = vpop.f32.mrf.mxu1  ;;  %v2738_v19 = vpop.f32.mrf.mxu0 }
 0x410   :  { %4240 = vst [vmem:[#allocation7 + $0xc28] sm:$0xff] %v3482_v40  ;;  %3992 = vst [vmem:[#allocation7 + $0x468] sm:$0xff] %v2738_v19  ;;  %v1480_v40 = vld [vmem:[%s7129_s3 + $0x7f8] sm:$0xff]  ;;  %s5226_s3 = smov [#allocation7]  }
 0x411   :  { %v3486_v24 = vpop.f32.mrf.mxu1  ;;  %4888 = vmatmul.mubr.msk.f32.gmra.mxu1 %vm1481_vm5, %v1468_v38  ;;  %v2742_v41 = vpop.f32.mrf.mxu0  ;;  %4764 = vmatmul.mubr.msk.f32.gmra.mxu0 %vm1481_vm5, %v1344_v39  ;;  %s4368_s21 = sshll.u32 %s5226_s3, 4  ;;  %s4369_s21 = int_to_ptr.vmem [resolvable:$true] %s4368_s21 }
 0x412   :  { %4241 = vst [vmem:[#allocation7 + $0xc30] sm:$0xff] %v3486_v24  ;;  %3778 = vmatprep.mubr.f32.mxu1 %v5225_v61  ;;  %3993 = vst [vmem:[#allocation7 + $0x470] sm:$0xff] %v2742_v41  ;;  %3034 = vmatprep.mubr.f32.mxu0 %v5225_v61  ;;  %s5193_s22 = scalar_lea.vmem %s4369_s21, 65536  ;;  %p5198_p11 = scmp.lt.s32.totalorder %s4369_s21, %s4369_s21 }
 0x413   :  { %v3488_v20 = vpop.f32.mrf.mxu1  ;;  %v2744_v21 = vpop.f32.mrf.mxu0  ;;  %p5194_p10 = scmp.ne.s32.totalorder %s4369_s21, %s5193_s22  ;;  %p5199_p12 = scmp.lt.s32.totalorder %s5193_s22, %s5193_s22 }
 0x414   :  { %4242 = vst [vmem:[#allocation7 + $0xc38] sm:$0xff] %v3488_v20  ;;  %3994 = vst [vmem:[#allocation7 + $0x478] sm:$0xff] %v2744_v21 }
 0x415   :  { %v3492_v44 = vpop.f32.mrf.mxu1  ;;  %4889 = vmatmul.mubr.msk.f32.gmra.mxu1 %vm1481_vm5, %v1469_v42  ;;  %v2748_v3 = vpop.f32.mrf.mxu0  ;;  %4765 = vmatmul.mubr.msk.f32.gmra.mxu0 %vm1481_vm5, %v1345_v43  ;;  %p5200_p13 = por %p5199_p12, %p5198_p11 }
 0x416   :  { %4243 = vst [vmem:[#allocation7 + $0xc40] sm:$0xff] %v3492_v44  ;;  %3784 = vmatprep.mubr.f32.mxu1 %v5225_v61  ;;  %3995 = vst [vmem:[#allocation7 + $0x480] sm:$0xff] %v2748_v3  ;;  %3040 = vmatprep.mubr.f32.mxu0 %v5225_v61 }
 0x417   :  { %v3494_v23 = vpop.f32.mrf.mxu1  ;;  %v2750_v26 = vpop.f32.mrf.mxu0  ;;  %p5201_p0 = pnand %p5200_p13, %p5194_p10 }
 0x418   :  { %4244 = vst [vmem:[#allocation7 + $0xc48] sm:$0xff] %v3494_v23  ;;  %3996 = vst [vmem:[#allocation7 + $0x488] sm:$0xff] %v2750_v26 }
 0x419   :  { %v3498_v46 = vpop.f32.mrf.mxu1  ;;  %4890 = vmatmul.mubr.msk.f32.gmra.mxu1 %vm1481_vm5, %v1470_v27  ;;  %v2754_v47 = vpop.f32.mrf.mxu0  ;;  %4766 = vmatmul.mubr.msk.f32.gmra.mxu0 %vm1481_vm5, %v1346_v45 }
 0x41a   :  { %4245 = vst [vmem:[#allocation7 + $0xc50] sm:$0xff] %v3498_v46  ;;  %3790 = vmatprep.mubr.f32.mxu1 %v5225_v61  ;;  %3997 = vst [vmem:[#allocation7 + $0x490] sm:$0xff] %v2754_v47  ;;  %3046 = vmatprep.mubr.f32.mxu0 %v5225_v61 }
 0x41b   :  { %v3500_v25 = vpop.f32.mrf.mxu1  ;;  %v2756_v49 = vpop.f32.mrf.mxu0 }
 0x41c   :  { %4246 = vst [vmem:[#allocation7 + $0xc58] sm:$0xff] %v3500_v25  ;;  %3998 = vst [vmem:[#allocation7 + $0x498] sm:$0xff] %v2756_v49 }
 0x41d   :  { %v3504_v50 = vpop.f32.mrf.mxu1  ;;  %4891 = vmatmul.mubr.msk.f32.gmra.mxu1 %vm1481_vm5, %v1471_v48  ;;  %v2760_v51 = vpop.f32.mrf.mxu0  ;;  %4767 = vmatmul.mubr.msk.f32.gmra.mxu0 %vm1481_vm5, %v1347_v22 }
 0x41e   :  { %4247 = vst [vmem:[#allocation7 + $0xc60] sm:$0xff] %v3504_v50  ;;  %3796 = vmatprep.mubr.f32.mxu1 %v5225_v61  ;;  %3999 = vst [vmem:[#allocation7 + $0x4a0] sm:$0xff] %v2760_v51  ;;  %3052 = vmatprep.mubr.f32.mxu0 %v5225_v61 }
 0x41f   :  { %v3506_v30 = vpop.f32.mrf.mxu1  ;;  %v2762_v33 = vpop.f32.mrf.mxu0 }
 0x420   :  { %4248 = vst [vmem:[#allocation7 + $0xc68] sm:$0xff] %v3506_v30  ;;  %4000 = vst [vmem:[#allocation7 + $0x4a8] sm:$0xff] %v2762_v33 }
 0x421   :  { %v3510_v54 = vpop.f32.mrf.mxu1  ;;  %4892 = vmatmul.mubr.msk.f32.gmra.mxu1 %vm1481_vm5, %v1472_v52  ;;  %v2766_v55 = vpop.f32.mrf.mxu0  ;;  %4768 = vmatmul.mubr.msk.f32.gmra.mxu0 %vm1481_vm5, %v1348_v53 }
 0x422   :  { %4249 = vst [vmem:[#allocation7 + $0xc70] sm:$0xff] %v3510_v54  ;;  %3802 = vmatprep.mubr.f32.mxu1 %v5225_v61  ;;  %4001 = vst [vmem:[#allocation7 + $0x4b0] sm:$0xff] %v2766_v55 }
 0x423   :  { %v3512_v28 = vpop.f32.mrf.mxu1  ;;  %v2768_v56 = vpop.f32.mrf.mxu0 }
 0x424   :  { %4250 = vst [vmem:[#allocation7 + $0xc78] sm:$0xff] %v3512_v28  ;;  %4002 = vst [vmem:[#allocation7 + $0x4b8] sm:$0xff] %v2768_v56 }
 0x425   :  { %v3516_v57 = vpop.f32.mrf.mxu1  ;;  %4893 = vmatmul.mubr.msk.f32.gmra.mxu1 %vm1481_vm5, %v1473_v29  ;;  %v2772_v58 = vpop.f32.mrf.mxu0 }
 0x426   :  { %4251 = vst [vmem:[#allocation7 + $0xc80] sm:$0xff] %v3516_v57  ;;  %3808 = vmatprep.mubr.f32.mxu1 %v5225_v61  ;;  %4003 = vst [vmem:[#allocation7 + $0x4c0] sm:$0xff] %v2772_v58 }
 0x427   :  { %v3518_v60 = vpop.f32.mrf.mxu1  ;;  %v2774_v62 = vpop.f32.mrf.mxu0 }
 0x428   :  { %4252 = vst [vmem:[#allocation7 + $0xc88] sm:$0xff] %v3518_v60  ;;  %4004 = vst [vmem:[#allocation7 + $0x4c8] sm:$0xff] %v2774_v62 }
 0x429   :  { %v3522_v63 = vpop.f32.mrf.mxu1  ;;  %4894 = vmatmul.mubr.msk.f32.gmra.mxu1 %vm1481_vm5, %v1474_v59  ;;  %v2778_v0 = vpop.f32.mrf.mxu0 }
 0x42a   :  { %4253 = vst [vmem:[#allocation7 + $0xc90] sm:$0xff] %v3522_v63  ;;  %3814 = vmatprep.mubr.f32.mxu1 %v5225_v61  ;;  %4005 = vst [vmem:[#allocation7 + $0x4d0] sm:$0xff] %v2778_v0 }
 0x42b   :  { %v3524_v2 = vpop.f32.mrf.mxu1  ;;  %v2780_v4 = vpop.f32.mrf.mxu0 }
 0x42c   :  { %4254 = vst [vmem:[#allocation7 + $0xc98] sm:$0xff] %v3524_v2  ;;  %4006 = vst [vmem:[#allocation7 + $0x4d8] sm:$0xff] %v2780_v4 }
 0x42d   :  { %v3528_v5 = vpop.f32.mrf.mxu1  ;;  %4895 = vmatmul.mubr.msk.f32.gmra.mxu1 %vm1481_vm5, %v1475_v1  ;;  %v2784_v6 = vpop.f32.mrf.mxu0 }
 0x42e   :  { %4255 = vst [vmem:[#allocation7 + $0xca0] sm:$0xff] %v3528_v5  ;;  %3820 = vmatprep.mubr.f32.mxu1 %v5225_v61  ;;  %4007 = vst [vmem:[#allocation7 + $0x4e0] sm:$0xff] %v2784_v6 }
 0x42f   :  { %v3530_v8 = vpop.f32.mrf.mxu1  ;;  %v2786_v9 = vpop.f32.mrf.mxu0 }
 0x430   :  { %4256 = vst [vmem:[#allocation7 + $0xca8] sm:$0xff] %v3530_v8  ;;  %4008 = vst [vmem:[#allocation7 + $0x4e8] sm:$0xff] %v2786_v9 }
 0x431   :  { %v3534_v11 = vpop.f32.mrf.mxu1  ;;  %4896 = vmatmul.mubr.msk.f32.gmra.mxu1 %vm1481_vm5, %v1476_v7  ;;  %v2790_v14 = vpop.f32.mrf.mxu0 }
 0x432   :  { %4257 = vst [vmem:[#allocation7 + $0xcb0] sm:$0xff] %v3534_v11  ;;  %3826 = vmatprep.mubr.f32.mxu1 %v5225_v61  ;;  %4009 = vst [vmem:[#allocation7 + $0x4f0] sm:$0xff] %v2790_v14 }
 0x433   :  { %v3536_v32 = vpop.f32.mrf.mxu1  ;;  %v2792_v10 = vpop.f32.mrf.mxu0 }
 0x434   :  { %4258 = vst [vmem:[#allocation7 + $0xcb8] sm:$0xff] %v3536_v32  ;;  %4010 = vst [vmem:[#allocation7 + $0x4f8] sm:$0xff] %v2792_v10 }
 0x435   :  { %v3540_v13 = vpop.f32.mrf.mxu1  ;;  %4897 = vmatmul.mubr.msk.f32.gmra.mxu1 %vm1481_vm5, %v1477_v15  ;;  %v2796_v31 = vpop.f32.mrf.mxu0 }
 0x436   :  { %4259 = vst [vmem:[#allocation7 + $0xcc0] sm:$0xff] %v3540_v13  ;;  %3832 = vmatprep.mubr.f32.mxu1 %v5225_v61  ;;  %4011 = vst [vmem:[#allocation7 + $0x500] sm:$0xff] %v2796_v31 }
 0x437   :  { %v3542_v36 = vpop.f32.mrf.mxu1  ;;  %v2798_v18 = vpop.f32.mrf.mxu0 }
 0x438   :  { %4260 = vst [vmem:[#allocation7 + $0xcc8] sm:$0xff] %v3542_v36  ;;  %4012 = vst [vmem:[#allocation7 + $0x508] sm:$0xff] %v2798_v18 }
 0x439   :  { %v3546_v16 = vpop.f32.mrf.mxu1  ;;  %4898 = vmatmul.mubr.msk.f32.gmra.mxu1 %vm1481_vm5, %v1478_v35  ;;  %v2802_v37 = vpop.f32.mrf.mxu0 }
 0x43a   :  { %4261 = vst [vmem:[#allocation7 + $0xcd0] sm:$0xff] %v3546_v16  ;;  %3838 = vmatprep.mubr.f32.mxu1 %v5225_v61  ;;  %4013 = vst [vmem:[#allocation7 + $0x510] sm:$0xff] %v2802_v37 }
 0x43b   :  { %v3548_v12 = vpop.f32.mrf.mxu1  ;;  %v2804_v17 = vpop.f32.mrf.mxu0 }
 0x43c   :  { %4262 = vst [vmem:[#allocation7 + $0xcd8] sm:$0xff] %v3548_v12  ;;  %4014 = vst [vmem:[#allocation7 + $0x518] sm:$0xff] %v2804_v17 }
 0x43d   :  { %v3552_v38 = vpop.f32.mrf.mxu1  ;;  %4899 = vmatmul.mubr.msk.f32.gmra.mxu1 %vm1481_vm5, %v1479_v34  ;;  %v2808_v39 = vpop.f32.mrf.mxu0 }
 0x43e   :  { %4263 = vst [vmem:[#allocation7 + $0xce0] sm:$0xff] %v3552_v38  ;;  %3844 = vmatprep.mubr.f32.mxu1 %v5225_v61  ;;  %4015 = vst [vmem:[#allocation7 + $0x520] sm:$0xff] %v2808_v39 }
 0x43f   :  { %v3554_v19 = vpop.f32.mrf.mxu1  ;;  %v2810_v24 = vpop.f32.mrf.mxu0 }
 0x440   :  { %4264 = vst [vmem:[#allocation7 + $0xce8] sm:$0xff] %v3554_v19  ;;  %4016 = vst [vmem:[#allocation7 + $0x528] sm:$0xff] %v2810_v24 }
 0x441   :  { %v3558_v41 = vpop.f32.mrf.mxu1  ;;  %4900 = vmatmul.mubr.msk.f32.gmra.mxu1 %vm1481_vm5, %v1480_v40  ;;  %v2814_v42 = vpop.f32.mrf.mxu0 }
 0x442   :  { %4265 = vst [vmem:[#allocation7 + $0xcf0] sm:$0xff] %v3558_v41  ;;  %4017 = vst [vmem:[#allocation7 + $0x530] sm:$0xff] %v2814_v42 }
 0x443   :  { %v3560_v43 = vpop.f32.mrf.mxu1  ;;  %v2816_v20 = vpop.f32.mrf.mxu0 }
 0x444   :  { %4266 = vst [vmem:[#allocation7 + $0xcf8] sm:$0xff] %v3560_v43  ;;  %4018 = vst [vmem:[#allocation7 + $0x538] sm:$0xff] %v2816_v20 }
 0x445   :  { %v3564_v61 = vpop.f32.mrf.mxu1  ;;  %v2820_v21 = vpop.f32.mrf.mxu0 }
 0x446   :  { %4267 = vst [vmem:[#allocation7 + $0xd00] sm:$0xff] %v3564_v61  ;;  %4019 = vst [vmem:[#allocation7 + $0x540] sm:$0xff] %v2820_v21 }
 0x447   :  { %v3566_v44 = vpop.f32.mrf.mxu1  ;;  %v2822_v3 = vpop.f32.mrf.mxu0 }
 0x448   :  { %4268 = vst [vmem:[#allocation7 + $0xd08] sm:$0xff] %v3566_v44  ;;  %4020 = vst [vmem:[#allocation7 + $0x548] sm:$0xff] %v2822_v3 }
 0x449   :  { %v3570_v27 = vpop.f32.mrf.mxu1  ;;  %v2826_v45 = vpop.f32.mrf.mxu0 }
 0x44a   :  { %4269 = vst [vmem:[#allocation7 + $0xd10] sm:$0xff] %v3570_v27  ;;  %4021 = vst [vmem:[#allocation7 + $0x550] sm:$0xff] %v2826_v45 }
 0x44b   :  { %v3572_v23 = vpop.f32.mrf.mxu1  ;;  %v2828_v26 = vpop.f32.mrf.mxu0 }
 0x44c   :  { %4270 = vst [vmem:[#allocation7 + $0xd18] sm:$0xff] %v3572_v23  ;;  %4022 = vst [vmem:[#allocation7 + $0x558] sm:$0xff] %v2828_v26 }
 0x44d   :  { %v3576_v46 = vpop.f32.mrf.mxu1  ;;  %v2832_v47 = vpop.f32.mrf.mxu0 }
 0x44e   :  { %4271 = vst [vmem:[#allocation7 + $0xd20] sm:$0xff] %v3576_v46  ;;  %4023 = vst [vmem:[#allocation7 + $0x560] sm:$0xff] %v2832_v47 }
 0x44f   :  { %v3578_v48 = vpop.f32.mrf.mxu1  ;;  %v2834_v22 = vpop.f32.mrf.mxu0 }
 0x450   :  { %4272 = vst [vmem:[#allocation7 + $0xd28] sm:$0xff] %v3578_v48  ;;  %4024 = vst [vmem:[#allocation7 + $0x568] sm:$0xff] %v2834_v22 }
 0x451   :  { %v3582_v25 = vpop.f32.mrf.mxu1  ;;  %v2838_v49 = vpop.f32.mrf.mxu0 }
 0x452   :  { %4273 = vst [vmem:[#allocation7 + $0xd30] sm:$0xff] %v3582_v25  ;;  %4025 = vst [vmem:[#allocation7 + $0x570] sm:$0xff] %v2838_v49 }
 0x453   :  { %v3584_v50 = vpop.f32.mrf.mxu1  ;;  %v2840_v51 = vpop.f32.mrf.mxu0 }
 0x454   :  { %4274 = vst [vmem:[#allocation7 + $0xd38] sm:$0xff] %v3584_v50  ;;  %4026 = vst [vmem:[#allocation7 + $0x578] sm:$0xff] %v2840_v51 }
 0x455   :  { %v3588_v52 = vpop.f32.mrf.mxu1  ;;  %v2844_v53 = vpop.f32.mrf.mxu0 }
 0x456   :  { %4275 = vst [vmem:[#allocation7 + $0xd40] sm:$0xff] %v3588_v52  ;;  %4027 = vst [vmem:[#allocation7 + $0x580] sm:$0xff] %v2844_v53 }
 0x457   :  { %v3590_v30 = vpop.f32.mrf.mxu1  ;;  %v2846_v33 = vpop.f32.mrf.mxu0 }
 0x458   :  { %4276 = vst [vmem:[#allocation7 + $0xd48] sm:$0xff] %v3590_v30  ;;  %4028 = vst [vmem:[#allocation7 + $0x588] sm:$0xff] %v2846_v33 }
 0x459   :  { %v3594_v54 = vpop.f32.mrf.mxu1  ;;  %v2850_v55 = vpop.f32.mrf.mxu0 }
 0x45a   :  { %4277 = vst [vmem:[#allocation7 + $0xd50] sm:$0xff] %v3594_v54  ;;  %4029 = vst [vmem:[#allocation7 + $0x590] sm:$0xff] %v2850_v55 }
 0x45b   :  { %v3596_v29 = vpop.f32.mrf.mxu1  ;;  %v2852_v28 = vpop.f32.mrf.mxu0 }
 0x45c   :  { %4278 = vst [vmem:[#allocation7 + $0xd58] sm:$0xff] %v3596_v29  ;;  %4030 = vst [vmem:[#allocation7 + $0x598] sm:$0xff] %v2852_v28 }
 0x45d   :  { %v3600_v56 = vpop.f32.mrf.mxu1  ;;  %v2856_v57 = vpop.f32.mrf.mxu0 }
 0x45e   :  { %4279 = vst [vmem:[#allocation7 + $0xd60] sm:$0xff] %v3600_v56  ;;  %4031 = vst [vmem:[#allocation7 + $0x5a0] sm:$0xff] %v2856_v57 }
 0x45f   :  { %v3602_v58 = vpop.f32.mrf.mxu1  ;;  %v2858_v59 = vpop.f32.mrf.mxu0 }
 0x460   :  { %4280 = vst [vmem:[#allocation7 + $0xd68] sm:$0xff] %v3602_v58  ;;  %4032 = vst [vmem:[#allocation7 + $0x5a8] sm:$0xff] %v2858_v59 }
 0x461   :  { %v3606_v60 = vpop.f32.mrf.mxu1  ;;  %v2862_v62 = vpop.f32.mrf.mxu0 }
 0x462   :  { %4281 = vst [vmem:[#allocation7 + $0xd70] sm:$0xff] %v3606_v60  ;;  %4033 = vst [vmem:[#allocation7 + $0x5b0] sm:$0xff] %v2862_v62 }
 0x463   :  { %v3608_v63 = vpop.f32.mrf.mxu1  ;;  %v2864_v0 = vpop.f32.mrf.mxu0 }
 0x464   :  { %4282 = vst [vmem:[#allocation7 + $0xd78] sm:$0xff] %v3608_v63  ;;  %4034 = vst [vmem:[#allocation7 + $0x5b8] sm:$0xff] %v2864_v0 }
 0x465   :  { %v3612_v1 = vpop.f32.mrf.mxu1  ;;  %v2868_v2 = vpop.f32.mrf.mxu0 }
 0x466   :  { %4283 = vst [vmem:[#allocation7 + $0xd80] sm:$0xff] %v3612_v1  ;;  %4035 = vst [vmem:[#allocation7 + $0x5c0] sm:$0xff] %v2868_v2 }
 0x467   :  { %v3614_v4 = vpop.f32.mrf.mxu1  ;;  %v2870_v5 = vpop.f32.mrf.mxu0 }
 0x468   :  { %4284 = vst [vmem:[#allocation7 + $0xd88] sm:$0xff] %v3614_v4  ;;  %4036 = vst [vmem:[#allocation7 + $0x5c8] sm:$0xff] %v2870_v5 }
 0x469   :  { %v3618_v6 = vpop.f32.mrf.mxu1  ;;  %v2874_v7 = vpop.f32.mrf.mxu0 }
 0x46a   :  { %4285 = vst [vmem:[#allocation7 + $0xd90] sm:$0xff] %v3618_v6  ;;  %4037 = vst [vmem:[#allocation7 + $0x5d0] sm:$0xff] %v2874_v7 }
 0x46b   :  { %v3620_v8 = vpop.f32.mrf.mxu1  ;;  %v2876_v9 = vpop.f32.mrf.mxu0 }
 0x46c   :  { %4286 = vst [vmem:[#allocation7 + $0xd98] sm:$0xff] %v3620_v8  ;;  %4038 = vst [vmem:[#allocation7 + $0x5d8] sm:$0xff] %v2876_v9 }
 0x46d   :  { %v3624_v11 = vpop.f32.mrf.mxu1  ;;  %v2880_v14 = vpop.f32.mrf.mxu0 }
 0x46e   :  { %4287 = vst [vmem:[#allocation7 + $0xda0] sm:$0xff] %v3624_v11  ;;  %4039 = vst [vmem:[#allocation7 + $0x5e0] sm:$0xff] %v2880_v14 }
 0x46f   :  { %v3626_v15 = vpop.f32.mrf.mxu1  ;;  %v2882_v32 = vpop.f32.mrf.mxu0 }
 0x470   :  { %4288 = vst [vmem:[#allocation7 + $0xda8] sm:$0xff] %v3626_v15  ;;  %4040 = vst [vmem:[#allocation7 + $0x5e8] sm:$0xff] %v2882_v32 }
 0x471   :  { %v3630_v10 = vpop.f32.mrf.mxu1  ;;  %v2886_v13 = vpop.f32.mrf.mxu0 }
 0x472   :  { %4289 = vst [vmem:[#allocation7 + $0xdb0] sm:$0xff] %v3630_v10  ;;  %4041 = vst [vmem:[#allocation7 + $0x5f0] sm:$0xff] %v2886_v13 }
 0x473   :  { %v3632_v31 = vpop.f32.mrf.mxu1  ;;  %v2888_v35 = vpop.f32.mrf.mxu0 }
 0x474   :  { %4290 = vst [vmem:[#allocation7 + $0xdb8] sm:$0xff] %v3632_v31  ;;  %4042 = vst [vmem:[#allocation7 + $0x5f8] sm:$0xff] %v2888_v35 }
 0x475   :  { %v3636_v36 = vpop.f32.mrf.mxu1  ;;  %v2892_v18 = vpop.f32.mrf.mxu0 }
 0x476   :  { %4291 = vst [vmem:[#allocation7 + $0xdc0] sm:$0xff] %v3636_v36  ;;  %4043 = vst [vmem:[#allocation7 + $0x600] sm:$0xff] %v2892_v18 }
 0x477   :  { %v3638_v16 = vpop.f32.mrf.mxu1  ;;  %v2894_v37 = vpop.f32.mrf.mxu0 }
 0x478   :  { %4292 = vst [vmem:[#allocation7 + $0xdc8] sm:$0xff] %v3638_v16  ;;  %4044 = vst [vmem:[#allocation7 + $0x608] sm:$0xff] %v2894_v37 }
 0x479   :  { %v3642_v34 = vpop.f32.mrf.mxu1  ;;  %v2898_v12 = vpop.f32.mrf.mxu0 }
 0x47a   :  { %4293 = vst [vmem:[#allocation7 + $0xdd0] sm:$0xff] %v3642_v34  ;;  %4045 = vst [vmem:[#allocation7 + $0x610] sm:$0xff] %v2898_v12 }
 0x47b   :  { %v3644_v17 = vpop.f32.mrf.mxu1  ;;  %v2900_v38 = vpop.f32.mrf.mxu0 }
 0x47c   :  { %4294 = vst [vmem:[#allocation7 + $0xdd8] sm:$0xff] %v3644_v17  ;;  %4046 = vst [vmem:[#allocation7 + $0x618] sm:$0xff] %v2900_v38 }
 0x47d   :  { %v3648_v39 = vpop.f32.mrf.mxu1  ;;  %v2904_v40 = vpop.f32.mrf.mxu0 }
 0x47e   :  { %4295 = vst [vmem:[#allocation7 + $0xde0] sm:$0xff] %v3648_v39  ;;  %4047 = vst [vmem:[#allocation7 + $0x620] sm:$0xff] %v2904_v40 }
 0x47f   :  { %v3650_v19 = vpop.f32.mrf.mxu1  ;;  %v2906_v24 = vpop.f32.mrf.mxu0 }
 0x480   :  { %4296 = vst [vmem:[#allocation7 + $0xde8] sm:$0xff] %v3650_v19  ;;  %4048 = vst [vmem:[#allocation7 + $0x628] sm:$0xff] %v2906_v24 }
 0x481   :  { %v3654_v41 = vpop.f32.mrf.mxu1  ;;  %v2910_v42 = vpop.f32.mrf.mxu0 }
 0x482   :  { %4297 = vst [vmem:[#allocation7 + $0xdf0] sm:$0xff] %v3654_v41  ;;  %4049 = vst [vmem:[#allocation7 + $0x630] sm:$0xff] %v2910_v42 }
 0x483   :  { %v3656_v43 = vpop.f32.mrf.mxu1  ;;  %v2912_v20 = vpop.f32.mrf.mxu0 }
 0x484   :  { %4298 = vst [vmem:[#allocation7 + $0xdf8] sm:$0xff] %v3656_v43  ;;  %4050 = vst [vmem:[#allocation7 + $0x638] sm:$0xff] %v2912_v20 }
 0x485   :  { %v3660_v61 = vpop.f32.mrf.mxu1  ;;  %v2916_v21 = vpop.f32.mrf.mxu0 }
 0x486   :  { %4299 = vst [vmem:[#allocation7 + $0xe00] sm:$0xff] %v3660_v61  ;;  %4051 = vst [vmem:[#allocation7 + $0x640] sm:$0xff] %v2916_v21 }
 0x487   :  { %v3662_v44 = vpop.f32.mrf.mxu1  ;;  %v2918_v3 = vpop.f32.mrf.mxu0 }
 0x488   :  { %4300 = vst [vmem:[#allocation7 + $0xe08] sm:$0xff] %v3662_v44  ;;  %4052 = vst [vmem:[#allocation7 + $0x648] sm:$0xff] %v2918_v3 }
 0x489   :  { %v3666_v27 = vpop.f32.mrf.mxu1  ;;  %v2922_v45 = vpop.f32.mrf.mxu0 }
 0x48a   :  { %4301 = vst [vmem:[#allocation7 + $0xe10] sm:$0xff] %v3666_v27  ;;  %4053 = vst [vmem:[#allocation7 + $0x650] sm:$0xff] %v2922_v45 }
 0x48b   :  { %v3668_v23 = vpop.f32.mrf.mxu1  ;;  %v2924_v26 = vpop.f32.mrf.mxu0 }
 0x48c   :  { %4302 = vst [vmem:[#allocation7 + $0xe18] sm:$0xff] %v3668_v23  ;;  %4054 = vst [vmem:[#allocation7 + $0x658] sm:$0xff] %v2924_v26 }
 0x48d   :  { %v3672_v46 = vpop.f32.mrf.mxu1  ;;  %v2928_v47 = vpop.f32.mrf.mxu0 }
 0x48e   :  { %4303 = vst [vmem:[#allocation7 + $0xe20] sm:$0xff] %v3672_v46  ;;  %4055 = vst [vmem:[#allocation7 + $0x660] sm:$0xff] %v2928_v47 }
 0x48f   :  { %v3674_v48 = vpop.f32.mrf.mxu1  ;;  %v2930_v22 = vpop.f32.mrf.mxu0 }
 0x490   :  { %4304 = vst [vmem:[#allocation7 + $0xe28] sm:$0xff] %v3674_v48  ;;  %4056 = vst [vmem:[#allocation7 + $0x668] sm:$0xff] %v2930_v22 }
 0x491   :  { %v3678_v25 = vpop.f32.mrf.mxu1  ;;  %v2934_v49 = vpop.f32.mrf.mxu0 }
 0x492   :  { %4305 = vst [vmem:[#allocation7 + $0xe30] sm:$0xff] %v3678_v25  ;;  %4057 = vst [vmem:[#allocation7 + $0x670] sm:$0xff] %v2934_v49 }
 0x493   :  { %v3680_v50 = vpop.f32.mrf.mxu1  ;;  %v2936_v51 = vpop.f32.mrf.mxu0 }
 0x494   :  { %4306 = vst [vmem:[#allocation7 + $0xe38] sm:$0xff] %v3680_v50  ;;  %4058 = vst [vmem:[#allocation7 + $0x678] sm:$0xff] %v2936_v51 }
 0x495   :  { %v3684_v52 = vpop.f32.mrf.mxu1  ;;  %v2940_v53 = vpop.f32.mrf.mxu0 }
 0x496   :  { %4307 = vst [vmem:[#allocation7 + $0xe40] sm:$0xff] %v3684_v52  ;;  %4059 = vst [vmem:[#allocation7 + $0x680] sm:$0xff] %v2940_v53 }
 0x497   :  { %v3686_v30 = vpop.f32.mrf.mxu1  ;;  %v2942_v33 = vpop.f32.mrf.mxu0 }
 0x498   :  { %4308 = vst [vmem:[#allocation7 + $0xe48] sm:$0xff] %v3686_v30  ;;  %4060 = vst [vmem:[#allocation7 + $0x688] sm:$0xff] %v2942_v33 }
 0x499   :  { %v3690_v54 = vpop.f32.mrf.mxu1  ;;  %v2946_v55 = vpop.f32.mrf.mxu0 }
 0x49a   :  { %4309 = vst [vmem:[#allocation7 + $0xe50] sm:$0xff] %v3690_v54  ;;  %4061 = vst [vmem:[#allocation7 + $0x690] sm:$0xff] %v2946_v55 }
 0x49b   :  { %v3692_v29 = vpop.f32.mrf.mxu1  ;;  %v2948_v28 = vpop.f32.mrf.mxu0 }
 0x49c   :  { %4310 = vst [vmem:[#allocation7 + $0xe58] sm:$0xff] %v3692_v29  ;;  %4062 = vst [vmem:[#allocation7 + $0x698] sm:$0xff] %v2948_v28 }
 0x49d   :  { %v3696_v56 = vpop.f32.mrf.mxu1  ;;  %v2952_v57 = vpop.f32.mrf.mxu0 }
 0x49e   :  { %4311 = vst [vmem:[#allocation7 + $0xe60] sm:$0xff] %v3696_v56  ;;  %4063 = vst [vmem:[#allocation7 + $0x6a0] sm:$0xff] %v2952_v57 }
 0x49f   :  { %v3698_v58 = vpop.f32.mrf.mxu1  ;;  %v2954_v59 = vpop.f32.mrf.mxu0 }
 0x4a0   :  { %4312 = vst [vmem:[#allocation7 + $0xe68] sm:$0xff] %v3698_v58  ;;  %4064 = vst [vmem:[#allocation7 + $0x6a8] sm:$0xff] %v2954_v59 }
 0x4a1   :  { %v3702_v60 = vpop.f32.mrf.mxu1  ;;  %v2958_v62 = vpop.f32.mrf.mxu0 }
 0x4a2   :  { %4313 = vst [vmem:[#allocation7 + $0xe70] sm:$0xff] %v3702_v60  ;;  %4065 = vst [vmem:[#allocation7 + $0x6b0] sm:$0xff] %v2958_v62 }
 0x4a3   :  { %v3704_v63 = vpop.f32.mrf.mxu1  ;;  %v2960_v0 = vpop.f32.mrf.mxu0 }
 0x4a4   :  { %4314 = vst [vmem:[#allocation7 + $0xe78] sm:$0xff] %v3704_v63  ;;  %4066 = vst [vmem:[#allocation7 + $0x6b8] sm:$0xff] %v2960_v0 }
 0x4a5   :  { %v3708_v1 = vpop.f32.mrf.mxu1  ;;  %v2964_v2 = vpop.f32.mrf.mxu0 }
 0x4a6   :  { %4315 = vst [vmem:[#allocation7 + $0xe80] sm:$0xff] %v3708_v1  ;;  %4067 = vst [vmem:[#allocation7 + $0x6c0] sm:$0xff] %v2964_v2 }
 0x4a7   :  { %v3710_v4 = vpop.f32.mrf.mxu1  ;;  %v2966_v5 = vpop.f32.mrf.mxu0 }
 0x4a8   :  { %4316 = vst [vmem:[#allocation7 + $0xe88] sm:$0xff] %v3710_v4  ;;  %4068 = vst [vmem:[#allocation7 + $0x6c8] sm:$0xff] %v2966_v5 }
 0x4a9   :  { %v3714_v6 = vpop.f32.mrf.mxu1  ;;  %v2970_v7 = vpop.f32.mrf.mxu0 }
 0x4aa   :  { %4317 = vst [vmem:[#allocation7 + $0xe90] sm:$0xff] %v3714_v6  ;;  %4069 = vst [vmem:[#allocation7 + $0x6d0] sm:$0xff] %v2970_v7 }
 0x4ab   :  { %v3716_v8 = vpop.f32.mrf.mxu1  ;;  %v2972_v9 = vpop.f32.mrf.mxu0 }
 0x4ac   :  { %4318 = vst [vmem:[#allocation7 + $0xe98] sm:$0xff] %v3716_v8  ;;  %4070 = vst [vmem:[#allocation7 + $0x6d8] sm:$0xff] %v2972_v9 }
 0x4ad   :  { %v3720_v11 = vpop.f32.mrf.mxu1  ;;  %v2976_v14 = vpop.f32.mrf.mxu0 }
 0x4ae   :  { %4319 = vst [vmem:[#allocation7 + $0xea0] sm:$0xff] %v3720_v11  ;;  %4071 = vst [vmem:[#allocation7 + $0x6e0] sm:$0xff] %v2976_v14 }
 0x4af   :  { %v3722_v15 = vpop.f32.mrf.mxu1  ;;  %v2978_v32 = vpop.f32.mrf.mxu0 }
 0x4b0   :  { %4320 = vst [vmem:[#allocation7 + $0xea8] sm:$0xff] %v3722_v15  ;;  %4072 = vst [vmem:[#allocation7 + $0x6e8] sm:$0xff] %v2978_v32 }
 0x4b1   :  { %v3726_v10 = vpop.f32.mrf.mxu1  ;;  %v2982_v13 = vpop.f32.mrf.mxu0 }
 0x4b2   :  { %4321 = vst [vmem:[#allocation7 + $0xeb0] sm:$0xff] %v3726_v10  ;;  %4073 = vst [vmem:[#allocation7 + $0x6f0] sm:$0xff] %v2982_v13 }
 0x4b3   :  { %v3728_v31 = vpop.f32.mrf.mxu1  ;;  %v2984_v35 = vpop.f32.mrf.mxu0 }
 0x4b4   :  { %4322 = vst [vmem:[#allocation7 + $0xeb8] sm:$0xff] %v3728_v31  ;;  %4074 = vst [vmem:[#allocation7 + $0x6f8] sm:$0xff] %v2984_v35 }
 0x4b5   :  { %v3732_v36 = vpop.f32.mrf.mxu1  ;;  %v2988_v18 = vpop.f32.mrf.mxu0 }
 0x4b6   :  { %4323 = vst [vmem:[#allocation7 + $0xec0] sm:$0xff] %v3732_v36  ;;  %4075 = vst [vmem:[#allocation7 + $0x700] sm:$0xff] %v2988_v18 }
 0x4b7   :  { %v3734_v16 = vpop.f32.mrf.mxu1  ;;  %v2990_v37 = vpop.f32.mrf.mxu0 }
 0x4b8   :  { %4324 = vst [vmem:[#allocation7 + $0xec8] sm:$0xff] %v3734_v16  ;;  %4076 = vst [vmem:[#allocation7 + $0x708] sm:$0xff] %v2990_v37 }
 0x4b9   :  { %v3738_v34 = vpop.f32.mrf.mxu1  ;;  %v2994_v12 = vpop.f32.mrf.mxu0 }
 0x4ba   :  { %4325 = vst [vmem:[#allocation7 + $0xed0] sm:$0xff] %v3738_v34  ;;  %4077 = vst [vmem:[#allocation7 + $0x710] sm:$0xff] %v2994_v12 }
 0x4bb   :  { %v3740_v17 = vpop.f32.mrf.mxu1  ;;  %v2996_v38 = vpop.f32.mrf.mxu0 }
 0x4bc   :  { %4326 = vst [vmem:[#allocation7 + $0xed8] sm:$0xff] %v3740_v17  ;;  %4078 = vst [vmem:[#allocation7 + $0x718] sm:$0xff] %v2996_v38 }
 0x4bd   :  { %v3744_v39 = vpop.f32.mrf.mxu1  ;;  %v3000_v40 = vpop.f32.mrf.mxu0 }
 0x4be   :  { %4327 = vst [vmem:[#allocation7 + $0xee0] sm:$0xff] %v3744_v39  ;;  %4079 = vst [vmem:[#allocation7 + $0x720] sm:$0xff] %v3000_v40 }
 0x4bf   :  { %v3746_v19 = vpop.f32.mrf.mxu1  ;;  %v3002_v24 = vpop.f32.mrf.mxu0 }
 0x4c0   :  { %4328 = vst [vmem:[#allocation7 + $0xee8] sm:$0xff] %v3746_v19  ;;  %4080 = vst [vmem:[#allocation7 + $0x728] sm:$0xff] %v3002_v24 }
 0x4c1   :  { %v3750_v41 = vpop.f32.mrf.mxu1  ;;  %v3006_v42 = vpop.f32.mrf.mxu0 }
 0x4c2   :  { %4329 = vst [vmem:[#allocation7 + $0xef0] sm:$0xff] %v3750_v41  ;;  %4081 = vst [vmem:[#allocation7 + $0x730] sm:$0xff] %v3006_v42 }
 0x4c3   :  { %v3752_v43 = vpop.f32.mrf.mxu1  ;;  %v3008_v20 = vpop.f32.mrf.mxu0 }
 0x4c4   :  { %4330 = vst [vmem:[#allocation7 + $0xef8] sm:$0xff] %v3752_v43  ;;  %4082 = vst [vmem:[#allocation7 + $0x738] sm:$0xff] %v3008_v20 }
 0x4c5   :  { %v3756_v61 = vpop.f32.mrf.mxu1  ;;  %v3012_v21 = vpop.f32.mrf.mxu0 }
 0x4c6   :  { %4331 = vst [vmem:[#allocation7 + $0xf00] sm:$0xff] %v3756_v61  ;;  %4083 = vst [vmem:[#allocation7 + $0x740] sm:$0xff] %v3012_v21 }
 0x4c7   :  { %v3758_v44 = vpop.f32.mrf.mxu1  ;;  %v3014_v3 = vpop.f32.mrf.mxu0 }
 0x4c8   :  { %4332 = vst [vmem:[#allocation7 + $0xf08] sm:$0xff] %v3758_v44  ;;  %4084 = vst [vmem:[#allocation7 + $0x748] sm:$0xff] %v3014_v3 }
 0x4c9   :  { %v3762_v27 = vpop.f32.mrf.mxu1  ;;  %v3018_v45 = vpop.f32.mrf.mxu0 }
 0x4ca   :  { %4333 = vst [vmem:[#allocation7 + $0xf10] sm:$0xff] %v3762_v27  ;;  %4085 = vst [vmem:[#allocation7 + $0x750] sm:$0xff] %v3018_v45 }
 0x4cb   :  { %v3764_v23 = vpop.f32.mrf.mxu1  ;;  %v3020_v26 = vpop.f32.mrf.mxu0 }
 0x4cc   :  { %4334 = vst [vmem:[#allocation7 + $0xf18] sm:$0xff] %v3764_v23  ;;  %4086 = vst [vmem:[#allocation7 + $0x758] sm:$0xff] %v3020_v26 }
 0x4cd   :  { %v3768_v46 = vpop.f32.mrf.mxu1  ;;  %v3024_v47 = vpop.f32.mrf.mxu0 }
 0x4ce   :  { %4335 = vst [vmem:[#allocation7 + $0xf20] sm:$0xff] %v3768_v46  ;;  %4087 = vst [vmem:[#allocation7 + $0x760] sm:$0xff] %v3024_v47 }
 0x4cf   :  { %v3770_v48 = vpop.f32.mrf.mxu1  ;;  %v3026_v22 = vpop.f32.mrf.mxu0 }
 0x4d0   :  { %4336 = vst [vmem:[#allocation7 + $0xf28] sm:$0xff] %v3770_v48  ;;  %4088 = vst [vmem:[#allocation7 + $0x768] sm:$0xff] %v3026_v22 }
 0x4d1   :  { %v3774_v25 = vpop.f32.mrf.mxu1  ;;  %v3030_v49 = vpop.f32.mrf.mxu0 }
 0x4d2   :  { %4337 = vst [vmem:[#allocation7 + $0xf30] sm:$0xff] %v3774_v25  ;;  %4089 = vst [vmem:[#allocation7 + $0x770] sm:$0xff] %v3030_v49 }
 0x4d3   :  { %v3776_v50 = vpop.f32.mrf.mxu1  ;;  %v3032_v51 = vpop.f32.mrf.mxu0 }
 0x4d4   :  { %4338 = vst [vmem:[#allocation7 + $0xf38] sm:$0xff] %v3776_v50  ;;  %4090 = vst [vmem:[#allocation7 + $0x778] sm:$0xff] %v3032_v51 }
 0x4d5   :  { %v3780_v52 = vpop.f32.mrf.mxu1  ;;  %v3036_v53 = vpop.f32.mrf.mxu0 }
 0x4d6   :  { %4339 = vst [vmem:[#allocation7 + $0xf40] sm:$0xff] %v3780_v52  ;;  %4091 = vst [vmem:[#allocation7 + $0x780] sm:$0xff] %v3036_v53 }
 0x4d7   :  { %v3782_v30 = vpop.f32.mrf.mxu1  ;;  %v3038_v33 = vpop.f32.mrf.mxu0 }
 0x4d8   :  { %4340 = vst [vmem:[#allocation7 + $0xf48] sm:$0xff] %v3782_v30  ;;  %4092 = vst [vmem:[#allocation7 + $0x788] sm:$0xff] %v3038_v33 }
 0x4d9   :  { %v3786_v54 = vpop.f32.mrf.mxu1  ;;  %v3042_v55 = vpop.f32.mrf.mxu0 }
 0x4da   :  { %4341 = vst [vmem:[#allocation7 + $0xf50] sm:$0xff] %v3786_v54  ;;  %4093 = vst [vmem:[#allocation7 + $0x790] sm:$0xff] %v3042_v55 }
 0x4db   :  { %v3788_v29 = vpop.f32.mrf.mxu1  ;;  %v3044_v28 = vpop.f32.mrf.mxu0 }
 0x4dc   :  { %4342 = vst [vmem:[#allocation7 + $0xf58] sm:$0xff] %v3788_v29  ;;  %4094 = vst [vmem:[#allocation7 + $0x798] sm:$0xff] %v3044_v28 }
 0x4dd   :  { %v3792_v56 = vpop.f32.mrf.mxu1  ;;  %v3048_v57 = vpop.f32.mrf.mxu0 }
 0x4de   :  { %4343 = vst [vmem:[#allocation7 + $0xf60] sm:$0xff] %v3792_v56  ;;  %4095 = vst [vmem:[#allocation7 + $0x7a0] sm:$0xff] %v3048_v57 }
 0x4df   :  { %v3794_v58 = vpop.f32.mrf.mxu1  ;;  %v3050_v59 = vpop.f32.mrf.mxu0 }
 0x4e0   :  { %4344 = vst [vmem:[#allocation7 + $0xf68] sm:$0xff] %v3794_v58  ;;  %4096 = vst [vmem:[#allocation7 + $0x7a8] sm:$0xff] %v3050_v59 }
 0x4e1   :  { %v3798_v60 = vpop.f32.mrf.mxu1  ;;  %v3054_v62 = vpop.f32.mrf.mxu0 }
 0x4e2   :  { %4345 = vst [vmem:[#allocation7 + $0xf70] sm:$0xff] %v3798_v60  ;;  %4097 = vst [vmem:[#allocation7 + $0x7b0] sm:$0xff] %v3054_v62 }
 0x4e3   :  { %v3800_v63 = vpop.f32.mrf.mxu1  ;;  %v3056_v0 = vpop.f32.mrf.mxu0 }
 0x4e4   :  { %4346 = vst [vmem:[#allocation7 + $0xf78] sm:$0xff] %v3800_v63  ;;  %4098 = vst [vmem:[#allocation7 + $0x7b8] sm:$0xff] %v3056_v0 }
 0x4e5   :  { %v3804_v1 = vpop.f32.mrf.mxu1 }
 0x4e6   :  { %4347 = vst [vmem:[#allocation7 + $0xf80] sm:$0xff] %v3804_v1 }
 0x4e7   :  { %v3806_v2 = vpop.f32.mrf.mxu1 }
 0x4e8   :  { %4348 = vst [vmem:[#allocation7 + $0xf88] sm:$0xff] %v3806_v2 }
 0x4e9   :  { %v3810_v4 = vpop.f32.mrf.mxu1 }
 0x4ea   :  { %4349 = vst [vmem:[#allocation7 + $0xf90] sm:$0xff] %v3810_v4 }
 0x4eb   :  { %v3812_v5 = vpop.f32.mrf.mxu1 }
 0x4ec   :  { %4350 = vst [vmem:[#allocation7 + $0xf98] sm:$0xff] %v3812_v5 }
 0x4ed   :  { %v3816_v6 = vpop.f32.mrf.mxu1 }
 0x4ee   :  { %4351 = vst [vmem:[#allocation7 + $0xfa0] sm:$0xff] %v3816_v6 }
 0x4ef   :  { %v3818_v7 = vpop.f32.mrf.mxu1 }
 0x4f0   :  { %4352 = vst [vmem:[#allocation7 + $0xfa8] sm:$0xff] %v3818_v7 }
 0x4f1   :  { %v3822_v8 = vpop.f32.mrf.mxu1 }
 0x4f2   :  { %4353 = vst [vmem:[#allocation7 + $0xfb0] sm:$0xff] %v3822_v8 }
 0x4f3   :  { %v3824_v9 = vpop.f32.mrf.mxu1 }
 0x4f4   :  { %4354 = vst [vmem:[#allocation7 + $0xfb8] sm:$0xff] %v3824_v9 }
 0x4f5   :  { %v3828_v11 = vpop.f32.mrf.mxu1 }
 0x4f6   :  { %4355 = vst [vmem:[#allocation7 + $0xfc0] sm:$0xff] %v3828_v11 }
 0x4f7   :  { %v3830_v14 = vpop.f32.mrf.mxu1 }
 0x4f8   :  { %4356 = vst [vmem:[#allocation7 + $0xfc8] sm:$0xff] %v3830_v14 }
 0x4f9   :  { %v3834_v15 = vpop.f32.mrf.mxu1 }
 0x4fa   :  { %4357 = vst [vmem:[#allocation7 + $0xfd0] sm:$0xff] %v3834_v15 }
 0x4fb   :  { %v3836_v32 = vpop.f32.mrf.mxu1 }
 0x4fc   :  { %4358 = vst [vmem:[#allocation7 + $0xfd8] sm:$0xff] %v3836_v32 }
 0x4fd   :  { %v3840_v10 = vpop.f32.mrf.mxu1 }
 0x4fe   :  { %4359 = vst [vmem:[#allocation7 + $0xfe0] sm:$0xff] %v3840_v10 }
 0x4ff   :  { %v3842_v13 = vpop.f32.mrf.mxu1 }
 0x500   :  { %4360 = vst [vmem:[#allocation7 + $0xfe8] sm:$0xff] %v3842_v13 }
 0x501   :  { %v3846_v31 = vpop.f32.mrf.mxu1 }
 0x502   :  { %4361 = vst [vmem:[#allocation7 + $0xff0] sm:$0xff] %v3846_v31 }
 0x503   :  { %v3848_v35 = vpop.f32.mrf.mxu1 }
 0x504   :  { %4362 = vst [vmem:[#allocation7 + $0xff8] sm:$0xff] %v3848_v35 }
 0x505   :  { %5204 = shalt.err (!%p5201_p0)
}
 0x506   :  { %s5227_s23 = smov 256   ;;  %s5228_s24 = smov 16  }
 0x507   :  { %4374 = dma.vmem_to_hbm [thread:$0]  %s4369_s21, 65536, %s7130_s4, [#allocation4], %s5227_s23, %s5227_s23, %s5228_s24  }
 0x508   :  { %5217 = dma.done.wait [#allocation4], 65536  }
 0x509   :  { %5218 = vsyncadd [#allocation4], 4294901760 }
 0x50a   :  { %4378 = vsyncpa [#allocation3], 1 }
 0x50b   :  { %4379 = vsyncpa [#allocation6], 1 }
 0x50c   :  { %4380 = vsyncpa [#allocation4], 1 }

</bundles_post_ra>
